<compile_context>
chip_gen: v6e
topology: v6e:2x2x1
jax: 0.10.0
libtpu: 0.0.40
codegen_flags: <defaults>
</compile_context>

<pallas_src>
import functools
import math

import jax
import jax.numpy as jnp
from jax.experimental import pallas as pl
from jax.experimental.pallas import tpu as pltpu

BN_EPS = 1e-5


def _dse_head_kernel(x_ref, w1_ref, b1_ref, w2_ref, b2_ref, out_ref, *, inv_hw):
    """Grid = (batch_tiles,), semantics ("parallel",).

    x_ref:  (tb, HW, C) f32   channels-last trunk feature tile
    w1_ref: (C, NB)     bf16  BN-folded bottleneck weight (resident)
    b1_ref: (1, NB)     f32   BN-folded bottleneck bias
    w2_ref: (NB, Kp)    bf16  classifier weight (class_num padded to 128-mult)
    b2_ref: (1, Kp)     f32   classifier bias (padded)
    out_ref:(tb, Kp)    f32   logits tile
    """
    # AdaptiveAvgPool2d((1,1)): mean over spatial positions (sublane axis).
    # inv_hw comes from the full HW (closure constant), not the block shape.
    x = x_ref[...]                                          # (tb, HW, C) f32
    pooled = jnp.sum(x, axis=1) * inv_hw                    # (tb, C) f32

    # Bottleneck Linear with BatchNorm1d folded into w1/b1; Dropout(0.5) is
    # identity in eval mode.
    h = jnp.dot(pooled.astype(w1_ref.dtype), w1_ref[...],
                preferred_element_type=jnp.float32) + b1_ref[...]   # (tb, NB) f32

    # Classifier Linear (lane-dense padded output).
    out = jnp.dot(h.astype(w2_ref.dtype), w2_ref[...],
                  preferred_element_type=jnp.float32) + b2_ref[...]  # (tb, Kp) f32
    out_ref[...] = out.astype(out_ref.dtype)


def _choose_tb(B, HW, C, x_budget_bytes=24 << 20):
    """Pick a batch tile size: sublane-aligned, VMEM-budgeted, >=2 tiles if possible."""
    per_row = HW * C * 4                                    # f32 bytes / batch elem
    cap = max(1, x_budget_bytes // (2 * per_row))           # double-buffered x
    cap = min(cap, 128)
    # tb must divide B and be a multiple of 8 (keeps output stores sublane
    # aligned) unless it equals the whole batch.
    aligned = [d for d in range(8, min(cap, B) + 1, 8) if B % d == 0]
    if aligned:
        tb = aligned[-1]
        if B // tb < 2:                                     # leave >=2 tiles for v7x
            two = [d for d in aligned if B // d >= 2]
            if two:
                tb = two[-1]
        return tb
    # Small / awkward batch: single tile equal to the full batch dim.
    # TODO(synk): if B*HW*C*4 ever exceeds the VMEM budget here, add HW tiling
    # (keeping inv_hw derived from the full HW).
    return B


def ft_net_dse_head(feat_nhwc, folded, *, tb=None):
    """feat_nhwc: (B, H, W, C) trunk output, channels-last f32.

    Returns (B, class_num) logits (class_num = folded["class_num"]).
    """
    B, H, W, C = feat_nhwc.shape
    HW = H * W
    NB = folded["w1f"].shape[1]
    Kp = folded["w2p"].shape[1]                             # padded class dim
    class_num = folded["class_num"]
    assert folded["w1f"].shape[0] == C, (folded["w1f"].shape, C)

    # Free reshape (contiguous); no dtype cast -> no extra HBM traffic.
    x = feat_nhwc.reshape(B, HW, C)

    if tb is None:
        tb = _choose_tb(B, HW, C)
    assert B % tb == 0, (B, tb)
    grid = (B // tb,)

    # Explicit VMEM budget (double-buffered blocks + headroom), sized to stay
    # under v7x's 64 MiB/TC while exceeding v5e/v6e default scoped limits.
    need = (2 * tb * HW * C * 4          # x tile (f32)
            + 2 * C * NB * 2             # w1 (bf16)
            + 2 * NB * Kp * 2            # w2 (bf16)
            + 2 * tb * Kp * 4            # out tile (f32)
            + 4 * (NB + Kp) * 4)         # biases
    vmem_limit = min(max(int(need * 1.25) + (2 << 20), 32 << 20), 56 << 20)

    kernel = functools.partial(_dse_head_kernel, inv_hw=1.0 / HW)

    out = pl.pallas_call(
        kernel,
        out_shape=jax.ShapeDtypeStruct((B, Kp), jnp.float32),
        grid=grid,
        in_specs=[
            pl.BlockSpec((tb, HW, C), lambda b: (b, 0, 0)),     # x tile (f32, contiguous DMA)
            pl.BlockSpec((C, NB), lambda b: (0, 0)),            # w1 resident
            pl.BlockSpec((1, NB), lambda b: (0, 0)),            # b1
            pl.BlockSpec((NB, Kp), lambda b: (0, 0)),           # w2 resident
            pl.BlockSpec((1, Kp), lambda b: (0, 0)),            # b2
        ],
        out_specs=pl.BlockSpec((tb, Kp), lambda b: (b, 0)),
        compiler_params=pltpu.CompilerParams(
            dimension_semantics=("parallel",),
            vmem_limit_bytes=vmem_limit),
    )(x, folded["w1f"], folded["b1f"], folded["w2p"], folded["b2p"])

    return out[:, :class_num]


def init_params(key, input_dim=2048, num_bottleneck=512, class_num=751):
    """Deterministic init matching the PyTorch module's init scheme."""
    k1, k2, k3 = jax.random.split(key, 3)

    # add_block Linear: kaiming_normal_(a=0, mode='fan_out') -> std = sqrt(2/out)
    std1 = math.sqrt(2.0 / num_bottleneck)
    w1 = jax.random.normal(k1, (input_dim, num_bottleneck), jnp.float32) * std1
    b1 = jnp.zeros((num_bottleneck,), jnp.float32)

    # BatchNorm1d: weight ~ N(1.0, 0.02), bias = 0, fresh running stats.
    gamma = 1.0 + 0.02 * jax.random.normal(k2, (num_bottleneck,), jnp.float32)
    beta = jnp.zeros((num_bottleneck,), jnp.float32)
    running_mean = jnp.zeros((num_bottleneck,), jnp.float32)
    running_var = jnp.ones((num_bottleneck,), jnp.float32)

    # classifier Linear: weight ~ N(0, 0.001), bias = 0.
    w2 = 0.001 * jax.random.normal(k3, (num_bottleneck, class_num), jnp.float32)
    b2 = jnp.zeros((class_num,), jnp.float32)

    return {"w1": w1, "b1": b1, "gamma": gamma, "beta": beta,
            "running_mean": running_mean, "running_var": running_var,
            "w2": w2, "b2": b2}


def fold_bn_into_linear(p):
    """One-time parameter prep:
       * fold eval-mode BatchNorm1d into the bottleneck Linear,
       * cast weights to bf16 (f32 accumulation stays in-kernel),
       * pad class_num up to a multiple of 128 (lane-dense classifier/output).
    """
    scale = p["gamma"] * jax.lax.rsqrt(p["running_var"] + BN_EPS)        # (NB,)
    w1f = (p["w1"] * scale[None, :]).astype(jnp.bfloat16)                # (C, NB)
    b1f = ((p["b1"] - p["running_mean"]) * scale + p["beta"])[None, :]   # (1, NB)

    class_num = p["w2"].shape[1]
    Kp = ((class_num + 127) // 128) * 128
    pad = Kp - class_num
    w2p = jnp.pad(p["w2"], ((0, 0), (0, pad))).astype(jnp.bfloat16)      # (NB, Kp)
    b2p = jnp.pad(p["b2"], ((0, pad),))[None, :]                         # (1, Kp)

    return {"w1f": w1f, "b1f": b1f, "w2p": w2p, "b2p": b2p,
            "class_num": class_num}


def reference(feat_nhwc, folded):
    """Pure-JAX reference mirroring the kernel's dtype path (bf16 weights, f32 acc)."""
    B, H, W, C = feat_nhwc.shape
    pooled = jnp.mean(feat_nhwc.reshape(B, H * W, C).astype(jnp.float32), axis=1)
    h = jnp.dot(pooled.astype(jnp.bfloat16), folded["w1f"],
                preferred_element_type=jnp.float32) + folded["b1f"]
    out = jnp.dot(h.astype(jnp.bfloat16), folded["w2p"],
                  preferred_element_type=jnp.float32) + folded["b2p"]
    return out[:, :folded["class_num"]]


if __name__ == "__main__":
    key = jax.random.PRNGKey(0)
    k_feat, k_params = jax.random.split(key)

    # Small trunk feature map (channels-last): batch=2, spatial 4x4,
    # 2048 channels (fixed by ClassBlock(2048, ...)); class_num=751
    # (Market-1501) to exercise the 128-multiple padding path.
    B, H, W, C = 2, 4, 4, 2048
    class_num = 751
    feat = jax.random.normal(k_feat, (B, H, W, C), jnp.float32)

    raw_params = init_params(k_params, input_dim=C, num_bottleneck=512,
                             class_num=class_num)
    folded = fold_bn_into_linear(raw_params)

    out = jax.block_until_ready(ft_net_dse_head(feat, folded))
    ref = reference(feat, folded)

    assert out.shape == (B, class_num), out.shape
    max_err = float(jnp.max(jnp.abs(out - ref)))
    assert jnp.allclose(out, ref, atol=2e-3, rtol=1e-2), max_err
    print("KERNEL_OK")
</pallas_src>

<mosaic_0001>
module attributes {stable_mosaic.version = 11 : i64} {
  func.func @_dse_head_kernel(%arg0: i32, %arg1: memref<2x16x2048xf32, #tpu.memory_space<vmem>>, %arg2: memref<2048x512xbf16, #tpu.memory_space<vmem>>, %arg3: memref<1x512xf32, #tpu.memory_space<vmem>>, %arg4: memref<512x768xbf16, #tpu.memory_space<vmem>>, %arg5: memref<1x768xf32, #tpu.memory_space<vmem>>, %arg6: memref<2x768xf32, #tpu.memory_space<vmem>>) attributes {dimension_semantics = [#tpu.dimension_semantics<parallel>], iteration_bounds = array<i64: 1>, scalar_prefetch = 0 : i64, scratch_operands = 0 : i64, tpu.core_type = #tpu.core_type<tc>, window_params = [{transform_indices = @transform_0, window_bounds = array<i64: 2, 16, 2048>}, {pipeline_mode = #tpu.pipeline_mode<synchronous>, transform_indices = @transform_1, window_bounds = array<i64: 2048, 512>}, {pipeline_mode = #tpu.pipeline_mode<synchronous>, transform_indices = @transform_2, window_bounds = array<i64: 1, 512>}, {pipeline_mode = #tpu.pipeline_mode<synchronous>, transform_indices = @transform_3, window_bounds = array<i64: 512, 768>}, {pipeline_mode = #tpu.pipeline_mode<synchronous>, transform_indices = @transform_4, window_bounds = array<i64: 1, 768>}, {transform_indices = @transform_5, window_bounds = array<i64: 2, 768>}]} {
    %c0 = arith.constant 0 : index
    %c0_0 = arith.constant 0 : index
    %c0_1 = arith.constant 0 : index
    %0 = vector.load %arg1[%c0, %c0_0, %c0_1] : memref<2x16x2048xf32, #tpu.memory_space<vmem>>, vector<2x16x2048xf32>
    %cst = arith.constant dense<0.000000e+00> : vector<2x2048xf32>
    %1 = vector.multi_reduction <add>, %0, %cst [1] : vector<2x16x2048xf32> to vector<2x2048xf32>
    %cst_2 = arith.constant 6.250000e-02 : f32
    %2 = vector.broadcast %cst_2 : f32 to vector<2x2048xf32>
    %3 = arith.mulf %1, %2 : vector<2x2048xf32>
    %4 = arith.truncf %3 : vector<2x2048xf32> to vector<2x2048xbf16>
    %c0_3 = arith.constant 0 : index
    %c0_4 = arith.constant 0 : index
    %5 = vector.load %arg2[%c0_3, %c0_4] : memref<2048x512xbf16, #tpu.memory_space<vmem>>, vector<2048x512xbf16>
    %cst_5 = arith.constant dense<0.000000e+00> : vector<2x512xf32>
    %6 = tpu.matmul %4, %5, %cst_5 {dimension_numbers = #tpu.dot_dimension_numbers<[1], [0], [0], [1], [0, 0, 1, 1], [], []>} : vector<2x2048xbf16>, vector<2048x512xbf16>, vector<2x512xf32> -> vector<2x512xf32>
    %c0_6 = arith.constant 0 : index
    %c0_7 = arith.constant 0 : index
    %7 = vector.load %arg3[%c0_6, %c0_7] : memref<1x512xf32, #tpu.memory_space<vmem>>, vector<1x512xf32>
    %8 = vector.broadcast %7 : vector<1x512xf32> to vector<2x512xf32>
    %9 = arith.addf %6, %8 : vector<2x512xf32>
    %10 = arith.truncf %9 : vector<2x512xf32> to vector<2x512xbf16>
    %c0_8 = arith.constant 0 : index
    %c0_9 = arith.constant 0 : index
    %11 = vector.load %arg4[%c0_8, %c0_9] : memref<512x768xbf16, #tpu.memory_space<vmem>>, vector<512x768xbf16>
    %cst_10 = arith.constant dense<0.000000e+00> : vector<2x768xf32>
    %12 = tpu.matmul %10, %11, %cst_10 {dimension_numbers = #tpu.dot_dimension_numbers<[1], [0], [0], [1], [0, 0, 1, 1], [], []>} : vector<2x512xbf16>, vector<512x768xbf16>, vector<2x768xf32> -> vector<2x768xf32>
    %c0_11 = arith.constant 0 : index
    %c0_12 = arith.constant 0 : index
    %13 = vector.load %arg5[%c0_11, %c0_12] : memref<1x768xf32, #tpu.memory_space<vmem>>, vector<1x768xf32>
    %14 = vector.broadcast %13 : vector<1x768xf32> to vector<2x768xf32>
    %15 = arith.addf %12, %14 : vector<2x768xf32>
    %c0_13 = arith.constant 0 : index
    %c0_14 = arith.constant 0 : index
    %16 = vector.load %arg6[%c0_13, %c0_14] : memref<2x768xf32, #tpu.memory_space<vmem>>, vector<2x768xf32>
    tpu.vector_store %arg6[%c0_13, %c0_14], %15 {strides = array<i32>} : memref<2x768xf32, #tpu.memory_space<vmem>>, vector<2x768xf32>,
    return
  }
  func.func @transform_0(%arg0: i32) -> (i32, i32, i32) {
    %c0_i32 = arith.constant 0 : i32
    %c0_i32_0 = arith.constant 0 : i32
    %c0_i32_1 = arith.constant 0 : i32
    return %arg0, %c0_i32, %c0_i32_0 : i32, i32, i32
  }
  func.func @transform_1(%arg0: i32) -> (i32, i32) {
    %c0_i32 = arith.constant 0 : i32
    %c0_i32_0 = arith.constant 0 : i32
    %c0_i32_1 = arith.constant 0 : i32
    return %c0_i32, %c0_i32_0 : i32, i32
  }
  func.func @transform_2(%arg0: i32) -> (i32, i32) {
    %c0_i32 = arith.constant 0 : i32
    %c0_i32_0 = arith.constant 0 : i32
    %c0_i32_1 = arith.constant 0 : i32
    return %c0_i32, %c0_i32_0 : i32, i32
  }
  func.func @transform_3(%arg0: i32) -> (i32, i32) {
    %c0_i32 = arith.constant 0 : i32
    %c0_i32_0 = arith.constant 0 : i32
    %c0_i32_1 = arith.constant 0 : i32
    return %c0_i32, %c0_i32_0 : i32, i32
  }
  func.func @transform_4(%arg0: i32) -> (i32, i32) {
    %c0_i32 = arith.constant 0 : i32
    %c0_i32_0 = arith.constant 0 : i32
    %c0_i32_1 = arith.constant 0 : i32
    return %c0_i32, %c0_i32_0 : i32, i32
  }
  func.func @transform_5(%arg0: i32) -> (i32, i32) {
    %c0_i32 = arith.constant 0 : i32
    %c0_i32_0 = arith.constant 0 : i32
    return %arg0, %c0_i32 : i32, i32
  }
}

</mosaic_0001>

<bundles_post_ra>
// kernel: tpu_custom_call.1
= control target key start
LH: loop header
LB: loop body
LE: loop exit
PB: predicated region body
PF: predicated region fallthrough
CT: control target
= control target key end

     0   :  { %10 = vsyncpa [#allocation3], 0  ;;  %s7933_s0 = inlined_call_operand.hbm [shape: f32[2,16,2048], index: 0, kind: input, shape index: {}]   ;;  %s7934_s1 = inlined_call_operand.hbm [shape: bf16[2048,512], index: 1, kind: input, shape index: {}]   ;;  %s7935_s2 = inlined_call_operand.hbm [shape: f32[1,512], index: 2, kind: input, shape index: {}]   ;;  %s7936_s3 = inlined_call_operand.hbm [shape: bf16[512,768], index: 3, kind: input, shape index: {}]   ;;  %s7937_s4 = inlined_call_operand.hbm [shape: f32[1,768], index: 4, kind: input, shape index: {}]   ;;  %s7938_s5 = inlined_call_operand.hbm [shape: f32[2,768], index: 5, kind: output, shape index: {}]  }
   0x1   :  { %11 = vsyncpa [#allocation6], 0 }
   0x2   :  { %12 = vsyncpa [#allocation9], 0 }
   0x3   :  { %13 = vsyncpa [#allocation4], 0  ;;  %s7689_s18 = smov [#allocation5]  }
   0x4   :  { %s31_s19 = sshll.u32 %s7689_s18, 4  ;;  %s32_s19 = int_to_ptr.vmem [resolvable:$true] %s31_s19 }
   0x5   :  { %s7569_s20 = scalar_lea.vmem %s32_s19, 65536  ;;  %p7574_p1 = scmp.lt.s32.totalorder %s32_s19, %s32_s19 }
   0x6   :  { %p7570_p0 = scmp.ne.s32.totalorder %s32_s19, %s7569_s20  ;;  %p7575_p2 = scmp.lt.s32.totalorder %s7569_s20, %s7569_s20 }
   0x8   :  { %p7576_p3 = por %p7575_p2, %p7574_p1 }
   0xa   :  { %p7577_p4 = pnand %p7576_p3, %p7570_p0 }
   0xc   :  { %7580 = shalt.err (!%p7577_p4)
}
   0xd   :  { %s7690_s21 = smov 256   ;;  %s7691_s22 = smov 16  }
   0xe   :  { %37 = dma.hbm_to_vmem [thread:$0]  %s7934_s1, 65536, %s32_s19, [#allocation6], %s7690_s21, %s7690_s21, %s7691_s22  }
   0xf   :  { %s7692_s25 = smov [#allocation8]  }
  0x10   :  { %s53_s26 = sshll.u32 %s7692_s25, 4  ;;  %s54_s26 = int_to_ptr.vmem [resolvable:$true] %s53_s26 }
  0x11   :  { %s7589_s27 = scalar_lea.vmem %s54_s26, 24576  ;;  %p7594_p6 = scmp.lt.s32.totalorder %s54_s26, %s54_s26 }
  0x12   :  { %p7590_p5 = scmp.ne.s32.totalorder %s54_s26, %s7589_s27  ;;  %p7595_p7 = scmp.lt.s32.totalorder %s7589_s27, %s7589_s27 }
  0x14   :  { %p7596_p8 = por %p7595_p7, %p7594_p6 }
  0x16   :  { %p7597_p9 = pnand %p7596_p8, %p7590_p5 }
  0x18   :  { %7600 = shalt.err (!%p7597_p9)
}
  0x19   :  { %s7693_s28 = smov 384   ;;  %s7694_s29 = smov 24  }
  0x1a   :  { %59 = dma.hbm_to_vmem [thread:$0]  %s7936_s3, 24576, %s54_s26, [#allocation9], %s7693_s28, %s7693_s28, %s7694_s29  }
  0x1b   :  { %s7695_s7 = smov [#allocation2]  }
  0x1c   :  { %s19_s8 = sshll.u32 %s7695_s7, 4  ;;  %s20_s8 = int_to_ptr.vmem [resolvable:$true] %s19_s8 }
  0x1d   :  { %s7609_s1 = scalar_lea.vmem %s20_s8, 8192  ;;  %p7614_p11 = scmp.lt.s32.totalorder %s20_s8, %s20_s8 }
  0x1e   :  { %p7610_p10 = scmp.ne.s32.totalorder %s20_s8, %s7609_s1  ;;  %p7615_p12 = scmp.lt.s32.totalorder %s7609_s1, %s7609_s1 }
  0x20   :  { %p7616_p13 = por %p7615_p12, %p7614_p11 }
  0x22   :  { %p7617_p0 = pnand %p7616_p13, %p7610_p10 }
  0x24   :  { %7620 = shalt.err (!%p7617_p0)
}
  0x25   :  { %s7696_s9 = smov 2048   ;;  %s7697_s10 = smov 128  }
  0x26   :  { %25 = dma.hbm_to_vmem [thread:$0]  %s7933_s0, 8192, %s20_s8, [#allocation3], %s7696_s9, %s7696_s9, %s7697_s10  }
  0x27   :  { %s7698_s13 = smov [#allocation7]   ;;  %s7699_s3 = smov [#allocation10]  }
  0x28   :  { %s44_s14 = sshll.u32 %s7698_s13, 4  ;;  %s66_s15 = sshll.u32 %s7699_s3, 4  ;;  %s45_s14 = int_to_ptr.vmem [resolvable:$true] %s44_s14  ;;  %s67_s15 = int_to_ptr.vmem [resolvable:$true] %s66_s15 }
  0x29   :  { %s7629_s16 = scalar_lea.vmem %s45_s14, 64  ;;  %p7634_p2 = scmp.lt.s32.totalorder %s45_s14, %s45_s14 }
  0x2a   :  { %p7630_p1 = scmp.ne.s32.totalorder %s45_s14, %s7629_s16  ;;  %p7635_p3 = scmp.lt.s32.totalorder %s7629_s16, %s7629_s16 }
  0x2c   :  { %p7636_p4 = por %p7635_p3, %p7634_p2 }
  0x2e   :  { %p7637_p5 = pnand %p7636_p4, %p7630_p1 }
  0x30   :  { %7640 = shalt.err (!%p7637_p5)
}
  0x31   :  { %47 = dma.hbm_to_vmem [thread:$0]  %s7935_s2, 64, %s45_s14, [#allocation6]  }
  0x32   :  { %s7649_s19 = scalar_lea.vmem %s67_s15, 96  ;;  %p7654_p7 = scmp.lt.s32.totalorder %s67_s15, %s67_s15 }
  0x33   :  { %p7650_p6 = scmp.ne.s32.totalorder %s67_s15, %s7649_s19  ;;  %p7655_p8 = scmp.lt.s32.totalorder %s7649_s19, %s7649_s19 }
  0x35   :  { %p7656_p9 = por %p7655_p8, %p7654_p7 }
  0x37   :  { %p7657_p10 = pnand %p7656_p9, %p7650_p6 }
  0x39   :  { %7660 = shalt.err (!%p7657_p10)
}
  0x3a   :  { %69 = dma.hbm_to_vmem [thread:$0]  %s7937_s4, 96, %s67_s15, [#allocation9]  }
  0x3b   :  { %7681 = dma.done.wait [#allocation3], 8192  }
  0x3c   :  { %7682 = vsyncadd [#allocation3], 4294959104 }
  0x3d   :  { %7683 = dma.done.wait [#allocation6], 65600  }
  0x3e   :  { %7684 = vsyncadd [#allocation6], 4294901696 }
  0x3f   :  { %7685 = dma.done.wait [#allocation9], 24672  }
  0x40   :  { %7686 = vsyncadd [#allocation9], 4294942624  ;;  %v6504_v0 = vld [vmem:[#allocation5 + $0xe4] ss:$16 sps:$4 sm:$0xff]   ;;  %v6508_v2 = vld [vmem:[#allocation5 + $0xe0] ss:$16 sps:$4 sm:$0xff]  }
  0x41   :  { %v6506_v1 = vld [vmem:[#allocation5 + $0x2e4] ss:$16 sps:$4 sm:$0xff]   ;;  %3644 = vmatprep.subr.bf16.mxu0 %v6504_v0  ;;  %v6509_v3 = vld [vmem:[#allocation5 + $0x2e0] ss:$16 sps:$4 sm:$0xff]   ;;  %v86_v48 = vld [vmem:[#allocation2 + $0x8] sm:$0xff]  ;;  %vm1035_vm0 = vcmask 1041409  }
  0x42   :  { %3685 = vmatprep.subr.bf16.mxu1 %v6506_v1  ;;  %v6510_v4 = vld [vmem:[#allocation5 + $0xc4] ss:$16 sps:$4 sm:$0xff]   ;;  %3645 = vmatpush1.bf16.msra.mxu0 %v6508_v2  ;;  %v6514_v6 = vld [vmem:[#allocation5 + $0xc0] ss:$16 sps:$4 sm:$0xff]   ;;  %v102_v51 = vld [vmem:[#allocation2 + $0x88] sm:$0xff]  ;;  %s7701_s2 = smov [#allocation11]  }
  0x43   :  { %3686 = vmatpush1.bf16.msra.mxu1 %v6509_v3  ;;  %v6512_v5 = vld [vmem:[#allocation5 + $0x2c4] ss:$16 sps:$4 sm:$0xff]   ;;  %3646 = vmatprep.subr.bf16.mxu0 %v6510_v4  ;;  %v6515_v7 = vld [vmem:[#allocation5 + $0x2c0] ss:$16 sps:$4 sm:$0xff]   ;;  %v118_v52 = vld [vmem:[#allocation2 + $0x108] sm:$0xff]  ;;  %v156_v54 = vadd.f32 %v102_v51, %v86_v48  ;;  %s5775_s4 = sshll.u32 %s7701_s2, 4  ;;  %s5776_s4 = int_to_ptr.vmem [resolvable:$true] %s5775_s4 }
  0x44   :  { %3687 = vmatprep.subr.bf16.mxu1 %v6512_v5  ;;  %v6516_v8 = vld [vmem:[#allocation5 + $0xa4] ss:$16 sps:$4 sm:$0xff]   ;;  %v6520_v10 = vld [vmem:[#allocation5 + $0xa0] ss:$16 sps:$4 sm:$0xff]   ;;  %v134_v53 = vld [vmem:[#allocation2 + $0x188] sm:$0xff]  ;;  %s7661_s21 = scalar_lea.vmem %s5776_s4, 192  ;;  %p7666_p12 = scmp.lt.s32.totalorder %s5776_s4, %s5776_s4 }
  0x45   :  { %v6518_v9 = vld [vmem:[#allocation5 + $0x2a4] ss:$16 sps:$4 sm:$0xff]   ;;  %v6521_v11 = vld [vmem:[#allocation5 + $0x2a0] ss:$16 sps:$4 sm:$0xff]   ;;  %v268_v55 = vadd.f32 %v134_v53, %v118_v52  ;;  %v88_v56 = vld [vmem:[#allocation2 + $0x18] sm:$0xff]  ;;  %v157_v1 = vrot.slane %v156_v54, 4  ;;  %p7662_p11 = scmp.ne.s32.totalorder %s5776_s4, %s7661_s21  ;;  %p7667_p13 = scmp.lt.s32.totalorder %s7661_s21, %s7661_s21 }
  0x46   :  { %3647 = vmatpush1.bf16.msra.mxu0 %v6514_v6  ;;  %v6522_v12 = vld [vmem:[#allocation5 + $0x84] ss:$16 sps:$4 sm:$0xff]   ;;  %v6526_v14 = vld [vmem:[#allocation5 + $0x80] ss:$16 sps:$4 sm:$0xff]   ;;  %v104_v57 = vld [vmem:[#allocation2 + $0x98] sm:$0xff] }
  0x47   :  { %3688 = vmatpush1.bf16.msra.mxu1 %v6515_v7  ;;  %3648 = vmatprep.subr.bf16.mxu0 %v6516_v8  ;;  %v6524_v13 = vld [vmem:[#allocation5 + $0x284] ss:$16 sps:$4 sm:$0xff]   ;;  %v6527_v15 = vld [vmem:[#allocation5 + $0x280] ss:$16 sps:$4 sm:$0xff]   ;;  %v120_v58 = vld [vmem:[#allocation2 + $0x118] sm:$0xff]  ;;  %v170_v60 = vadd.f32 %v104_v57, %v88_v56  ;;  %v269_v2 = vrot.slane %v268_v55, 4  ;;  %p7668_p0 = por %p7667_p13, %p7666_p12 }
  0x48   :  { %3689 = vmatprep.subr.bf16.mxu1 %v6518_v9  ;;  %v6528_v16 = vld [vmem:[#allocation5 + $0x64] ss:$16 sps:$4 sm:$0xff]   ;;  %v6532_v18 = vld [vmem:[#allocation5 + $0x60] ss:$16 sps:$4 sm:$0xff]   ;;  %v136_v59 = vld [vmem:[#allocation2 + $0x198] sm:$0xff] }
  0x49   :  { %v6530_v17 = vld [vmem:[#allocation5 + $0x264] ss:$16 sps:$4 sm:$0xff]   ;;  %v6533_v19 = vld [vmem:[#allocation5 + $0x260] ss:$16 sps:$4 sm:$0xff]   ;;  %v282_v3 = vadd.f32 %v136_v59, %v120_v58  ;;  %v171_v8 = vrot.slane %v170_v60, 4  ;;  %p7669_p1 = pnand %p7668_p0, %p7662_p11 }
  0x4a   :  { %3649 = vmatpush1.bf16.msra.mxu0 %v6520_v10  ;;  %v6534_v20 = vld [vmem:[#allocation5 + $0x44] ss:$16 sps:$4 sm:$0xff]   ;;  %v6538_v22 = vld [vmem:[#allocation5 + $0x40] ss:$16 sps:$4 sm:$0xff]  }
  0x4b   :  { %3690 = vmatpush1.bf16.msra.mxu1 %v6521_v11  ;;  %3650 = vmatprep.subr.bf16.mxu0 %v6522_v12  ;;  %v6536_v21 = vld [vmem:[#allocation5 + $0x244] ss:$16 sps:$4 sm:$0xff]   ;;  %v6539_v23 = vld [vmem:[#allocation5 + $0x240] ss:$16 sps:$4 sm:$0xff]  }
  0x4c   :  { %3691 = vmatprep.subr.bf16.mxu1 %v6524_v13  ;;  %v6540_v24 = vld [vmem:[#allocation5 + $0x24] ss:$16 sps:$4 sm:$0xff]   ;;  %v6544_v26 = vld [vmem:[#allocation5 + $0x20] ss:$16 sps:$4 sm:$0xff]  }
  0x4d   :  { %v6542_v25 = vld [vmem:[#allocation5 + $0x224] ss:$16 sps:$4 sm:$0xff]   ;;  %v6545_v27 = vld [vmem:[#allocation5 + $0x220] ss:$16 sps:$4 sm:$0xff]  }
  0x4e   :  { %3651 = vmatpush1.bf16.msra.mxu0 %v6526_v14  ;;  %v6546_v28 = vld [vmem:[#allocation5 + $0x4] ss:$16 sps:$4 sm:$0xff]   ;;  %v6550_v30 = vld [vmem:[#allocation5] ss:$16 sps:$4 sm:$0xff]   ;;  %v158_v14 = vadd.f32 %v157_v1, %v156_v54 }
  0x4f   :  { %3692 = vmatpush1.bf16.msra.mxu1 %v6527_v15  ;;  %3652 = vmatprep.subr.bf16.mxu0 %v6528_v16  ;;  %v6548_v29 = vld [vmem:[#allocation5 + $0x204] ss:$16 sps:$4 sm:$0xff]   ;;  %v6551_v31 = vld [vmem:[#allocation5 + $0x200] ss:$16 sps:$4 sm:$0xff]   ;;  %v270_v15 = vadd.f32 %v269_v2, %v268_v55  ;;  %v283_v16 = vrot.slane %v282_v3, 4 }
  0x50   :  { %3693 = vmatprep.subr.bf16.mxu1 %v6530_v17  ;;  %v6552_v32 = vld [vmem:[#allocation5 + $0x1e4] ss:$16 sps:$4 sm:$0xff]   ;;  %v6556_v34 = vld [vmem:[#allocation5 + $0x1e0] ss:$16 sps:$4 sm:$0xff]  }
  0x51   :  { %v6554_v33 = vld [vmem:[#allocation5 + $0x3e4] ss:$16 sps:$4 sm:$0xff]   ;;  %v6557_v35 = vld [vmem:[#allocation5 + $0x3e0] ss:$16 sps:$4 sm:$0xff]  }
  0x52   :  { %3653 = vmatpush1.bf16.msra.mxu0 %v6532_v18  ;;  %v6558_v36 = vld [vmem:[#allocation5 + $0x1c4] ss:$16 sps:$4 sm:$0xff]   ;;  %v6562_v38 = vld [vmem:[#allocation5 + $0x1c0] ss:$16 sps:$4 sm:$0xff]  }
  0x53   :  { %3694 = vmatpush1.bf16.msra.mxu1 %v6533_v19  ;;  %3654 = vmatprep.subr.bf16.mxu0 %v6534_v20  ;;  %v6560_v37 = vld [vmem:[#allocation5 + $0x3c4] ss:$16 sps:$4 sm:$0xff]   ;;  %v6563_v39 = vld [vmem:[#allocation5 + $0x3c0] ss:$16 sps:$4 sm:$0xff]   ;;  %v172_v19 = vadd.f32 %v171_v8, %v170_v60 }
  0x54   :  { %3695 = vmatprep.subr.bf16.mxu1 %v6536_v21  ;;  %v6564_v40 = vld [vmem:[#allocation5 + $0x1a4] ss:$16 sps:$4 sm:$0xff]   ;;  %v6568_v42 = vld [vmem:[#allocation5 + $0x1a0] ss:$16 sps:$4 sm:$0xff]  }
  0x55   :  { %v6566_v41 = vld [vmem:[#allocation5 + $0x3a4] ss:$16 sps:$4 sm:$0xff]   ;;  %v6569_v43 = vld [vmem:[#allocation5 + $0x3a0] ss:$16 sps:$4 sm:$0xff]  }
  0x56   :  { %3655 = vmatpush1.bf16.msra.mxu0 %v6538_v22  ;;  %v6570_v44 = vld [vmem:[#allocation5 + $0x184] ss:$16 sps:$4 sm:$0xff]   ;;  %v6574_v46 = vld [vmem:[#allocation5 + $0x180] ss:$16 sps:$4 sm:$0xff]  }
  0x57   :  { %3696 = vmatpush1.bf16.msra.mxu1 %v6539_v23  ;;  %3656 = vmatprep.subr.bf16.mxu0 %v6540_v24  ;;  %v6572_v45 = vld [vmem:[#allocation5 + $0x384] ss:$16 sps:$4 sm:$0xff]   ;;  %v6575_v47 = vld [vmem:[#allocation5 + $0x380] ss:$16 sps:$4 sm:$0xff]   ;;  %v159_v23 = vrot.slane %v158_v14, 2  ;;  %v271_v24 = vrot.slane %v270_v15, 2 }
  0x58   :  { %3697 = vmatprep.subr.bf16.mxu1 %v6542_v25  ;;  %v6576_v49 = vld [vmem:[#allocation5 + $0x164] ss:$16 sps:$4 sm:$0xff]   ;;  %v6580_v63 = vld [vmem:[#allocation5 + $0x160] ss:$16 sps:$4 sm:$0xff]   ;;  %v284_v25 = vadd.f32 %v283_v16, %v282_v3 }
  0x59   :  { %v6578_v50 = vld [vmem:[#allocation5 + $0x364] ss:$16 sps:$4 sm:$0xff]   ;;  %v6581_v0 = vld [vmem:[#allocation5 + $0x360] ss:$16 sps:$4 sm:$0xff]  }
  0x5a   :  { %3657 = vmatpush1.bf16.msra.mxu0 %v6544_v26  ;;  %v85_v61 = vld [vmem:[#allocation2] sm:$0xff]  ;;  %v87_v7 = vld [vmem:[#allocation2 + $0x10] sm:$0xff] }
  0x5b   :  { %3698 = vmatpush1.bf16.msra.mxu1 %v6545_v27  ;;  %3658 = vmatprep.subr.bf16.mxu0 %v6546_v28  ;;  %v101_v62 = vld [vmem:[#allocation2 + $0x80] sm:$0xff]  ;;  %v103_v10 = vld [vmem:[#allocation2 + $0x90] sm:$0xff]  ;;  %v173_v27 = vrot.slane %v172_v19, 2 }
  0x5c   :  { %3699 = vmatprep.subr.bf16.mxu1 %v6548_v29  ;;  %v117_v4 = vld [vmem:[#allocation2 + $0x100] sm:$0xff]  ;;  %v149_v6 = vadd.f32 %v101_v62, %v85_v61  ;;  %v119_v11 = vld [vmem:[#allocation2 + $0x110] sm:$0xff]  ;;  %v163_v21 = vadd.f32 %v103_v10, %v87_v7 }
  0x5d   :  { %v133_v5 = vld [vmem:[#allocation2 + $0x180] sm:$0xff]  ;;  %v135_v12 = vld [vmem:[#allocation2 + $0x190] sm:$0xff] }
  0x5e   :  { %3659 = vmatpush1.bf16.msra.mxu0 %v6550_v30  ;;  %v261_v9 = vadd.f32 %v133_v5, %v117_v4  ;;  %v6582_v13 = vld [vmem:[#allocation5 + $0x144] ss:$16 sps:$4 sm:$0xff]   ;;  %v150_v17 = vrot.slane %v149_v6, 4  ;;  %v275_v22 = vadd.f32 %v135_v12, %v119_v11  ;;  %v164_v29 = vrot.slane %v163_v21, 4  ;;  %v6593_v52 = vld [vmem:[#allocation5 + $0x320] ss:$16 sps:$4 sm:$0xff]  }
  0x5f   :  { %3700 = vmatpush1.bf16.msra.mxu1 %v6551_v31  ;;  %3660 = vmatprep.subr.bf16.mxu0 %v6552_v32  ;;  %v6584_v18 = vld [vmem:[#allocation5 + $0x344] ss:$16 sps:$4 sm:$0xff]   ;;  %v6586_v31 = vld [vmem:[#allocation5 + $0x140] ss:$16 sps:$4 sm:$0xff]  }
  0x60   :  { %3701 = vmatprep.subr.bf16.mxu1 %v6554_v33  ;;  %v262_v20 = vrot.slane %v261_v9, 4  ;;  %v151_v26 = vadd.f32 %v150_v17, %v149_v6  ;;  %v276_v30 = vrot.slane %v275_v22, 4  ;;  %v6587_v32 = vld [vmem:[#allocation5 + $0x340] ss:$16 sps:$4 sm:$0xff]   ;;  %v160_v33 = vadd.f32 %v159_v23, %v158_v14  ;;  %v6594_v57 = vld [vmem:[#allocation5 + $0x104] ss:$16 sps:$4 sm:$0xff]  }
  0x61   :  { %v6596_v58 = vld [vmem:[#allocation5 + $0x304] ss:$16 sps:$4 sm:$0xff]   ;;  %v6598_v3 = vld [vmem:[#allocation5 + $0x100] ss:$16 sps:$4 sm:$0xff]  }
  0x62   :  { %3661 = vmatpush2.bf16.msra.mxu0 %v6556_v34  ;;  %v263_v28 = vadd.f32 %v262_v20, %v261_v9  ;;  %v272_v34 = vadd.f32 %v271_v24, %v270_v15  ;;  %v6599_v8 = vld [vmem:[#allocation5 + $0x300] ss:$16 sps:$4 sm:$0xff]   ;;  %v6602_v17 = vld [vmem:[#allocation5 + $0x4e4] ss:$16 sps:$4 sm:$0xff]  }
  0x63   :  { %3702 = vmatpush2.bf16.msra.mxu1 %v6557_v35  ;;  %3662 = vmatprep.subr.bf16.mxu0 %v6558_v36  ;;  %v285_v35 = vrot.slane %v284_v25, 2  ;;  %v152_v36 = vrot.slane %v151_v26, 2 }
  0x64   :  { %3703 = vmatprep.subr.bf16.mxu1 %v6560_v37  ;;  %v6588_v37 = vld [vmem:[#allocation5 + $0x124] ss:$16 sps:$4 sm:$0xff]  }
  0x66   :  { %3663 = vmatpush2.bf16.msra.mxu0 %v6562_v38  ;;  %v6590_v38 = vld [vmem:[#allocation5 + $0x324] ss:$16 sps:$4 sm:$0xff]  }
  0x67   :  { %3704 = vmatpush2.bf16.msra.mxu1 %v6563_v39  ;;  %3664 = vmatprep.subr.bf16.mxu0 %v6564_v40  ;;  %v174_v39 = vadd.f32 %v173_v27, %v172_v19  ;;  %v264_v40 = vrot.slane %v263_v28, 2 }
  0x68   :  { %3705 = vmatprep.subr.bf16.mxu1 %v6566_v41  ;;  %v165_v41 = vadd.f32 %v164_v29, %v163_v21 }
  0x69   :  { %v175_v48 = vrot.slane %v174_v39, 1 }
  0x6a   :  { %3665 = vmatpush2.bf16.msra.mxu0 %v6568_v42  ;;  %v277_v42 = vadd.f32 %v276_v30, %v275_v22 }
  0x6b   :  { %3706 = vmatpush2.bf16.msra.mxu1 %v6569_v43  ;;  %3666 = vmatprep.subr.bf16.mxu0 %v6570_v44  ;;  %v161_v43 = vrot.slane %v160_v33, 1  ;;  %v273_v44 = vrot.slane %v272_v34, 1  ;;  %v176_v59 = vadd.f32 %v175_v48, %v174_v39  ;;  %v6600_v39 = vld [vmem:[#allocation5 + $0x4e0] ss:$16 sps:$4 sm:$0xff]  }
  0x6c   :  { %3707 = vmatprep.subr.bf16.mxu1 %v6572_v45  ;;  %v286_v45 = vadd.f32 %v285_v35, %v284_v25  ;;  %v278_v51 = vrot.slane %v277_v42, 2  ;;  %v6609_v48 = vld [vmem:[#allocation5 + $0x6c0] ss:$16 sps:$4 sm:$0xff]  }
  0x6d   :  { %v162_v53 = vadd.f32 %v161_v43, %v160_v33  ;;  %v274_v54 = vadd.f32 %v273_v44, %v272_v34  ;;  %v376_v4 = vmul.f32 0.0625, %v176_v59  ;;  %v6603_v43 = vld [vmem:[#allocation5 + $0x6e0] ss:$16 sps:$4 sm:$0xff]   ;;  %v6632_v59 = vld [vmem:[#allocation5 + $0x444] ss:$16 sps:$4 sm:$0xff]  }
  0x6e   :  { %3667 = vmatpush2.bf16.msra.mxu0 %v6574_v46  ;;  %v153_v46 = vadd.f32 %v152_v36, %v151_v26  ;;  %v287_v55 = vrot.slane %v286_v45, 1  ;;  %v279_v62 = vadd.f32 %v278_v51, %v277_v42  ;;  %v6620_v51 = vld [vmem:[#allocation5 + $0x484] ss:$16 sps:$4 sm:$0xff]  }
  0x6f   :  { %3708 = vmatpush2.bf16.msra.mxu1 %v6575_v47  ;;  %3668 = vmatprep.subr.bf16.mxu0 %v6576_v49  ;;  %v6592_v47 = vld [vmem:[#allocation5 + $0x120] ss:$16 sps:$4 sm:$0xff]   ;;  %v265_v49 = vadd.f32 %v264_v40, %v263_v28 }
  0x70   :  { %3709 = vmatprep.subr.bf16.mxu1 %v6578_v50  ;;  %v166_v50 = vrot.slane %v165_v41, 2  ;;  %v154_v56 = vrot.slane %v153_v46, 1  ;;  %v288_v1 = vadd.f32 %v287_v55, %v286_v45  ;;  %v280_v7 = vrot.slane %v279_v62, 1  ;;  %v6611_v45 = vld [vmem:[#allocation5 + $0x6c4] ss:$16 sps:$4 sm:$0xff]  }
  0x71   :  { %v266_v60 = vrot.slane %v265_v49, 1  ;;  %v6626_v55 = vld [vmem:[#allocation5 + $0x464] ss:$16 sps:$4 sm:$0xff]  }
  0x72   :  { %3669 = vmatpush2.bf16.msra.mxu0 %v6580_v63  ;;  %v167_v61 = vadd.f32 %v166_v50, %v165_v41  ;;  %v374_v63 = vmul.f32 0.0625, %v162_v53  ;;  %v155_v2 = vadd.f32 %v154_v56, %v153_v46  ;;  %v392_v11 = vmul.f32 0.0625, %v288_v1  ;;  %v6608_v41 = vld [vmem:[#allocation5 + $0x4c4] ss:$16 sps:$4 sm:$0xff]   ;;  %v6606_v46 = vld [vmem:[#allocation5 + $0x4c0] ss:$16 sps:$4 sm:$0xff]  }
  0x73   :  { %3710 = vmatpush2.bf16.msra.mxu1 %v6581_v0  ;;  %3670 = vmatprep.subr.bf16.mxu0 %v6582_v13  ;;  %v390_v0 = vmul.f32 0.0625, %v274_v54  ;;  %v267_v5 = vadd.f32 %v266_v60, %v265_v49  ;;  %v408_v13 = vpack.c.bf16 %v376_v4, %v376_v4  ;;  %v281_v16 = vadd.f32 %v280_v7, %v279_v62  ;;  %v6617_v49 = vld [vmem:[#allocation5 + $0x6a4] ss:$16 sps:$4 sm:$0xff]   ;;  %v6612_v50 = vld [vmem:[#allocation5 + $0x4a0] ss:$16 sps:$4 sm:$0xff]   ;;  %v106_v7 = vld [vmem:[#allocation2 + $0xa8] sm:$0xff] }
  0x74   :  { %3711 = vmatprep.subr.bf16.mxu1 %v6584_v18  ;;  %v168_v6 = vrot.slane %v167_v61, 1  ;;  %v406_v9 = vpack.c.bf16 %v374_v63, %v374_v63  ;;  %v373_v12 = vmul.f32 0.0625, %v155_v2  ;;  %v6605_v18 = vld [vmem:[#allocation5 + $0x6e4] ss:$16 sps:$4 sm:$0xff]   ;;  %v424_v21 = vpack.c.bf16 %v392_v11, %v392_v11  ;;  %v6618_v54 = vld [vmem:[#allocation5 + $0x480] ss:$16 sps:$4 sm:$0xff]  }
  0x75   :  { %v422_v10 = vpack.c.bf16 %v390_v0, %v390_v0  ;;  %v389_v14 = vmul.f32 0.0625, %v267_v5  ;;  %v1006_v23 = vunpack.c.l.b16 %v408_v13  ;;  %v391_v26 = vmul.f32 0.0625, %v281_v16  ;;  %v6623_v53 = vld [vmem:[#allocation5 + $0x684] ss:$16 sps:$4 sm:$0xff]   ;;  %v6621_v56 = vld [vmem:[#allocation5 + $0x680] ss:$16 sps:$4 sm:$0xff]  }
  0x76   :  { %3671 = vmatpush2.bf16.msra.mxu0 %v6586_v31  ;;  %v169_v15 = vadd.f32 %v168_v6, %v167_v61  ;;  %v1004_v19 = vunpack.c.l.b16 %v406_v9  ;;  %v405_v22 = vpack.c.bf16 %v373_v12, %v373_v12  ;;  %v1022_v28 = vunpack.c.l.b16 %v424_v21  ;;  %v6627_v60 = vld [vmem:[#allocation5 + $0x660] ss:$16 sps:$4 sm:$0xff]   ;;  %v6635_v61 = vld [vmem:[#allocation5 + $0x644] ss:$16 sps:$4 sm:$0xff]   ;;  %v90_v6 = vld [vmem:[#allocation2 + $0x28] sm:$0xff] }
  0x77   :  { %3712 = vmatpush2.bf16.msra.mxu1 %v6587_v32  ;;  %3672 = vmatprep.subr.bf16.mxu0 %v6588_v37  ;;  %v1020_v20 = vunpack.c.l.b16 %v422_v10  ;;  %v421_v24 = vpack.c.bf16 %v389_v14, %v389_v14  ;;  %v423_v33 = vpack.c.bf16 %v391_v26, %v391_v26  ;;  %v6630_v62 = vld [vmem:[#allocation5 + $0x440] ss:$16 sps:$4 sm:$0xff]   ;;  %v6638_v63 = vld [vmem:[#allocation5 + $0x424] ss:$16 sps:$4 sm:$0xff]   ;;  %v138_v10 = vld [vmem:[#allocation2 + $0x1a8] sm:$0xff]  ;;  %v184_v11 = vadd.f32 %v106_v7, %v90_v6 }
  0x78   :  { %3713 = vmatprep.subr.bf16.mxu1 %v6590_v38  ;;  %v375_v25 = vmul.f32 0.0625, %v169_v15  ;;  %v1003_v29 = vunpack.c.l.b16 %v405_v22  ;;  %v1039_v34 = vsel %vm1035_vm0, %v1022_v28, %v1006_v23  ;;  %v6633_v0 = vld [vmem:[#allocation5 + $0x640] ss:$16 sps:$4 sm:$0xff]   ;;  %v6641_v2 = vld [vmem:[#allocation5 + $0x624] ss:$16 sps:$4 sm:$0xff]   ;;  %v92_v12 = vld [vmem:[#allocation2 + $0x38] sm:$0xff] }
  0x79   :  { %v1037_v27 = vsel %vm1035_vm0, %v1020_v20, %v1004_v19  ;;  %v1019_v31 = vunpack.c.l.b16 %v421_v24  ;;  %v7752_v35 = vpack.c.b16 %v1039_v34, %v1039_v34  ;;  %v1021_v38 = vunpack.c.l.b16 %v423_v33  ;;  %v6636_v1 = vld [vmem:[#allocation5 + $0x420] ss:$16 sps:$4 sm:$0xff]   ;;  %v6644_v4 = vld [vmem:[#allocation5 + $0x404] ss:$16 sps:$4 sm:$0xff]   ;;  %v108_v13 = vld [vmem:[#allocation2 + $0xb8] sm:$0xff] }
  0x7a   :  { %3673 = vmatpush2.bf16.msra.mxu0 %v6592_v47  ;;  %v7748_v30 = vpack.c.b16 %v1037_v27, %v1037_v27  ;;  %v407_v32 = vpack.c.bf16 %v375_v25, %v375_v25  ;;  %v6614_v47 = vld [vmem:[#allocation5 + $0x4a4] ss:$16 sps:$4 sm:$0xff]   ;;  %v6642_v9 = vld [vmem:[#allocation5 + $0x400] ss:$16 sps:$4 sm:$0xff]   ;;  %v124_v16 = vld [vmem:[#allocation2 + $0x138] sm:$0xff]  ;;  %v185_v21 = vrot.slane %v184_v11, 4 }
  0x7b   :  { %3714 = vmatpush2.bf16.msra.mxu1 %v6593_v52  ;;  %3674 = vmatprep.subr.bf16.mxu0 %v6594_v57  ;;  %v1036_v36 = vsel %vm1035_vm0, %v1019_v31, %v1003_v29  ;;  %v6615_v52 = vld [vmem:[#allocation5 + $0x6a0] ss:$16 sps:$4 sm:$0xff]   ;;  %v6629_v57 = vld [vmem:[#allocation5 + $0x664] ss:$16 sps:$4 sm:$0xff]  }
  0x7c   :  { %3715 = vmatprep.subr.bf16.mxu1 %v6596_v58  ;;  %3676 = vmatprep.mubr.bf16.mxu0 %v7748_v30  ;;  %v1005_v37 = vunpack.c.l.b16 %v407_v32  ;;  %v7755_v40 = vpack.c.b16 %v1036_v36, %v1036_v36  ;;  %v6624_v58 = vld [vmem:[#allocation5 + $0x460] ss:$16 sps:$4 sm:$0xff]   ;;  %v6647_v5 = vld [vmem:[#allocation5 + $0x604] ss:$16 sps:$4 sm:$0xff]   ;;  %v186_v34 = vadd.f32 %v185_v21, %v184_v11 }
  0x7d   :  { %3717 = vmatprep.mubr.bf16.mxu1 %v7752_v35  ;;  %v6650_v14 = vld [vmem:[#allocation5 + $0x5e4] ss:$16 sps:$4 sm:$0xff]   ;;  %v6645_v20 = vld [vmem:[#allocation5 + $0x600] ss:$16 sps:$4 sm:$0xff]  }
  0x7e   :  { %3675 = vmatpush2.bf16.msra.mxu0 %v6598_v3  ;;  %v1038_v42 = vsel %vm1035_vm0, %v1021_v38, %v1005_v37  ;;  %v6639_v3 = vld [vmem:[#allocation5 + $0x620] ss:$16 sps:$4 sm:$0xff]   ;;  %v6662_v7 = vld [vmem:[#allocation5 + $0x5a4] ss:$16 sps:$4 sm:$0xff]  }
  0x7f   :  { %3716 = vmatpush2.bf16.msra.mxu1 %v6599_v8  ;;  %3726 = vmatprep.subr.bf16.mxu0 %v6602_v17  ;;  %v7760_v44 = vpack.c.b16 %v1038_v42, %v1038_v42  ;;  %v122_v8 = vld [vmem:[#allocation2 + $0x128] sm:$0xff]  ;;  %v140_v17 = vld [vmem:[#allocation2 + $0x1b8] sm:$0xff]  ;;  %v89_v19 = vld [vmem:[#allocation2 + $0x20] sm:$0xff] }
  0x80   :  { %3767 = vmatprep.subr.bf16.mxu1 %v6605_v18  ;;  %v296_v15 = vadd.f32 %v138_v10, %v122_v8  ;;  %v198_v18 = vadd.f32 %v108_v13, %v92_v12  ;;  %v310_v22 = vadd.f32 %v140_v17, %v124_v16  ;;  %v105_v23 = vld [vmem:[#allocation2 + $0xa0] sm:$0xff]  ;;  %v91_v31 = vld [vmem:[#allocation2 + $0x30] sm:$0xff] }
  0x81   :  { %3677 = vmatmul.mubr.bf16.vlgmr.msra.gmra.mxu0 %v7755_v40  ;;  %v121_v24 = vld [vmem:[#allocation2 + $0x120] sm:$0xff]  ;;  %v177_v28 = vadd.f32 %v105_v23, %v89_v19  ;;  %v107_v32 = vld [vmem:[#allocation2 + $0xb0] sm:$0xff] }
  0x82   :  { %3727 = vmatpush1.bf16.msra.mxu0 %v6600_v39  ;;  %3718 = vmatmul.mubr.bf16.vlgmr.msra.gmra.mxu1 %v7760_v44  ;;  %v137_v25 = vld [vmem:[#allocation2 + $0x1a0] sm:$0xff]  ;;  %v297_v26 = vrot.slane %v296_v15, 4  ;;  %v199_v27 = vrot.slane %v198_v18, 4  ;;  %v123_v33 = vld [vmem:[#allocation2 + $0x130] sm:$0xff]  ;;  %v311_v36 = vrot.slane %v310_v22, 4  ;;  %v191_v38 = vadd.f32 %v107_v32, %v91_v31 }
  0x83   :  { %3728 = vmatprep.subr.bf16.mxu0 %v6608_v41  ;;  %3768 = vmatpush1.bf16.msra.mxu1 %v6603_v43  ;;  %v289_v29 = vadd.f32 %v137_v25, %v121_v24  ;;  %v139_v37 = vld [vmem:[#allocation2 + $0x1b0] sm:$0xff]  ;;  %v178_v43 = vrot.slane %v177_v28, 4 }
  0x84   :  { %3769 = vmatprep.subr.bf16.mxu1 %v6611_v45  ;;  %v6653_v39 = vld [vmem:[#allocation5 + $0x7e4] ss:$16 sps:$4 sm:$0xff]   ;;  %v298_v41 = vadd.f32 %v297_v26, %v296_v15  ;;  %v200_v42 = vadd.f32 %v199_v27, %v198_v18  ;;  %v6657_v12 = vld [vmem:[#allocation5 + $0x7c0] ss:$16 sps:$4 sm:$0xff]  }
  0x85   :  { %v290_v45 = vrot.slane %v289_v29, 4  ;;  %v6665_v17 = vld [vmem:[#allocation5 + $0x7a4] ss:$16 sps:$4 sm:$0xff]   ;;  %v6660_v21 = vld [vmem:[#allocation5 + $0x5a0] ss:$16 sps:$4 sm:$0xff]  }
  0x86   :  { %3729 = vmatpush1.bf16.msra.mxu0 %v6606_v46  ;;  %v6648_v46 = vld [vmem:[#allocation5 + $0x5e0] ss:$16 sps:$4 sm:$0xff]   ;;  %v6668_v27 = vld [vmem:[#allocation5 + $0x584] ss:$16 sps:$4 sm:$0xff]  }
  0x87   :  { %3730 = vmatprep.subr.bf16.mxu0 %v6614_v47  ;;  %3770 = vmatpush1.bf16.msra.mxu1 %v6609_v48  ;;  %v187_v47 = vrot.slane %v186_v34, 2  ;;  %v312_v48 = vadd.f32 %v311_v36, %v310_v22  ;;  %v6663_v22 = vld [vmem:[#allocation5 + $0x7a0] ss:$16 sps:$4 sm:$0xff]   ;;  %v6671_v36 = vld [vmem:[#allocation5 + $0x784] ss:$16 sps:$4 sm:$0xff]  }
  0x88   :  { %3771 = vmatprep.subr.bf16.mxu1 %v6617_v49  ;;  %v192_v49 = vrot.slane %v191_v38, 4 }
  0x8a   :  { %3731 = vmatpush1.bf16.msra.mxu0 %v6612_v50  ;;  %v303_v50 = vadd.f32 %v139_v37, %v123_v33 }
  0x8b   :  { %3732 = vmatprep.subr.bf16.mxu0 %v6620_v51  ;;  %3772 = vmatpush1.bf16.msra.mxu1 %v6615_v52  ;;  %v6656_v51 = vld [vmem:[#allocation5 + $0x5c4] ss:$16 sps:$4 sm:$0xff]   ;;  %v299_v52 = vrot.slane %v298_v41, 2 }
  0x8c   :  { %3773 = vmatprep.subr.bf16.mxu1 %v6623_v53  ;;  %v201_v53 = vrot.slane %v200_v42, 2 }
  0x8e   :  { %3733 = vmatpush1.bf16.msra.mxu0 %v6618_v54  ;;  %v179_v54 = vadd.f32 %v178_v43, %v177_v28 }
  0x8f   :  { %3734 = vmatprep.subr.bf16.mxu0 %v6626_v55  ;;  %3774 = vmatpush1.bf16.msra.mxu1 %v6621_v56  ;;  %v291_v55 = vadd.f32 %v290_v45, %v289_v29  ;;  %v6651_v56 = vld [vmem:[#allocation5 + $0x7e0] ss:$16 sps:$4 sm:$0xff]  }
  0x90   :  { %3775 = vmatprep.subr.bf16.mxu1 %v6629_v57  ;;  %v188_v57 = vadd.f32 %v187_v47, %v186_v34 }
  0x92   :  { %3735 = vmatpush1.bf16.msra.mxu0 %v6624_v58  ;;  %v313_v58 = vrot.slane %v312_v48, 2 }
  0x93   :  { %3736 = vmatprep.subr.bf16.mxu0 %v6632_v59  ;;  %3776 = vmatpush1.bf16.msra.mxu1 %v6627_v60  ;;  %v193_v59 = vadd.f32 %v192_v49, %v191_v38  ;;  %v304_v60 = vrot.slane %v303_v50, 4  ;;  %v6669_v49 = vld [vmem:[#allocation5 + $0x780] ss:$16 sps:$4 sm:$0xff]  }
  0x94   :  { %3777 = vmatprep.subr.bf16.mxu1 %v6635_v61  ;;  %v6659_v61 = vld [vmem:[#allocation5 + $0x7c4] ss:$16 sps:$4 sm:$0xff]  }
  0x95   :  { %v305_v6 = vadd.f32 %v304_v60, %v303_v50  ;;  %v6680_v60 = vld [vmem:[#allocation5 + $0x544] ss:$16 sps:$4 sm:$0xff]  }
  0x96   :  { %3737 = vmatpush1.bf16.msra.mxu0 %v6630_v62  ;;  %v300_v62 = vadd.f32 %v299_v52, %v298_v41 }
  0x97   :  { %3738 = vmatprep.subr.bf16.mxu0 %v6638_v63  ;;  %3778 = vmatpush1.bf16.msra.mxu1 %v6633_v0  ;;  %v202_v63 = vadd.f32 %v201_v53, %v200_v42  ;;  %v180_v0 = vrot.slane %v179_v54, 2  ;;  %v306_v16 = vrot.slane %v305_v6, 2  ;;  %v6677_v53 = vld [vmem:[#allocation5 + $0x764] ss:$16 sps:$4 sm:$0xff]  }
  0x98   :  { %3779 = vmatprep.subr.bf16.mxu1 %v6641_v2  ;;  %v6654_v2 = vld [vmem:[#allocation5 + $0x5c0] ss:$16 sps:$4 sm:$0xff]   ;;  %v301_v8 = vrot.slane %v300_v62, 1 }
  0x99   :  { %v181_v10 = vadd.f32 %v180_v0, %v179_v54  ;;  %v307_v26 = vadd.f32 %v306_v16, %v305_v6  ;;  %v6681_v6 = vld [vmem:[#allocation5 + $0x740] ss:$16 sps:$4 sm:$0xff]  }
  0x9a   :  { %3739 = vmatpush1.bf16.msra.mxu0 %v6636_v1  ;;  %v292_v1 = vrot.slane %v291_v55, 2  ;;  %v302_v18 = vadd.f32 %v301_v8, %v300_v62  ;;  %v6675_v62 = vld [vmem:[#allocation5 + $0x760] ss:$16 sps:$4 sm:$0xff]  }
  0x9b   :  { %3740 = vmatprep.subr.bf16.mxu0 %v6644_v4  ;;  %3780 = vmatpush1.bf16.msra.mxu1 %v6639_v3  ;;  %v189_v3 = vrot.slane %v188_v57, 1  ;;  %v314_v4 = vadd.f32 %v313_v58, %v312_v48  ;;  %v308_v34 = vrot.slane %v307_v26, 1 }
  0x9c   :  { %3781 = vmatprep.subr.bf16.mxu1 %v6647_v5  ;;  %v194_v5 = vrot.slane %v193_v59, 2  ;;  %v293_v11 = vadd.f32 %v292_v1, %v291_v55  ;;  %v394_v28 = vmul.f32 0.0625, %v302_v18  ;;  %v6672_v55 = vld [vmem:[#allocation5 + $0x560] ss:$16 sps:$4 sm:$0xff]   ;;  %v6683_v1 = vld [vmem:[#allocation5 + $0x744] ss:$16 sps:$4 sm:$0xff]  }
  0x9d   :  { %v190_v13 = vadd.f32 %v189_v3, %v188_v57  ;;  %v309_v52 = vadd.f32 %v308_v34, %v307_v26  ;;  %v6690_v18 = vld [vmem:[#allocation5 + $0x500] ss:$16 sps:$4 sm:$0xff]  }
  0x9e   :  { %3741 = vmatpush1.bf16.msra.mxu0 %v6642_v9  ;;  %v203_v9 = vrot.slane %v202_v63, 1  ;;  %v195_v15 = vadd.f32 %v194_v5, %v193_v59  ;;  %v294_v25 = vrot.slane %v293_v11, 1  ;;  %v426_v37 = vpack.c.bf16 %v394_v28, %v394_v28  ;;  %v6686_v5 = vld [vmem:[#allocation5 + $0x524] ss:$16 sps:$4 sm:$0xff]   ;;  %v6699_v28 = vld [vmem:[#allocation5 + $0xae0] ss:$16 sps:$4 sm:$0xff]  }
  0x9f   :  { %3742 = vmatprep.subr.bf16.mxu0 %v6650_v14  ;;  %3782 = vmatpush1.bf16.msra.mxu1 %v6645_v20  ;;  %v315_v14 = vrot.slane %v314_v4, 1  ;;  %v182_v20 = vrot.slane %v181_v10, 1  ;;  %v378_v23 = vmul.f32 0.0625, %v190_v13  ;;  %v395_v0 = vmul.f32 0.0625, %v309_v52  ;;  %v6692_v13 = vld [vmem:[#allocation5 + $0x504] ss:$16 sps:$4 sm:$0xff]  }
  0xa0   :  { %3783 = vmatprep.subr.bf16.mxu1 %v6653_v39  ;;  %v204_v19 = vadd.f32 %v203_v9, %v202_v63  ;;  %v196_v33 = vrot.slane %v195_v15, 1  ;;  %v6666_v39 = vld [vmem:[#allocation5 + $0x580] ss:$16 sps:$4 sm:$0xff]   ;;  %v295_v45 = vadd.f32 %v294_v25, %v293_v11  ;;  %v1024_v47 = vunpack.c.l.b16 %v426_v37  ;;  %v6689_v9 = vld [vmem:[#allocation5 + $0x724] ss:$16 sps:$4 sm:$0xff]  }
  0xa1   :  { %v316_v24 = vadd.f32 %v315_v14, %v314_v4  ;;  %v410_v31 = vpack.c.bf16 %v378_v23, %v378_v23  ;;  %v183_v43 = vadd.f32 %v182_v20, %v181_v10  ;;  %v427_v8 = vpack.c.bf16 %v395_v0, %v395_v0  ;;  %v6684_v10 = vld [vmem:[#allocation5 + $0x520] ss:$16 sps:$4 sm:$0xff]   ;;  %v6698_v20 = vld [vmem:[#allocation5 + $0x8e4] ss:$16 sps:$4 sm:$0xff]  }
  0xa2   :  { %3743 = vmatpush2.bf16.msra.mxu0 %v6648_v46  ;;  %v380_v29 = vmul.f32 0.0625, %v204_v19  ;;  %v6674_v46 = vld [vmem:[#allocation5 + $0x564] ss:$16 sps:$4 sm:$0xff]   ;;  %v393_v59 = vmul.f32 0.0625, %v295_v45  ;;  %v6687_v14 = vld [vmem:[#allocation5 + $0x720] ss:$16 sps:$4 sm:$0xff]  }
  0xa3   :  { %3744 = vmatprep.subr.bf16.mxu0 %v6656_v51  ;;  %3784 = vmatpush2.bf16.msra.mxu1 %v6651_v56  ;;  %v396_v32 = vmul.f32 0.0625, %v316_v24  ;;  %v1008_v41 = vunpack.c.l.b16 %v410_v31  ;;  %v197_v51 = vadd.f32 %v196_v33, %v195_v15  ;;  %v377_v58 = vmul.f32 0.0625, %v183_v43  ;;  %v6701_v24 = vld [vmem:[#allocation5 + $0xae4] ss:$16 sps:$4 sm:$0xff]   ;;  %v6696_v25 = vld [vmem:[#allocation5 + $0x8e0] ss:$16 sps:$4 sm:$0xff]  }
  0xa4   :  { %3785 = vmatprep.subr.bf16.mxu1 %v6659_v61  ;;  %v412_v38 = vpack.c.bf16 %v380_v29, %v380_v29  ;;  %v425_v4 = vpack.c.bf16 %v393_v59, %v393_v59  ;;  %v1025_v16 = vunpack.c.l.b16 %v427_v8  ;;  %v6707_v29 = vld [vmem:[#allocation5 + $0xac4] ss:$16 sps:$4 sm:$0xff]   ;;  %v6702_v31 = vld [vmem:[#allocation5 + $0x8c0] ss:$16 sps:$4 sm:$0xff]   ;;  %v110_v43 = vld [vmem:[#allocation2 + $0xc8] sm:$0xff] }
  0xa5   :  { %v428_v42 = vpack.c.bf16 %v396_v32, %v396_v32  ;;  %v1041_v54 = vsel %vm1035_vm0, %v1024_v47, %v1008_v41  ;;  %v379_v63 = vmul.f32 0.0625, %v197_v51  ;;  %v409_v3 = vpack.c.bf16 %v377_v58, %v377_v58  ;;  %v6710_v32 = vld [vmem:[#allocation5 + $0x8a4] ss:$16 sps:$4 sm:$0xff]   ;;  %v6705_v33 = vld [vmem:[#allocation5 + $0xac0] ss:$16 sps:$4 sm:$0xff]   ;;  %v126_v45 = vld [vmem:[#allocation2 + $0x148] sm:$0xff] }
  0xa6   :  { %3745 = vmatpush2.bf16.msra.mxu0 %v6654_v2  ;;  %v1010_v48 = vunpack.c.l.b16 %v412_v38  ;;  %v7764_v56 = vpack.c.b16 %v1041_v54, %v1041_v54  ;;  %v6678_v2 = vld [vmem:[#allocation5 + $0x540] ss:$16 sps:$4 sm:$0xff]   ;;  %v6716_v38 = vld [vmem:[#allocation5 + $0x884] ss:$16 sps:$4 sm:$0xff]   ;;  %v128_v51 = vld [vmem:[#allocation2 + $0x158] sm:$0xff] }
  0xa7   :  { %3746 = vmatprep.subr.bf16.mxu0 %v6662_v7  ;;  %3786 = vmatpush2.bf16.msra.mxu1 %v6657_v12  ;;  %v1026_v50 = vunpack.c.l.b16 %v428_v42  ;;  %v411_v7 = vpack.c.bf16 %v379_v63, %v379_v63  ;;  %v1007_v11 = vunpack.c.l.b16 %v409_v3  ;;  %v1023_v12 = vunpack.c.l.b16 %v425_v4  ;;  %v6708_v34 = vld [vmem:[#allocation5 + $0x8a0] ss:$16 sps:$4 sm:$0xff]   ;;  %v6719_v41 = vld [vmem:[#allocation5 + $0xa84] ss:$16 sps:$4 sm:$0xff]   ;;  %v94_v42 = vld [vmem:[#allocation2 + $0x48] sm:$0xff] }
  0xa8   :  { %3787 = vmatprep.subr.bf16.mxu1 %v6665_v17  ;;  %3758 = vmatprep.mubr.bf16.mxu0 %v7764_v56  ;;  %v6695_v17 = vld [vmem:[#allocation5 + $0x704] ss:$16 sps:$4 sm:$0xff]   ;;  %v6711_v37 = vld [vmem:[#allocation5 + $0xaa0] ss:$16 sps:$4 sm:$0xff]   ;;  %v212_v47 = vadd.f32 %v110_v43, %v94_v42  ;;  %v144_v54 = vld [vmem:[#allocation2 + $0x1d8] sm:$0xff] }
  0xa9   :  { %v1043_v57 = vsel %vm1035_vm0, %v1026_v50, %v1010_v48  ;;  %v1009_v15 = vunpack.c.l.b16 %v411_v7  ;;  %v1040_v19 = vsel %vm1035_vm0, %v1023_v12, %v1007_v11  ;;  %v112_v50 = vld [vmem:[#allocation2 + $0xd8] sm:$0xff]  ;;  %v6717_v52 = vld [vmem:[#allocation5 + $0xa80] ss:$16 sps:$4 sm:$0xff]   ;;  %v6725_v58 = vld [vmem:[#allocation5 + $0xa64] ss:$16 sps:$4 sm:$0xff]  }
  0xaa   :  { %3747 = vmatpush2.bf16.msra.mxu0 %v6660_v21  ;;  %v7767_v61 = vpack.c.b16 %v1043_v57, %v1043_v57  ;;  %v6693_v21 = vld [vmem:[#allocation5 + $0x700] ss:$16 sps:$4 sm:$0xff]   ;;  %v7773_v23 = vpack.c.b16 %v1040_v19, %v1040_v19  ;;  %v213_v59 = vrot.slane %v212_v47, 4  ;;  %v6728_v63 = vld [vmem:[#allocation5 + $0x844] ss:$16 sps:$4 sm:$0xff]  }
  0xab   :  { %3748 = vmatprep.subr.bf16.mxu0 %v6668_v27  ;;  %3788 = vmatpush2.bf16.msra.mxu1 %v6663_v22  ;;  %v1042_v22 = vsel %vm1035_vm0, %v1025_v16, %v1009_v15  ;;  %v6704_v27 = vld [vmem:[#allocation5 + $0x8c4] ss:$16 sps:$4 sm:$0xff]   ;;  %v6720_v57 = vld [vmem:[#allocation5 + $0x860] ss:$16 sps:$4 sm:$0xff]  }
  0xac   :  { %3789 = vmatprep.subr.bf16.mxu1 %v6671_v36  ;;  %3799 = vmatprep.mubr.bf16.mxu1 %v7767_v61  ;;  %v7775_v26 = vpack.c.b16 %v1042_v22, %v1042_v22  ;;  %v6713_v36 = vld [vmem:[#allocation5 + $0xaa4] ss:$16 sps:$4 sm:$0xff]   ;;  %v6723_v4 = vld [vmem:[#allocation5 + $0xa60] ss:$16 sps:$4 sm:$0xff]  }
  0xad   :  { %v125_v3 = vld [vmem:[#allocation2 + $0x140] sm:$0xff]  ;;  %v95_v11 = vld [vmem:[#allocation2 + $0x50] sm:$0xff] }
  0xae   :  { %3749 = vmatpush2.bf16.msra.mxu0 %v6666_v39  ;;  %v6714_v39 = vld [vmem:[#allocation5 + $0x880] ss:$16 sps:$4 sm:$0xff]  }
  0xaf   :  { %3750 = vmatprep.subr.bf16.mxu0 %v6674_v46  ;;  %3790 = vmatpush2.bf16.msra.mxu1 %v6669_v49  ;;  %v142_v46 = vld [vmem:[#allocation2 + $0x1c8] sm:$0xff]  ;;  %v96_v49 = vld [vmem:[#allocation2 + $0x58] sm:$0xff]  ;;  %v141_v8 = vld [vmem:[#allocation2 + $0x1c0] sm:$0xff] }
  0xb0   :  { %3791 = vmatprep.subr.bf16.mxu1 %v6677_v53  ;;  %v324_v48 = vadd.f32 %v142_v46, %v126_v45  ;;  %v6722_v53 = vld [vmem:[#allocation5 + $0x864] ss:$16 sps:$4 sm:$0xff]  }
  0xb1   :  { %v111_v15 = vld [vmem:[#allocation2 + $0xd0] sm:$0xff] }
  0xb2   :  { %3751 = vmatpush2.bf16.msra.mxu0 %v6672_v55  ;;  %v226_v55 = vadd.f32 %v112_v50, %v96_v49  ;;  %v127_v16 = vld [vmem:[#allocation2 + $0x150] sm:$0xff] }
  0xb3   :  { %3752 = vmatprep.subr.bf16.mxu0 %v6680_v60  ;;  %3792 = vmatpush2.bf16.msra.mxu1 %v6675_v62  ;;  %v325_v60 = vrot.slane %v324_v48, 4  ;;  %v338_v62 = vadd.f32 %v144_v54, %v128_v51 }
  0xb4   :  { %3793 = vmatprep.subr.bf16.mxu1 %v6683_v1  ;;  %v227_v0 = vrot.slane %v226_v55, 4  ;;  %v93_v1 = vld [vmem:[#allocation2 + $0x40] sm:$0xff] }
  0xb5   :  { %v339_v7 = vrot.slane %v338_v62, 4 }
  0xb6   :  { %3753 = vmatpush2.bf16.msra.mxu0 %v6678_v2  ;;  %v109_v2 = vld [vmem:[#allocation2 + $0xc0] sm:$0xff] }
  0xb7   :  { %3754 = vmatprep.subr.bf16.mxu0 %v6686_v5  ;;  %3794 = vmatpush2.bf16.msra.mxu1 %v6681_v6  ;;  %v214_v5 = vadd.f32 %v213_v59, %v212_v47  ;;  %v326_v6 = vadd.f32 %v325_v60, %v324_v48  ;;  %v205_v19 = vadd.f32 %v109_v2, %v93_v1  ;;  %v6735_v47 = vld [vmem:[#allocation5 + $0xa20] ss:$16 sps:$4 sm:$0xff]   ;;  %v6740_v48 = vld [vmem:[#allocation5 + $0x804] ss:$16 sps:$4 sm:$0xff]  }
  0xb8   :  { %3795 = vmatprep.subr.bf16.mxu1 %v6689_v9  ;;  %v6731_v9 = vld [vmem:[#allocation5 + $0xa44] ss:$16 sps:$4 sm:$0xff]   ;;  %v6738_v59 = vld [vmem:[#allocation5 + $0x800] ss:$16 sps:$4 sm:$0xff]  }
  0xb9   :  { %v215_v12 = vrot.slane %v214_v5, 2  ;;  %v6746_v1 = vld [vmem:[#allocation5 + $0x9e4] ss:$16 sps:$4 sm:$0xff]  }
  0xba   :  { %3755 = vmatpush2.bf16.msra.mxu0 %v6684_v10  ;;  %v228_v10 = vadd.f32 %v227_v0, %v226_v55  ;;  %v6743_v55 = vld [vmem:[#allocation5 + $0xa04] ss:$16 sps:$4 sm:$0xff]  }
  0xbb   :  { %3756 = vmatprep.subr.bf16.mxu0 %v6692_v13  ;;  %3796 = vmatpush2.bf16.msra.mxu1 %v6687_v14  ;;  %v327_v13 = vrot.slane %v326_v6, 2  ;;  %v340_v14 = vadd.f32 %v339_v7, %v338_v62 }
  0xbc   :  { %3797 = vmatprep.subr.bf16.mxu1 %v6695_v17  ;;  %v143_v17 = vld [vmem:[#allocation2 + $0x1d0] sm:$0xff] }
  0xbd   :  { %v328_v22 = vadd.f32 %v327_v13, %v326_v6 }
  0xbe   :  { %3757 = vmatpush2.bf16.msra.mxu0 %v6690_v18  ;;  %v229_v18 = vrot.slane %v228_v10, 2 }
  0xbf   :  { %3808 = vmatprep.subr.bf16.mxu0 %v6698_v20  ;;  %3798 = vmatpush2.bf16.msra.mxu1 %v6693_v21  ;;  %v6726_v20 = vld [vmem:[#allocation5 + $0x840] ss:$16 sps:$4 sm:$0xff]   ;;  %v216_v21 = vadd.f32 %v215_v12, %v214_v5 }
  0xc0   :  { %3849 = vmatprep.subr.bf16.mxu1 %v6701_v24  ;;  %v341_v24 = vrot.slane %v340_v14, 2 }
  0xc1   :  { %3759 = vmatmul.mubr.bf16.vlgmr.msra.gmra.mxu0 %v7773_v23 }
  0xc2   :  { %3809 = vmatpush1.bf16.msra.mxu0 %v6696_v25  ;;  %3800 = vmatmul.mubr.bf16.vlgmr.msra.gmra.mxu1 %v7775_v26  ;;  %v317_v25 = vadd.f32 %v141_v8, %v125_v3 }
  0xc3   :  { %3810 = vmatprep.subr.bf16.mxu0 %v6704_v27  ;;  %3850 = vmatpush1.bf16.msra.mxu1 %v6699_v28  ;;  %v6734_v27 = vld [vmem:[#allocation5 + $0x824] ss:$16 sps:$4 sm:$0xff]   ;;  %v230_v28 = vadd.f32 %v229_v18, %v228_v10  ;;  %v6747_v18 = vld [vmem:[#allocation5 + $0xbe0] ss:$16 sps:$4 sm:$0xff]  }
  0xc4   :  { %3851 = vmatprep.subr.bf16.mxu1 %v6707_v29  ;;  %v219_v29 = vadd.f32 %v111_v15, %v95_v11  ;;  %v318_v46 = vrot.slane %v317_v25, 4  ;;  %v6744_v11 = vld [vmem:[#allocation5 + $0x9e0] ss:$16 sps:$4 sm:$0xff]  }
  0xc6   :  { %3811 = vmatpush1.bf16.msra.mxu0 %v6702_v31  ;;  %v6729_v31 = vld [vmem:[#allocation5 + $0xa40] ss:$16 sps:$4 sm:$0xff]   ;;  %v220_v50 = vrot.slane %v219_v29, 4  ;;  %v319_v0 = vadd.f32 %v318_v46, %v317_v25 }
  0xc7   :  { %3812 = vmatprep.subr.bf16.mxu0 %v6710_v32  ;;  %3852 = vmatpush1.bf16.msra.mxu1 %v6705_v33  ;;  %v217_v32 = vrot.slane %v216_v21, 1  ;;  %v329_v33 = vrot.slane %v328_v22, 1  ;;  %v6750_v25 = vld [vmem:[#allocation5 + $0x9c0] ss:$16 sps:$4 sm:$0xff]  }
  0xc8   :  { %3853 = vmatprep.subr.bf16.mxu1 %v6713_v36  ;;  %v331_v36 = vadd.f32 %v143_v17, %v127_v16  ;;  %v221_v3 = vadd.f32 %v220_v50, %v219_v29  ;;  %v320_v15 = vrot.slane %v319_v0, 2  ;;  %v6752_v16 = vld [vmem:[#allocation5 + $0x9c4] ss:$16 sps:$4 sm:$0xff]   ;;  %v6762_v46 = vld [vmem:[#allocation5 + $0x980] ss:$16 sps:$4 sm:$0xff]  }
  0xc9   :  { %v218_v42 = vadd.f32 %v217_v32, %v216_v21  ;;  %v330_v43 = vadd.f32 %v329_v33, %v328_v22  ;;  %v6755_v22 = vld [vmem:[#allocation5 + $0xbc4] ss:$16 sps:$4 sm:$0xff]   ;;  %v6765_v50 = vld [vmem:[#allocation5 + $0xb80] ss:$16 sps:$4 sm:$0xff]  }
  0xca   :  { %3813 = vmatpush1.bf16.msra.mxu0 %v6708_v34  ;;  %v342_v34 = vadd.f32 %v341_v24, %v340_v14  ;;  %v332_v54 = vrot.slane %v331_v36, 4  ;;  %v6758_v29 = vld [vmem:[#allocation5 + $0x9a4] ss:$16 sps:$4 sm:$0xff]  }
  0xcb   :  { %3814 = vmatprep.subr.bf16.mxu0 %v6716_v38  ;;  %3854 = vmatpush1.bf16.msra.mxu1 %v6711_v37  ;;  %v6737_v37 = vld [vmem:[#allocation5 + $0xa24] ss:$16 sps:$4 sm:$0xff]   ;;  %v231_v38 = vrot.slane %v230_v28, 1  ;;  %v382_v51 = vmul.f32 0.0625, %v218_v42 }
  0xcc   :  { %3855 = vmatprep.subr.bf16.mxu1 %v6719_v41  ;;  %v6732_v41 = vld [vmem:[#allocation5 + $0x820] ss:$16 sps:$4 sm:$0xff]   ;;  %v343_v45 = vrot.slane %v342_v34, 1  ;;  %v333_v8 = vadd.f32 %v332_v54, %v331_v36 }
  0xcd   :  { %v232_v49 = vadd.f32 %v231_v38, %v230_v28  ;;  %v414_v60 = vpack.c.bf16 %v382_v51, %v382_v51  ;;  %v321_v28 = vadd.f32 %v320_v15, %v319_v0  ;;  %v6756_v36 = vld [vmem:[#allocation5 + $0x9a0] ss:$16 sps:$4 sm:$0xff]  }
  0xce   :  { %3815 = vmatpush1.bf16.msra.mxu0 %v6714_v39  ;;  %v206_v39 = vrot.slane %v205_v19, 4  ;;  %v334_v21 = vrot.slane %v333_v8, 2  ;;  %v6768_v54 = vld [vmem:[#allocation5 + $0x960] ss:$16 sps:$4 sm:$0xff]  }
  0xcf   :  { %3816 = vmatprep.subr.bf16.mxu0 %v6722_v53  ;;  %3856 = vmatpush1.bf16.msra.mxu1 %v6717_v52  ;;  %v398_v52 = vmul.f32 0.0625, %v330_v43  ;;  %v344_v53 = vadd.f32 %v343_v45, %v342_v34  ;;  %v1012_v5 = vunpack.c.l.b16 %v414_v60  ;;  %v6761_v34 = vld [vmem:[#allocation5 + $0xba4] ss:$16 sps:$4 sm:$0xff]   ;;  %v322_v38 = vrot.slane %v321_v28, 1  ;;  %v6774_v0 = vld [vmem:[#allocation5 + $0x940] ss:$16 sps:$4 sm:$0xff]  }
  0xd0   :  { %3857 = vmatprep.subr.bf16.mxu1 %v6725_v58  ;;  %v207_v58 = vadd.f32 %v206_v39, %v205_v19  ;;  %v335_v33 = vadd.f32 %v334_v21, %v333_v8  ;;  %v6764_v39 = vld [vmem:[#allocation5 + $0x984] ss:$16 sps:$4 sm:$0xff]   ;;  %v6780_v8 = vld [vmem:[#allocation5 + $0x920] ss:$16 sps:$4 sm:$0xff]   ;;  %v114_v21 = vld [vmem:[#allocation2 + $0xe8] sm:$0xff] }
  0xd1   :  { %v430_v62 = vpack.c.bf16 %v398_v52, %v398_v52  ;;  %v6767_v45 = vld [vmem:[#allocation5 + $0xb84] ss:$16 sps:$4 sm:$0xff]  }
  0xd2   :  { %3817 = vmatpush1.bf16.msra.mxu0 %v6720_v57  ;;  %v384_v57 = vmul.f32 0.0625, %v232_v49  ;;  %v208_v14 = vrot.slane %v207_v58, 2  ;;  %v336_v43 = vrot.slane %v335_v33, 1  ;;  %v6770_v49 = vld [vmem:[#allocation5 + $0x964] ss:$16 sps:$4 sm:$0xff]  }
  0xd3   :  { %3818 = vmatprep.subr.bf16.mxu0 %v6728_v63  ;;  %3858 = vmatpush1.bf16.msra.mxu1 %v6723_v4  ;;  %v400_v63 = vmul.f32 0.0625, %v344_v53  ;;  %v6741_v4 = vld [vmem:[#allocation5 + $0xa00] ss:$16 sps:$4 sm:$0xff]   ;;  %v1028_v6 = vunpack.c.l.b16 %v430_v62  ;;  %v6773_v53 = vld [vmem:[#allocation5 + $0xb64] ss:$16 sps:$4 sm:$0xff]  }
  0xd4   :  { %3859 = vmatprep.subr.bf16.mxu1 %v6731_v9  ;;  %v416_v2 = vpack.c.bf16 %v384_v57, %v384_v57  ;;  %v6749_v9 = vld [vmem:[#allocation5 + $0xbe4] ss:$16 sps:$4 sm:$0xff]   ;;  %v337_v52 = vadd.f32 %v336_v43, %v335_v33  ;;  %v6792_v43 = vld [vmem:[#allocation5 + $0xce0] ss:$16 sps:$4 sm:$0xff]  }
  0xd5   :  { %v432_v7 = vpack.c.bf16 %v400_v63, %v400_v63  ;;  %v1045_v12 = vsel %vm1035_vm0, %v1028_v6, %v1012_v5  ;;  %v6779_v63 = vld [vmem:[#allocation5 + $0xb44] ss:$16 sps:$4 sm:$0xff]  }
  0xd6   :  { %3819 = vmatpush1.bf16.msra.mxu0 %v6726_v20  ;;  %v1014_v10 = vunpack.c.l.b16 %v416_v2  ;;  %v7780_v17 = vpack.c.b16 %v1045_v12, %v1045_v12  ;;  %v222_v20 = vrot.slane %v221_v3, 2  ;;  %v399_v62 = vmul.f32 0.0625, %v337_v52  ;;  %v6783_v12 = vld [vmem:[#allocation5 + $0xb20] ss:$16 sps:$4 sm:$0xff]   ;;  %v6803_v52 = vld [vmem:[#allocation5 + $0xec4] ss:$16 sps:$4 sm:$0xff]  }
  0xd7   :  { %3820 = vmatprep.subr.bf16.mxu0 %v6734_v27  ;;  %3860 = vmatpush1.bf16.msra.mxu1 %v6729_v31  ;;  %v1030_v13 = vunpack.c.l.b16 %v432_v7  ;;  %v209_v27 = vadd.f32 %v208_v14, %v207_v58  ;;  %v6753_v31 = vld [vmem:[#allocation5 + $0xbc0] ss:$16 sps:$4 sm:$0xff]   ;;  %v6776_v58 = vld [vmem:[#allocation5 + $0x944] ss:$16 sps:$4 sm:$0xff]  }
  0xd8   :  { %3861 = vmatprep.subr.bf16.mxu1 %v6737_v37  ;;  %3840 = vmatprep.mubr.bf16.mxu0 %v7780_v17  ;;  %v223_v32 = vadd.f32 %v222_v20, %v221_v3  ;;  %v6782_v3 = vld [vmem:[#allocation5 + $0x924] ss:$16 sps:$4 sm:$0xff]   ;;  %v431_v6 = vpack.c.bf16 %v399_v62, %v399_v62  ;;  %v98_v20 = vld [vmem:[#allocation2 + $0x68] sm:$0xff] }
  0xd9   :  { %v1047_v19 = vsel %vm1035_vm0, %v1030_v13, %v1014_v10  ;;  %v210_v37 = vrot.slane %v209_v27, 1  ;;  %v6785_v7 = vld [vmem:[#allocation5 + $0xb24] ss:$16 sps:$4 sm:$0xff]   ;;  %v6786_v13 = vld [vmem:[#allocation5 + $0x900] ss:$16 sps:$4 sm:$0xff]  }
  0xda   :  { %3821 = vmatpush1.bf16.msra.mxu0 %v6732_v41  ;;  %v7784_v24 = vpack.c.b16 %v1047_v19, %v1047_v19  ;;  %v6759_v41 = vld [vmem:[#allocation5 + $0xba0] ss:$16 sps:$4 sm:$0xff]   ;;  %v224_v42 = vrot.slane %v223_v32, 1  ;;  %v1029_v15 = vunpack.c.l.b16 %v431_v6  ;;  %v6806_v62 = vld [vmem:[#allocation5 + $0xca4] ss:$16 sps:$4 sm:$0xff]  }
  0xdb   :  { %3822 = vmatprep.subr.bf16.mxu0 %v6740_v48  ;;  %3862 = vmatpush1.bf16.msra.mxu1 %v6735_v47  ;;  %v211_v47 = vadd.f32 %v210_v37, %v209_v27  ;;  %v323_v48 = vadd.f32 %v322_v38, %v321_v28  ;;  %v240_v27 = vadd.f32 %v114_v21, %v98_v20  ;;  %v100_v28 = vld [vmem:[#allocation2 + $0x78] sm:$0xff]  ;;  %v6810_v20 = vld [vmem:[#allocation5 + $0xc80] ss:$16 sps:$4 sm:$0xff]  }
  0xdc   :  { %3863 = vmatprep.subr.bf16.mxu1 %v6743_v55  ;;  %3881 = vmatprep.mubr.bf16.mxu1 %v7784_v24  ;;  %v225_v51 = vadd.f32 %v224_v42, %v223_v32 }
  0xdd   :  { %v381_v55 = vmul.f32 0.0625, %v211_v47  ;;  %v397_v57 = vmul.f32 0.0625, %v323_v48  ;;  %v6800_v48 = vld [vmem:[#allocation5 + $0xcc4] ss:$16 sps:$4 sm:$0xff]  }
  0xde   :  { %3823 = vmatpush1.bf16.msra.mxu0 %v6738_v59  ;;  %v6771_v59 = vld [vmem:[#allocation5 + $0xb60] ss:$16 sps:$4 sm:$0xff]   ;;  %v383_v60 = vmul.f32 0.0625, %v225_v51 }
  0xdf   :  { %3824 = vmatprep.subr.bf16.mxu0 %v6746_v1  ;;  %3864 = vmatpush1.bf16.msra.mxu1 %v6741_v4  ;;  %v413_v1 = vpack.c.bf16 %v381_v55, %v381_v55  ;;  %v429_v2 = vpack.c.bf16 %v397_v57, %v397_v57  ;;  %v6777_v4 = vld [vmem:[#allocation5 + $0xb40] ss:$16 sps:$4 sm:$0xff]  }
  0xe0   :  { %3865 = vmatprep.subr.bf16.mxu1 %v6749_v9  ;;  %v415_v5 = vpack.c.bf16 %v383_v60, %v383_v60  ;;  %v6795_v51 = vld [vmem:[#allocation5 + $0xee0] ss:$16 sps:$4 sm:$0xff]  }
  0xe1   :  { %v1011_v9 = vunpack.c.l.b16 %v413_v1  ;;  %v1027_v10 = vunpack.c.l.b16 %v429_v2  ;;  %v6801_v1 = vld [vmem:[#allocation5 + $0xec0] ss:$16 sps:$4 sm:$0xff]  }
  0xe2   :  { %3825 = vmatpush2.bf16.msra.mxu0 %v6744_v11  ;;  %v6788_v11 = vld [vmem:[#allocation5 + $0x904] ss:$16 sps:$4 sm:$0xff]   ;;  %v1013_v14 = vunpack.c.l.b16 %v415_v5 }
  0xe3   :  { %3826 = vmatprep.subr.bf16.mxu0 %v6752_v16  ;;  %3866 = vmatpush2.bf16.msra.mxu1 %v6747_v18  ;;  %v6791_v16 = vld [vmem:[#allocation5 + $0xb04] ss:$16 sps:$4 sm:$0xff]   ;;  %v1044_v19 = vsel %vm1035_vm0, %v1027_v10, %v1011_v9 }
  0xe4   :  { %3867 = vmatprep.subr.bf16.mxu1 %v6755_v22  ;;  %v6794_v18 = vld [vmem:[#allocation5 + $0xce4] ss:$16 sps:$4 sm:$0xff]   ;;  %v130_v22 = vld [vmem:[#allocation2 + $0x168] sm:$0xff]  ;;  %v1046_v32 = vsel %vm1035_vm0, %v1029_v15, %v1013_v14  ;;  %v7789_v38 = vpack.c.b16 %v1044_v19, %v1044_v19 }
  0xe5   :  { %v7791_v47 = vpack.c.b16 %v1046_v32, %v1046_v32  ;;  %v6812_v10 = vld [vmem:[#allocation5 + $0xc84] ss:$16 sps:$4 sm:$0xff]  }
  0xe6   :  { %3827 = vmatpush2.bf16.msra.mxu0 %v6750_v25  ;;  %v146_v25 = vld [vmem:[#allocation2 + $0x1e8] sm:$0xff]  ;;  %v6821_v32 = vld [vmem:[#allocation5 + $0xe64] ss:$16 sps:$4 sm:$0xff]  }
  0xe7   :  { %3828 = vmatprep.subr.bf16.mxu0 %v6758_v29  ;;  %3868 = vmatpush2.bf16.msra.mxu1 %v6753_v31  ;;  %v116_v29 = vld [vmem:[#allocation2 + $0xf8] sm:$0xff]  ;;  %v6789_v31 = vld [vmem:[#allocation5 + $0xb00] ss:$16 sps:$4 sm:$0xff]   ;;  %v352_v33 = vadd.f32 %v146_v25, %v130_v22 }
  0xe8   :  { %3869 = vmatprep.subr.bf16.mxu1 %v6761_v34  ;;  %v132_v34 = vld [vmem:[#allocation2 + $0x178] sm:$0xff]  ;;  %v254_v37 = vadd.f32 %v116_v29, %v100_v28  ;;  %v6813_v25 = vld [vmem:[#allocation5 + $0xe80] ss:$16 sps:$4 sm:$0xff]  }
  0xea   :  { %3829 = vmatpush2.bf16.msra.mxu0 %v6756_v36  ;;  %v148_v36 = vld [vmem:[#allocation2 + $0x1f8] sm:$0xff] }
  0xeb   :  { %3830 = vmatprep.subr.bf16.mxu0 %v6764_v39  ;;  %3870 = vmatpush2.bf16.msra.mxu1 %v6759_v41  ;;  %v6797_v39 = vld [vmem:[#allocation5 + $0xee4] ss:$16 sps:$4 sm:$0xff]   ;;  %v241_v41 = vrot.slane %v240_v27, 4  ;;  %v366_v42 = vadd.f32 %v148_v36, %v132_v34 }
  0xec   :  { %3871 = vmatprep.subr.bf16.mxu1 %v6767_v45  ;;  %v353_v45 = vrot.slane %v352_v33, 4  ;;  %v6824_v36 = vld [vmem:[#allocation5 + $0xc44] ss:$16 sps:$4 sm:$0xff]  }
  0xee   :  { %3831 = vmatpush2.bf16.msra.mxu0 %v6762_v46  ;;  %v255_v46 = vrot.slane %v254_v37, 4 }
  0xef   :  { %3832 = vmatprep.subr.bf16.mxu0 %v6770_v49  ;;  %3872 = vmatpush2.bf16.msra.mxu1 %v6765_v50  ;;  %v242_v49 = vadd.f32 %v241_v41, %v240_v27  ;;  %v367_v50 = vrot.slane %v366_v42, 4  ;;  %v6818_v27 = vld [vmem:[#allocation5 + $0xc64] ss:$16 sps:$4 sm:$0xff]  }
  0xf0   :  { %3873 = vmatprep.subr.bf16.mxu1 %v6773_v53  ;;  %v354_v53 = vadd.f32 %v353_v45, %v352_v33  ;;  %v97_v41 = vld [vmem:[#allocation2 + $0x60] sm:$0xff] }
  0xf1   :  { %v243_v55 = vrot.slane %v242_v49, 2  ;;  %v368_v57 = vadd.f32 %v367_v50, %v366_v42  ;;  %v113_v42 = vld [vmem:[#allocation2 + $0xe0] sm:$0xff] }
  0xf2   :  { %3833 = vmatpush2.bf16.msra.mxu0 %v6768_v54  ;;  %v256_v54 = vadd.f32 %v255_v46, %v254_v37  ;;  %v6827_v50 = vld [vmem:[#allocation5 + $0xe44] ss:$16 sps:$4 sm:$0xff]  }
  0xf3   :  { %3834 = vmatprep.subr.bf16.mxu0 %v6776_v58  ;;  %3874 = vmatpush2.bf16.msra.mxu1 %v6771_v59  ;;  %v6798_v58 = vld [vmem:[#allocation5 + $0xcc0] ss:$16 sps:$4 sm:$0xff]   ;;  %v355_v59 = vrot.slane %v354_v53, 2 }
  0xf4   :  { %3875 = vmatprep.subr.bf16.mxu1 %v6779_v63  ;;  %v257_v60 = vrot.slane %v256_v54, 2  ;;  %v244_v63 = vadd.f32 %v243_v55, %v242_v49  ;;  %v145_v49 = vld [vmem:[#allocation2 + $0x1e0] sm:$0xff]  ;;  %v131_v55 = vld [vmem:[#allocation2 + $0x170] sm:$0xff] }
  0xf5   :  { %v356_v2 = vadd.f32 %v355_v59, %v354_v53  ;;  %v115_v53 = vld [vmem:[#allocation2 + $0xf0] sm:$0xff] }
  0xf6   :  { %3835 = vmatpush2.bf16.msra.mxu0 %v6774_v0  ;;  %v369_v0 = vrot.slane %v368_v57, 2  ;;  %v245_v5 = vrot.slane %v244_v63, 1  ;;  %v147_v59 = vld [vmem:[#allocation2 + $0x1f0] sm:$0xff] }
  0xf7   :  { %3836 = vmatprep.subr.bf16.mxu0 %v6782_v3  ;;  %3876 = vmatpush2.bf16.msra.mxu1 %v6777_v4  ;;  %v258_v3 = vadd.f32 %v257_v60, %v256_v54  ;;  %v6809_v4 = vld [vmem:[#allocation5 + $0xea4] ss:$16 sps:$4 sm:$0xff]   ;;  %v6822_v60 = vld [vmem:[#allocation5 + $0xc40] ss:$16 sps:$4 sm:$0xff]  }
  0xf8   :  { %3877 = vmatprep.subr.bf16.mxu1 %v6785_v7  ;;  %v370_v6 = vadd.f32 %v369_v0, %v368_v57  ;;  %v6804_v7 = vld [vmem:[#allocation5 + $0xca0] ss:$16 sps:$4 sm:$0xff]  }
  0xf9   :  { %v259_v9 = vrot.slane %v258_v3, 1 }
  0xfa   :  { %3837 = vmatpush2.bf16.msra.mxu0 %v6780_v8  ;;  %v357_v8 = vrot.slane %v356_v2, 1 }
  0xfb   :  { %3838 = vmatprep.subr.bf16.mxu0 %v6788_v11  ;;  %3878 = vmatpush2.bf16.msra.mxu1 %v6783_v12  ;;  %v246_v11 = vadd.f32 %v245_v5, %v244_v63  ;;  %v371_v12 = vrot.slane %v370_v6, 1  ;;  %v260_v15 = vadd.f32 %v259_v9, %v258_v3  ;;  %v233_v63 = vadd.f32 %v113_v42, %v97_v41  ;;  %v6833_v5 = vld [vmem:[#allocation5 + $0xe24] ss:$16 sps:$4 sm:$0xff]   ;;  %v6849_v42 = vld [vmem:[#allocation5 + $0xfc0] ss:$16 sps:$4 sm:$0xff]  }
  0xfc   :  { %3879 = vmatprep.subr.bf16.mxu1 %v6791_v16  ;;  %v358_v14 = vadd.f32 %v357_v8, %v356_v2  ;;  %v6815_v16 = vld [vmem:[#allocation5 + $0xe84] ss:$16 sps:$4 sm:$0xff]   ;;  %v6825_v2 = vld [vmem:[#allocation5 + $0xe40] ss:$16 sps:$4 sm:$0xff]  }
  0xfd   :  { %v372_v19 = vadd.f32 %v371_v12, %v370_v6  ;;  %v388_v22 = vmul.f32 0.0625, %v260_v15  ;;  %v6828_v6 = vld [vmem:[#allocation5 + $0xc20] ss:$16 sps:$4 sm:$0xff]   ;;  %v6836_v9 = vld [vmem:[#allocation5 + $0xc04] ss:$16 sps:$4 sm:$0xff]  }
  0xfe   :  { %3839 = vmatpush2.bf16.msra.mxu0 %v6786_v13  ;;  %v6807_v13 = vld [vmem:[#allocation5 + $0xea0] ss:$16 sps:$4 sm:$0xff]   ;;  %v402_v21 = vmul.f32 0.0625, %v358_v14  ;;  %v6854_v41 = vld [vmem:[#allocation5 + $0xda4] ss:$16 sps:$4 sm:$0xff]  }
  0xff   :  { %3890 = vmatprep.subr.bf16.mxu0 %v6794_v18  ;;  %3880 = vmatpush2.bf16.msra.mxu1 %v6789_v31  ;;  %v386_v18 = vmul.f32 0.0625, %v246_v11  ;;  %v404_v29 = vmul.f32 0.0625, %v372_v19  ;;  %v6816_v31 = vld [vmem:[#allocation5 + $0xc60] ss:$16 sps:$4 sm:$0xff]   ;;  %v420_v34 = vpack.c.bf16 %v388_v22, %v388_v22  ;;  %v6845_v22 = vld [vmem:[#allocation5 + $0xfe4] ss:$16 sps:$4 sm:$0xff]  }
 0x100   :  { %3931 = vmatprep.subr.bf16.mxu1 %v6797_v39  ;;  %v434_v33 = vpack.c.bf16 %v402_v21, %v402_v21  ;;  %v6834_v14 = vld [vmem:[#allocation5 + $0xc00] ss:$16 sps:$4 sm:$0xff]  }
 0x101   :  { %3841 = vmatmul.mubr.bf16.vlgmr.msra.gmra.mxu0 %v7789_v38  ;;  %v418_v28 = vpack.c.bf16 %v386_v18, %v386_v18  ;;  %v436_v39 = vpack.c.bf16 %v404_v29, %v404_v29  ;;  %v1018_v46 = vunpack.c.l.b16 %v420_v34  ;;  %v6842_v18 = vld [vmem:[#allocation5 + $0xde4] ss:$16 sps:$4 sm:$0xff]   ;;  %v6837_v19 = vld [vmem:[#allocation5 + $0xe00] ss:$16 sps:$4 sm:$0xff]  }
 0x102   :  { %3891 = vmatpush1.bf16.msra.mxu0 %v6792_v43  ;;  %3882 = vmatmul.mubr.bf16.vlgmr.msra.gmra.mxu1 %v7791_v47  ;;  %v6819_v43 = vld [vmem:[#allocation5 + $0xe60] ss:$16 sps:$4 sm:$0xff]   ;;  %v1032_v45 = vunpack.c.l.b16 %v434_v33  ;;  %v6848_v29 = vld [vmem:[#allocation5 + $0xdc4] ss:$16 sps:$4 sm:$0xff]  }
 0x103   :  { %3892 = vmatprep.subr.bf16.mxu0 %v6800_v48  ;;  %3932 = vmatpush1.bf16.msra.mxu1 %v6795_v51  ;;  %v1016_v37 = vunpack.c.l.b16 %v418_v28  ;;  %v129_v48 = vld [vmem:[#allocation2 + $0x160] sm:$0xff]  ;;  %v1034_v51 = vunpack.c.l.b16 %v436_v39 }
 0x104   :  { %3933 = vmatprep.subr.bf16.mxu1 %v6803_v52  ;;  %v99_v52 = vld [vmem:[#allocation2 + $0x70] sm:$0xff]  ;;  %v345_v0 = vadd.f32 %v145_v49, %v129_v48 }
 0x105   :  { %v1049_v54 = vsel %vm1035_vm0, %v1032_v45, %v1016_v37  ;;  %v247_v3 = vadd.f32 %v115_v53, %v99_v52  ;;  %v6851_v34 = vld [vmem:[#allocation5 + $0xfc4] ss:$16 sps:$4 sm:$0xff]   ;;  %v6852_v48 = vld [vmem:[#allocation5 + $0xda0] ss:$16 sps:$4 sm:$0xff]  }
 0x106   :  { %3893 = vmatpush1.bf16.msra.mxu0 %v6798_v58  ;;  %v7796_v57 = vpack.c.b16 %v1049_v54, %v1049_v54  ;;  %v1051_v58 = vsel %vm1035_vm0, %v1034_v51, %v1018_v46  ;;  %v346_v8 = vrot.slane %v345_v0, 4  ;;  %v6857_v46 = vld [vmem:[#allocation5 + $0xfa4] ss:$16 sps:$4 sm:$0xff]   ;;  %v6855_v52 = vld [vmem:[#allocation5 + $0xfa0] ss:$16 sps:$4 sm:$0xff]  }
 0x107   :  { %3894 = vmatprep.subr.bf16.mxu0 %v6806_v62  ;;  %3934 = vmatpush1.bf16.msra.mxu1 %v6801_v1  ;;  %v7799_v62 = vpack.c.b16 %v1051_v58, %v1051_v58  ;;  %v6830_v1 = vld [vmem:[#allocation5 + $0xc24] ss:$16 sps:$4 sm:$0xff]   ;;  %v248_v11 = vrot.slane %v247_v3, 4  ;;  %v6858_v58 = vld [vmem:[#allocation5 + $0xd80] ss:$16 sps:$4 sm:$0xff]  }
 0x108   :  { %3935 = vmatprep.subr.bf16.mxu1 %v6809_v4  ;;  %3922 = vmatprep.mubr.bf16.mxu0 %v7796_v57  ;;  %v359_v4 = vadd.f32 %v147_v59, %v131_v55  ;;  %v6860_v51 = vld [vmem:[#allocation5 + $0xd84] ss:$16 sps:$4 sm:$0xff]  }
 0x109   :  { %3963 = vmatprep.mubr.bf16.mxu1 %v7799_v62  ;;  %v6863_v55 = vld [vmem:[#allocation5 + $0xf84] ss:$16 sps:$4 sm:$0xff]  }
 0x10a   :  { %3895 = vmatpush1.bf16.msra.mxu0 %v6804_v7  ;;  %v234_v7 = vrot.slane %v233_v63, 4  ;;  %v360_v12 = vrot.slane %v359_v4, 4 }
 0x10b   :  { %3896 = vmatprep.subr.bf16.mxu0 %v6812_v10  ;;  %3936 = vmatpush1.bf16.msra.mxu1 %v6807_v13  ;;  %v6831_v10 = vld [vmem:[#allocation5 + $0xe20] ss:$16 sps:$4 sm:$0xff]   ;;  %v6839_v13 = vld [vmem:[#allocation5 + $0xe04] ss:$16 sps:$4 sm:$0xff]  }
 0x10c   :  { %3937 = vmatprep.subr.bf16.mxu1 %v6815_v16  ;;  %v235_v15 = vadd.f32 %v234_v7, %v233_v63  ;;  %v347_v16 = vadd.f32 %v346_v8, %v345_v0  ;;  %v361_v21 = vadd.f32 %v360_v12, %v359_v4  ;;  %v6866_v63 = vld [vmem:[#allocation5 + $0xd64] ss:$16 sps:$4 sm:$0xff]   ;;  %v6861_v0 = vld [vmem:[#allocation5 + $0xf80] ss:$16 sps:$4 sm:$0xff]  }
 0x10d   :  { %v6864_v4 = vld [vmem:[#allocation5 + $0xd60] ss:$16 sps:$4 sm:$0xff]   ;;  %v6872_v7 = vld [vmem:[#allocation5 + $0xd44] ss:$16 sps:$4 sm:$0xff]  }
 0x10e   :  { %3897 = vmatpush1.bf16.msra.mxu0 %v6810_v20  ;;  %v249_v20 = vadd.f32 %v248_v11, %v247_v3  ;;  %v348_v28 = vrot.slane %v347_v16, 2  ;;  %v362_v33 = vrot.slane %v361_v21, 2  ;;  %v6869_v3 = vld [vmem:[#allocation5 + $0xf64] ss:$16 sps:$4 sm:$0xff]   ;;  %v6867_v8 = vld [vmem:[#allocation5 + $0xf60] ss:$16 sps:$4 sm:$0xff]  }
 0x10f   :  { %3898 = vmatprep.subr.bf16.mxu0 %v6818_v27  ;;  %3938 = vmatpush1.bf16.msra.mxu1 %v6813_v25  ;;  %v6840_v25 = vld [vmem:[#allocation5 + $0xde0] ss:$16 sps:$4 sm:$0xff]   ;;  %v236_v27 = vrot.slane %v235_v15, 2  ;;  %v6875_v11 = vld [vmem:[#allocation5 + $0xf44] ss:$16 sps:$4 sm:$0xff]  }
 0x110   :  { %3939 = vmatprep.subr.bf16.mxu1 %v6821_v32  ;;  %v250_v32 = vrot.slane %v249_v20, 2  ;;  %v349_v39 = vadd.f32 %v348_v28, %v347_v16  ;;  %v363_v45 = vadd.f32 %v362_v33, %v361_v21  ;;  %v6870_v12 = vld [vmem:[#allocation5 + $0xd40] ss:$16 sps:$4 sm:$0xff]   ;;  %v6878_v16 = vld [vmem:[#allocation5 + $0xd24] ss:$16 sps:$4 sm:$0xff]  }
 0x111   :  { %v237_v37 = vadd.f32 %v236_v27, %v235_v15  ;;  %v6881_v21 = vld [vmem:[#allocation5 + $0xf24] ss:$16 sps:$4 sm:$0xff]  }
 0x112   :  { %3899 = vmatpush1.bf16.msra.mxu0 %v6816_v31  ;;  %v6843_v31 = vld [vmem:[#allocation5 + $0xfe0] ss:$16 sps:$4 sm:$0xff]   ;;  %v364_v54 = vrot.slane %v363_v45, 1 }
 0x113   :  { %3900 = vmatprep.subr.bf16.mxu0 %v6824_v36  ;;  %3940 = vmatpush1.bf16.msra.mxu1 %v6819_v43  ;;  %v6846_v36 = vld [vmem:[#allocation5 + $0xdc0] ss:$16 sps:$4 sm:$0xff]   ;;  %v251_v43 = vadd.f32 %v250_v32, %v249_v20  ;;  %v238_v49 = vrot.slane %v237_v37, 1 }
 0x114   :  { %3941 = vmatprep.subr.bf16.mxu1 %v6827_v50  ;;  %v350_v50 = vrot.slane %v349_v39, 1 }
 0x115   :  { %v252_v53 = vrot.slane %v251_v43, 1  ;;  %v239_v59 = vadd.f32 %v238_v49, %v237_v37  ;;  %v6893_v49 = vld [vmem:[#allocation5 + $0x2ec] ss:$16 sps:$4 sm:$0xff]  }
 0x116   :  { %3901 = vmatpush1.bf16.msra.mxu0 %v6822_v60  ;;  %v351_v60 = vadd.f32 %v350_v50, %v349_v39 }
 0x117   :  { %3902 = vmatprep.subr.bf16.mxu0 %v6830_v1  ;;  %3942 = vmatpush1.bf16.msra.mxu1 %v6825_v2  ;;  %v253_v1 = vadd.f32 %v252_v53, %v251_v43  ;;  %v365_v2 = vadd.f32 %v364_v54, %v363_v45  ;;  %v6885_v43 = vld [vmem:[#allocation5 + $0xf00] ss:$16 sps:$4 sm:$0xff]   ;;  %v6896_v53 = vld [vmem:[#allocation5 + $0xcc] ss:$16 sps:$4 sm:$0xff]   ;;  %v6891_v54 = vld [vmem:[#allocation5 + $0x2e8] ss:$16 sps:$4 sm:$0xff]  }
 0x118   :  { %3943 = vmatprep.subr.bf16.mxu1 %v6833_v5  ;;  %v385_v5 = vmul.f32 0.0625, %v239_v59  ;;  %v6899_v59 = vld [vmem:[#allocation5 + $0x2cc] ss:$16 sps:$4 sm:$0xff]  }
 0x11a   :  { %3903 = vmatpush1.bf16.msra.mxu0 %v6828_v6  ;;  %v401_v6 = vmul.f32 0.0625, %v351_v60 }
 0x11b   :  { %3904 = vmatprep.subr.bf16.mxu0 %v6836_v9  ;;  %3944 = vmatpush1.bf16.msra.mxu1 %v6831_v10  ;;  %v387_v9 = vmul.f32 0.0625, %v253_v1  ;;  %v403_v10 = vmul.f32 0.0625, %v365_v2  ;;  %v6902_v2 = vld [vmem:[#allocation5 + $0xac] ss:$16 sps:$4 sm:$0xff]  }
 0x11c   :  { %3945 = vmatprep.subr.bf16.mxu1 %v6839_v13  ;;  %v951_v13 = vlaneseq  ;;  %v433_v15 = vpack.c.bf16 %v401_v6, %v401_v6 }
 0x11d   :  { %v435_v20 = vpack.c.bf16 %v403_v10, %v403_v10 }
 0x11e   :  { %3905 = vmatpush1.bf16.msra.mxu0 %v6834_v14  ;;  %v417_v14 = vpack.c.bf16 %v385_v5, %v385_v5  ;;  %v1031_v28 = vunpack.c.l.b16 %v433_v15  ;;  %v6897_v5 = vld [vmem:[#allocation5 + $0x2c8] ss:$16 sps:$4 sm:$0xff]   ;;  %v6911_v15 = vld [vmem:[#allocation5 + $0x28c] ss:$16 sps:$4 sm:$0xff]  }
 0x11f   :  { %3906 = vmatprep.subr.bf16.mxu0 %v6842_v18  ;;  %3946 = vmatpush1.bf16.msra.mxu1 %v6837_v19  ;;  %v6873_v18 = vld [vmem:[#allocation5 + $0xf40] ss:$16 sps:$4 sm:$0xff]   ;;  %v419_v19 = vpack.c.bf16 %v387_v9, %v387_v9  ;;  %v1033_v33 = vunpack.c.l.b16 %v435_v20  ;;  %v6912_v20 = vld [vmem:[#allocation5 + $0x68] ss:$16 sps:$4 sm:$0xff]  }
 0x120   :  { %3947 = vmatprep.subr.bf16.mxu1 %v6845_v22  ;;  %v6876_v22 = vld [vmem:[#allocation5 + $0xd20] ss:$16 sps:$4 sm:$0xff]   ;;  %v1015_v27 = vunpack.c.l.b16 %v417_v14 }
 0x121   :  { %v1017_v32 = vunpack.c.l.b16 %v419_v19  ;;  %v6917_v19 = vld [vmem:[#allocation5 + $0x26c] ss:$16 sps:$4 sm:$0xff]  }
 0x122   :  { %3907 = vmatpush2.bf16.msra.mxu0 %v6840_v25  ;;  %v7803_v25 = vshrl.u32 %v951_v13, 7  ;;  %v1048_v39 = vsel %vm1035_vm0, %v1031_v28, %v1015_v27  ;;  %v6903_v13 = vld [vmem:[#allocation5 + $0x2a8] ss:$16 sps:$4 sm:$0xff]   ;;  %v6923_v27 = vld [vmem:[#allocation5 + $0x24c] ss:$16 sps:$4 sm:$0xff]  }
 0x123   :  { %3908 = vmatprep.subr.bf16.mxu0 %v6848_v29  ;;  %3948 = vmatpush2.bf16.msra.mxu1 %v6843_v31  ;;  %v6884_v29 = vld [vmem:[#allocation5 + $0xd04] ss:$16 sps:$4 sm:$0xff]   ;;  %v6879_v31 = vld [vmem:[#allocation5 + $0xf20] ss:$16 sps:$4 sm:$0xff]   ;;  %v1050_v45 = vsel %vm1035_vm0, %v1033_v33, %v1017_v32  ;;  %v6918_v28 = vld [vmem:[#allocation5 + $0x48] ss:$16 sps:$4 sm:$0xff]  }
 0x124   :  { %3949 = vmatprep.subr.bf16.mxu1 %v6851_v34  ;;  %v6887_v34 = vld [vmem:[#allocation5 + $0xf04] ss:$16 sps:$4 sm:$0xff]   ;;  %v953_v37 = vsub.s32 0, %v7803_v25  ;;  %v6929_v32 = vld [vmem:[#allocation5 + $0x22c] ss:$16 sps:$4 sm:$0xff]  }
 0x125   :  { %v6924_v33 = vld [vmem:[#allocation5 + $0x28] ss:$16 sps:$4 sm:$0xff]  }
 0x126   :  { %3909 = vmatpush2.bf16.msra.mxu0 %v6846_v36  ;;  %v6882_v36 = vld [vmem:[#allocation5 + $0xd00] ss:$16 sps:$4 sm:$0xff]  }
 0x127   :  { %3910 = vmatprep.subr.bf16.mxu0 %v6854_v41  ;;  %3950 = vmatpush2.bf16.msra.mxu1 %v6849_v42  ;;  %v949_v41 = vld [vmem:[#allocation7] sm:$0xf]  ;;  %v6890_v42 = vld [vmem:[#allocation5 + $0xec] ss:$16 sps:$4 sm:$0xff]  }
 0x128   :  { %3951 = vmatprep.subr.bf16.mxu1 %v6857_v46  ;;  %v957_v46 = vsub.s32 1, %v7803_v25  ;;  %v954_v50 = vrot.slane %v949_v41, %v953_v37 }
 0x12a   :  { %3911 = vmatpush2.bf16.msra.mxu0 %v6852_v48  ;;  %v7809_v48 = vpack.c.b16 %v1048_v39, %v1048_v39  ;;  %v6935_v39 = vld [vmem:[#allocation5 + $0x20c] ss:$16 sps:$4 sm:$0xff]  }
 0x12b   :  { %3912 = vmatprep.subr.bf16.mxu0 %v6860_v51  ;;  %3952 = vmatpush2.bf16.msra.mxu1 %v6855_v52  ;;  %v6888_v51 = vld [vmem:[#allocation5 + $0xe8] ss:$16 sps:$4 sm:$0xff]   ;;  %v7813_v52 = vpack.c.b16 %v1050_v45, %v1050_v45  ;;  %v6941_v45 = vld [vmem:[#allocation5 + $0x3ec] ss:$16 sps:$4 sm:$0xff]  }
 0x12c   :  { %3953 = vmatprep.subr.bf16.mxu1 %v6863_v55  ;;  %v958_v55 = vrot.slane %v949_v41, %v957_v46  ;;  %v6930_v41 = vld [vmem:[#allocation5 + $0x8] ss:$16 sps:$4 sm:$0xff]  }
 0x12e   :  { %3913 = vmatpush2.bf16.msra.mxu0 %v6858_v58 }
 0x12f   :  { %3914 = vmatprep.subr.bf16.mxu0 %v6866_v63  ;;  %3954 = vmatpush2.bf16.msra.mxu1 %v6861_v0  ;;  %v6894_v63 = vld [vmem:[#allocation5 + $0xc8] ss:$16 sps:$4 sm:$0xff]  }
 0x130   :  { %3955 = vmatprep.subr.bf16.mxu1 %v6869_v3 }
 0x132   :  { %3915 = vmatpush2.bf16.msra.mxu0 %v6864_v4 }
 0x133   :  { %3916 = vmatprep.subr.bf16.mxu0 %v6872_v7  ;;  %3956 = vmatpush2.bf16.msra.mxu1 %v6867_v8  ;;  %v6905_v8 = vld [vmem:[#allocation5 + $0x2ac] ss:$16 sps:$4 sm:$0xff]  }
 0x134   :  { %3957 = vmatprep.subr.bf16.mxu1 %v6875_v11 }
 0x136   :  { %3917 = vmatpush2.bf16.msra.mxu0 %v6870_v12  ;;  %v6908_v12 = vld [vmem:[#allocation5 + $0x8c] ss:$16 sps:$4 sm:$0xff]  }
 0x137   :  { %3918 = vmatprep.subr.bf16.mxu0 %v6878_v16  ;;  %3958 = vmatpush2.bf16.msra.mxu1 %v6873_v18  ;;  %v6906_v16 = vld [vmem:[#allocation5 + $0x88] ss:$16 sps:$4 sm:$0xff]  }
 0x138   :  { %3959 = vmatprep.subr.bf16.mxu1 %v6881_v21  ;;  %v6909_v18 = vld [vmem:[#allocation5 + $0x288] ss:$16 sps:$4 sm:$0xff]   ;;  %v6920_v21 = vld [vmem:[#allocation5 + $0x4c] ss:$16 sps:$4 sm:$0xff]  }
 0x13a   :  { %3919 = vmatpush2.bf16.msra.mxu0 %v6876_v22  ;;  %v6915_v22 = vld [vmem:[#allocation5 + $0x268] ss:$16 sps:$4 sm:$0xff]  }
 0x13b   :  { %3920 = vmatprep.subr.bf16.mxu0 %v6884_v29  ;;  %3960 = vmatpush2.bf16.msra.mxu1 %v6879_v31  ;;  %v6926_v29 = vld [vmem:[#allocation5 + $0x2c] ss:$16 sps:$4 sm:$0xff]   ;;  %v6921_v31 = vld [vmem:[#allocation5 + $0x248] ss:$16 sps:$4 sm:$0xff]  }
 0x13c   :  { %3961 = vmatprep.subr.bf16.mxu1 %v6887_v34  ;;  %v6932_v34 = vld [vmem:[#allocation5 + $0xc] ss:$16 sps:$4 sm:$0xff]  }
 0x13e   :  { %3921 = vmatpush2.bf16.msra.mxu0 %v6882_v36  ;;  %v6927_v36 = vld [vmem:[#allocation5 + $0x228] ss:$16 sps:$4 sm:$0xff]  }
 0x13f   :  { %3972 = vmatprep.subr.bf16.mxu0 %v6890_v42  ;;  %3962 = vmatpush2.bf16.msra.mxu1 %v6885_v43  ;;  %v6938_v42 = vld [vmem:[#allocation5 + $0x1ec] ss:$16 sps:$4 sm:$0xff]   ;;  %v6933_v43 = vld [vmem:[#allocation5 + $0x208] ss:$16 sps:$4 sm:$0xff]  }
 0x140   :  { %4013 = vmatprep.subr.bf16.mxu1 %v6893_v49  ;;  %v6936_v49 = vld [vmem:[#allocation5 + $0x1e8] ss:$16 sps:$4 sm:$0xff]  }
 0x141   :  { %v3678_v58 = vpop.f32.mrf.mxu0  ;;  %3923 = vmatmul.mubr.bf16.vlgmr.msra.gmra.mxu0 %v7809_v48 }
 0x142   :  { %v3679_v60 = vadd.f32 %v3678_v58, %v954_v50  ;;  %3973 = vmatpush1.bf16.msra.mxu0 %v6888_v51  ;;  %4004 = vmatprep.mubr.bf16.mxu0 %v7748_v30  ;;  %v3719_v0 = vpop.f32.mrf.mxu1  ;;  %v6900_v30 = vld [vmem:[#allocation5 + $0xa8] ss:$16 sps:$4 sm:$0xff]   ;;  %v6944_v50 = vld [vmem:[#allocation5 + $0x1cc] ss:$16 sps:$4 sm:$0xff]  }
 0x143   :  { %3964 = vmatmul.mubr.bf16.vlgmr.msra.gmra.mxu1 %v7813_v52  ;;  %v3680_v1 = vpop.f32.mrf.mxu0  ;;  %3974 = vmatprep.subr.bf16.mxu0 %v6896_v53  ;;  %v6939_v51 = vld [vmem:[#allocation5 + $0x3e8] ss:$16 sps:$4 sm:$0xff]   ;;  %v6947_v53 = vld [vmem:[#allocation5 + $0x3cc] ss:$16 sps:$4 sm:$0xff]  }
 0x144   :  { %v7820_v3 = vadd.f32 %v3719_v0, %v3679_v60  ;;  %4014 = vmatpush1.bf16.msra.mxu1 %v6891_v54  ;;  %v3681_v4 = vadd.f32 %v3680_v1, %v958_v55  ;;  %4045 = vmatprep.mubr.bf16.mxu1 %v7752_v35  ;;  %v3721_v6 = vpop.f32.mrf.mxu1  ;;  %v6914_v35 = vld [vmem:[#allocation5 + $0x6c] ss:$16 sps:$4 sm:$0xff]   ;;  %v6942_v54 = vld [vmem:[#allocation5 + $0x1c8] ss:$16 sps:$4 sm:$0xff]  }
 0x145   :  { %v3682_v7 = vpop.f32.mrf.mxu0  ;;  %4015 = vmatprep.subr.bf16.mxu1 %v6899_v59  ;;  %v6950_v55 = vld [vmem:[#allocation5 + $0x1ac] ss:$16 sps:$4 sm:$0xff]   ;;  %v6945_v58 = vld [vmem:[#allocation5 + $0x3c8] ss:$16 sps:$4 sm:$0xff]  }
 0x146   :  { %v7823_v9 = vadd.f32 %v3721_v6, %v3681_v4  ;;  %3975 = vmatpush1.bf16.msra.mxu0 %v6894_v63  ;;  %v3723_v10 = vpop.f32.mrf.mxu1  ;;  %v6953_v59 = vld [vmem:[#allocation5 + $0x3ac] ss:$16 sps:$4 sm:$0xff]   ;;  %v6948_v60 = vld [vmem:[#allocation5 + $0x1a8] ss:$16 sps:$4 sm:$0xff]  }
 0x147   :  { %v3683_v11 = vpop.f32.mrf.mxu0  ;;  %3976 = vmatprep.subr.bf16.mxu0 %v6902_v2  ;;  %v6956_v63 = vld [vmem:[#allocation5 + $0x18c] ss:$16 sps:$4 sm:$0xff]   ;;  %v6951_v0 = vld [vmem:[#allocation5 + $0x3a8] ss:$16 sps:$4 sm:$0xff]  }
 0x148   :  { %4016 = vmatpush1.bf16.msra.mxu1 %v6897_v5  ;;  %v3724_v14 = vpop.f32.mrf.mxu1  ;;  %v6959_v1 = vld [vmem:[#allocation5 + $0x38c] ss:$16 sps:$4 sm:$0xff]   ;;  %v6954_v2 = vld [vmem:[#allocation5 + $0x188] ss:$16 sps:$4 sm:$0xff]  }
 0x149   :  { %4017 = vmatprep.subr.bf16.mxu1 %v6905_v8  ;;  %v6962_v4 = vld [vmem:[#allocation5 + $0x16c] ss:$16 sps:$4 sm:$0xff]   ;;  %v6957_v5 = vld [vmem:[#allocation5 + $0x388] ss:$16 sps:$4 sm:$0xff]  }
 0x14a   :  { %3977 = vmatpush1.bf16.msra.mxu0 %v6900_v30  ;;  %v6965_v6 = vld [vmem:[#allocation5 + $0x36c] ss:$16 sps:$4 sm:$0xff]   ;;  %v6960_v7 = vld [vmem:[#allocation5 + $0x168] ss:$16 sps:$4 sm:$0xff]  }
 0x14b   :  { %3978 = vmatprep.subr.bf16.mxu0 %v6908_v12  ;;  %v6968_v8 = vld [vmem:[#allocation5 + $0x14c] ss:$16 sps:$4 sm:$0xff]   ;;  %v6963_v30 = vld [vmem:[#allocation5 + $0x368] ss:$16 sps:$4 sm:$0xff]  }
 0x14c   :  { %4018 = vmatpush1.bf16.msra.mxu1 %v6903_v13  ;;  %v6971_v10 = vld [vmem:[#allocation5 + $0x34c] ss:$16 sps:$4 sm:$0xff]   ;;  %v6966_v11 = vld [vmem:[#allocation5 + $0x148] ss:$16 sps:$4 sm:$0xff]  }
 0x14d   :  { %4019 = vmatprep.subr.bf16.mxu1 %v6911_v15  ;;  %v6974_v12 = vld [vmem:[#allocation5 + $0x12c] ss:$16 sps:$4 sm:$0xff]   ;;  %v6969_v13 = vld [vmem:[#allocation5 + $0x348] ss:$16 sps:$4 sm:$0xff]  }
 0x14e   :  { %3979 = vmatpush1.bf16.msra.mxu0 %v6906_v16  ;;  %v6977_v14 = vld [vmem:[#allocation5 + $0x32c] ss:$16 sps:$4 sm:$0xff]   ;;  %v6972_v15 = vld [vmem:[#allocation5 + $0x128] ss:$16 sps:$4 sm:$0xff]  }
 0x14f   :  { %3980 = vmatprep.subr.bf16.mxu0 %v6914_v35  ;;  %v6980_v16 = vld [vmem:[#allocation5 + $0x10c] ss:$16 sps:$4 sm:$0xff]   ;;  %v6975_v35 = vld [vmem:[#allocation5 + $0x328] ss:$16 sps:$4 sm:$0xff]  }
 0x150   :  { %4020 = vmatpush1.bf16.msra.mxu1 %v6909_v18  ;;  %v6983_v18 = vld [vmem:[#allocation5 + $0x30c] ss:$16 sps:$4 sm:$0xff]  }
 0x151   :  { %4021 = vmatprep.subr.bf16.mxu1 %v6917_v19  ;;  %v6978_v19 = vld [vmem:[#allocation5 + $0x108] ss:$16 sps:$4 sm:$0xff]  }
 0x152   :  { %3981 = vmatpush1.bf16.msra.mxu0 %v6912_v20  ;;  %v6986_v20 = vld [vmem:[#allocation5 + $0x4ec] ss:$16 sps:$4 sm:$0xff]  }
 0x153   :  { %3982 = vmatprep.subr.bf16.mxu0 %v6920_v21  ;;  %v6981_v21 = vld [vmem:[#allocation5 + $0x308] ss:$16 sps:$4 sm:$0xff]  }
 0x154   :  { %4022 = vmatpush1.bf16.msra.mxu1 %v6915_v22  ;;  %v6989_v22 = vld [vmem:[#allocation5 + $0x6ec] ss:$16 sps:$4 sm:$0xff]  }
 0x155   :  { %4023 = vmatprep.subr.bf16.mxu1 %v6923_v27  ;;  %v6984_v27 = vld [vmem:[#allocation5 + $0x4e8] ss:$16 sps:$4 sm:$0xff]  }
 0x156   :  { %3983 = vmatpush1.bf16.msra.mxu0 %v6918_v28  ;;  %v6992_v28 = vld [vmem:[#allocation5 + $0x4cc] ss:$16 sps:$4 sm:$0xff]  }
 0x157   :  { %3984 = vmatprep.subr.bf16.mxu0 %v6926_v29  ;;  %v6987_v29 = vld [vmem:[#allocation5 + $0x6e8] ss:$16 sps:$4 sm:$0xff]  }
 0x158   :  { %4024 = vmatpush1.bf16.msra.mxu1 %v6921_v31 }
 0x159   :  { %4025 = vmatprep.subr.bf16.mxu1 %v6929_v32  ;;  %v6995_v32 = vld [vmem:[#allocation5 + $0x6cc] ss:$16 sps:$4 sm:$0xff]  }
 0x15a   :  { %3985 = vmatpush1.bf16.msra.mxu0 %v6924_v33 }
 0x15b   :  { %3986 = vmatprep.subr.bf16.mxu0 %v6932_v34  ;;  %v6990_v34 = vld [vmem:[#allocation5 + $0x4c8] ss:$16 sps:$4 sm:$0xff]  }
 0x15c   :  { %4026 = vmatpush1.bf16.msra.mxu1 %v6927_v36 }
 0x15d   :  { %4027 = vmatprep.subr.bf16.mxu1 %v6935_v39 }
 0x15e   :  { %3987 = vmatpush1.bf16.msra.mxu0 %v6930_v41  ;;  %v6993_v41 = vld [vmem:[#allocation5 + $0x6c8] ss:$16 sps:$4 sm:$0xff]  }
 0x15f   :  { %3988 = vmatprep.subr.bf16.mxu0 %v6938_v42  ;;  %v6998_v42 = vld [vmem:[#allocation5 + $0x4ac] ss:$16 sps:$4 sm:$0xff]  }
 0x160   :  { %4028 = vmatpush1.bf16.msra.mxu1 %v6933_v43 }
 0x161   :  { %4029 = vmatprep.subr.bf16.mxu1 %v6941_v45 }
 0x162   :  { %3989 = vmatpush2.bf16.msra.mxu0 %v6936_v49  ;;  %v6996_v49 = vld [vmem:[#allocation5 + $0x4a8] ss:$16 sps:$4 sm:$0xff]  }
 0x163   :  { %3990 = vmatprep.subr.bf16.mxu0 %v6944_v50  ;;  %v7001_v50 = vld [vmem:[#allocation5 + $0x6ac] ss:$16 sps:$4 sm:$0xff]  }
 0x164   :  { %4030 = vmatpush2.bf16.msra.mxu1 %v6939_v51  ;;  %v7004_v51 = vld [vmem:[#allocation5 + $0x48c] ss:$16 sps:$4 sm:$0xff]  }
 0x165   :  { %4031 = vmatprep.subr.bf16.mxu1 %v6947_v53 }
 0x166   :  { %3991 = vmatpush2.bf16.msra.mxu0 %v6942_v54 }
 0x167   :  { %3992 = vmatprep.subr.bf16.mxu0 %v6950_v55 }
 0x168   :  { %4032 = vmatpush2.bf16.msra.mxu1 %v6945_v58  ;;  %v7002_v58 = vld [vmem:[#allocation5 + $0x488] ss:$16 sps:$4 sm:$0xff]  }
 0x169   :  { %4033 = vmatprep.subr.bf16.mxu1 %v6953_v59  ;;  %v7005_v59 = vld [vmem:[#allocation5 + $0x688] ss:$16 sps:$4 sm:$0xff]  }
 0x16a   :  { %3993 = vmatpush2.bf16.msra.mxu0 %v6948_v60  ;;  %v7008_v60 = vld [vmem:[#allocation5 + $0x468] ss:$16 sps:$4 sm:$0xff]  }
 0x16b   :  { %3994 = vmatprep.subr.bf16.mxu0 %v6956_v63  ;;  %v7013_v63 = vld [vmem:[#allocation5 + $0x66c] ss:$16 sps:$4 sm:$0xff]  }
 0x16c   :  { %4034 = vmatpush2.bf16.msra.mxu1 %v6951_v0  ;;  %v7016_v0 = vld [vmem:[#allocation5 + $0x44c] ss:$16 sps:$4 sm:$0xff]  }
 0x16d   :  { %4035 = vmatprep.subr.bf16.mxu1 %v6959_v1  ;;  %v7011_v1 = vld [vmem:[#allocation5 + $0x668] ss:$16 sps:$4 sm:$0xff]  }
 0x16e   :  { %3995 = vmatpush2.bf16.msra.mxu0 %v6954_v2  ;;  %v7014_v2 = vld [vmem:[#allocation5 + $0x448] ss:$16 sps:$4 sm:$0xff]  }
 0x16f   :  { %3996 = vmatprep.subr.bf16.mxu0 %v6962_v4  ;;  %v7019_v4 = vld [vmem:[#allocation5 + $0x64c] ss:$16 sps:$4 sm:$0xff]  }
 0x170   :  { %4036 = vmatpush2.bf16.msra.mxu1 %v6957_v5  ;;  %v7022_v5 = vld [vmem:[#allocation5 + $0x42c] ss:$16 sps:$4 sm:$0xff]  }
 0x171   :  { %4037 = vmatprep.subr.bf16.mxu1 %v6965_v6  ;;  %v7017_v6 = vld [vmem:[#allocation5 + $0x648] ss:$16 sps:$4 sm:$0xff]  }
 0x172   :  { %3997 = vmatpush2.bf16.msra.mxu0 %v6960_v7  ;;  %v7020_v7 = vld [vmem:[#allocation5 + $0x428] ss:$16 sps:$4 sm:$0xff]  }
 0x173   :  { %3998 = vmatprep.subr.bf16.mxu0 %v6968_v8  ;;  %v7025_v8 = vld [vmem:[#allocation5 + $0x62c] ss:$16 sps:$4 sm:$0xff]  }
 0x174   :  { %4038 = vmatpush2.bf16.msra.mxu1 %v6963_v30  ;;  %v7028_v30 = vld [vmem:[#allocation5 + $0x40c] ss:$16 sps:$4 sm:$0xff]  }
 0x175   :  { %4039 = vmatprep.subr.bf16.mxu1 %v6971_v10  ;;  %v7023_v10 = vld [vmem:[#allocation5 + $0x628] ss:$16 sps:$4 sm:$0xff]  }
 0x176   :  { %3999 = vmatpush2.bf16.msra.mxu0 %v6966_v11  ;;  %v7026_v11 = vld [vmem:[#allocation5 + $0x408] ss:$16 sps:$4 sm:$0xff]  }
 0x177   :  { %4000 = vmatprep.subr.bf16.mxu0 %v6974_v12  ;;  %v7031_v12 = vld [vmem:[#allocation5 + $0x60c] ss:$16 sps:$4 sm:$0xff]  }
 0x178   :  { %4040 = vmatpush2.bf16.msra.mxu1 %v6969_v13  ;;  %v7034_v13 = vld [vmem:[#allocation5 + $0x5ec] ss:$16 sps:$4 sm:$0xff]  }
 0x179   :  { %4041 = vmatprep.subr.bf16.mxu1 %v6977_v14  ;;  %v7029_v14 = vld [vmem:[#allocation5 + $0x608] ss:$16 sps:$4 sm:$0xff]  }
 0x17a   :  { %4001 = vmatpush2.bf16.msra.mxu0 %v6972_v15  ;;  %v7032_v15 = vld [vmem:[#allocation5 + $0x5e8] ss:$16 sps:$4 sm:$0xff]  }
 0x17b   :  { %4002 = vmatprep.subr.bf16.mxu0 %v6980_v16  ;;  %v7037_v16 = vld [vmem:[#allocation5 + $0x7ec] ss:$16 sps:$4 sm:$0xff]  }
 0x17c   :  { %4042 = vmatpush2.bf16.msra.mxu1 %v6975_v35  ;;  %v7040_v35 = vld [vmem:[#allocation5 + $0x5cc] ss:$16 sps:$4 sm:$0xff]  }
 0x17d   :  { %4043 = vmatprep.subr.bf16.mxu1 %v6983_v18  ;;  %v7035_v18 = vld [vmem:[#allocation5 + $0x7e8] ss:$16 sps:$4 sm:$0xff]  }
 0x17e   :  { %4003 = vmatpush2.bf16.msra.mxu0 %v6978_v19  ;;  %v7038_v19 = vld [vmem:[#allocation5 + $0x5c8] ss:$16 sps:$4 sm:$0xff]  }
 0x17f   :  { %4054 = vmatprep.subr.bf16.mxu0 %v6986_v20  ;;  %v7043_v20 = vld [vmem:[#allocation5 + $0x7cc] ss:$16 sps:$4 sm:$0xff]  }
 0x180   :  { %4044 = vmatpush2.bf16.msra.mxu1 %v6981_v21  ;;  %v7046_v21 = vld [vmem:[#allocation5 + $0x5ac] ss:$16 sps:$4 sm:$0xff]  }
 0x181   :  { %v3760_v31 = vpop.f32.mrf.mxu0  ;;  %4005 = vmatmul.mubr.bf16.vlgmr.msra.gmra.mxu0 %v7755_v40  ;;  %4095 = vmatprep.subr.bf16.mxu1 %v6989_v22  ;;  %v7041_v22 = vld [vmem:[#allocation5 + $0x7c8] ss:$16 sps:$4 sm:$0xff]  }
 0x182   :  { %v3761_v33 = vadd.f32 %v3760_v31, %v7820_v3  ;;  %4055 = vmatpush1.bf16.msra.mxu0 %v6984_v27  ;;  %4086 = vmatprep.mubr.bf16.mxu0 %v7764_v56  ;;  %v3801_v36 = vpop.f32.mrf.mxu1  ;;  %v7044_v27 = vld [vmem:[#allocation5 + $0x5a8] ss:$16 sps:$4 sm:$0xff]  }
 0x183   :  { %4046 = vmatmul.mubr.bf16.vlgmr.msra.gmra.mxu1 %v7760_v44  ;;  %v3762_v39 = vpop.f32.mrf.mxu0  ;;  %4056 = vmatprep.subr.bf16.mxu0 %v6992_v28  ;;  %v6999_v44 = vld [vmem:[#allocation5 + $0x6a8] ss:$16 sps:$4 sm:$0xff]   ;;  %v7049_v28 = vld [vmem:[#allocation5 + $0x7ac] ss:$16 sps:$4 sm:$0xff]  }
 0x184   :  { %v7829_v43 = vadd.f32 %v3801_v36, %v3761_v33  ;;  %4096 = vmatpush1.bf16.msra.mxu1 %v6987_v29  ;;  %v3763_v40 = vadd.f32 %v3762_v39, %v7823_v9  ;;  %4127 = vmatprep.mubr.bf16.mxu1 %v7767_v61  ;;  %v3803_v45 = vpop.f32.mrf.mxu1  ;;  %v7007_v9 = vld [vmem:[#allocation5 + $0x68c] ss:$16 sps:$4 sm:$0xff]   ;;  %v7047_v31 = vld [vmem:[#allocation5 + $0x7a8] ss:$16 sps:$4 sm:$0xff]  }
 0x185   :  { %v3764_v3 = vpop.f32.mrf.mxu0  ;;  %4097 = vmatprep.subr.bf16.mxu1 %v6995_v32  ;;  %v7010_v61 = vld [vmem:[#allocation5 + $0x46c] ss:$16 sps:$4 sm:$0xff]   ;;  %v7050_v32 = vld [vmem:[#allocation5 + $0x588] ss:$16 sps:$4 sm:$0xff]  }
 0x186   :  { %v7833_v56 = vadd.f32 %v3803_v45, %v3763_v40  ;;  %4057 = vmatpush1.bf16.msra.mxu0 %v6990_v34  ;;  %v3805_v53 = vpop.f32.mrf.mxu1  ;;  %v7052_v29 = vld [vmem:[#allocation5 + $0x58c] ss:$16 sps:$4 sm:$0xff]   ;;  %v7053_v36 = vld [vmem:[#allocation5 + $0x788] ss:$16 sps:$4 sm:$0xff]  }
 0x187   :  { %v3765_v54 = vpop.f32.mrf.mxu0  ;;  %4058 = vmatprep.subr.bf16.mxu0 %v6998_v42  ;;  %v7055_v33 = vld [vmem:[#allocation5 + $0x78c] ss:$16 sps:$4 sm:$0xff]   ;;  %v7056_v39 = vld [vmem:[#allocation5 + $0x568] ss:$16 sps:$4 sm:$0xff]  }
 0x188   :  { %4098 = vmatpush1.bf16.msra.mxu1 %v6993_v41  ;;  %v3806_v55 = vpop.f32.mrf.mxu1  ;;  %v7058_v34 = vld [vmem:[#allocation5 + $0x56c] ss:$16 sps:$4 sm:$0xff]   ;;  %v7059_v40 = vld [vmem:[#allocation5 + $0x768] ss:$16 sps:$4 sm:$0xff]  }
 0x189   :  { %4099 = vmatprep.subr.bf16.mxu1 %v7001_v50  ;;  %v7061_v41 = vld [vmem:[#allocation5 + $0x76c] ss:$16 sps:$4 sm:$0xff]   ;;  %v7062_v45 = vld [vmem:[#allocation5 + $0x548] ss:$16 sps:$4 sm:$0xff]  }
 0x18a   :  { %4059 = vmatpush1.bf16.msra.mxu0 %v6996_v49  ;;  %v7064_v42 = vld [vmem:[#allocation5 + $0x54c] ss:$16 sps:$4 sm:$0xff]   ;;  %v7065_v50 = vld [vmem:[#allocation5 + $0x748] ss:$16 sps:$4 sm:$0xff]  }
 0x18b   :  { %4060 = vmatprep.subr.bf16.mxu0 %v7004_v51  ;;  %v7067_v3 = vld [vmem:[#allocation5 + $0x74c] ss:$16 sps:$4 sm:$0xff]   ;;  %v7071_v54 = vld [vmem:[#allocation5 + $0x728] ss:$16 sps:$4 sm:$0xff]  }
 0x18c   :  { %4100 = vmatpush1.bf16.msra.mxu1 %v6999_v44  ;;  %v7070_v49 = vld [vmem:[#allocation5 + $0x52c] ss:$16 sps:$4 sm:$0xff]   ;;  %v7068_v44 = vld [vmem:[#allocation5 + $0x528] ss:$16 sps:$4 sm:$0xff]  }
 0x18d   :  { %4101 = vmatprep.subr.bf16.mxu1 %v7007_v9  ;;  %v7073_v51 = vld [vmem:[#allocation5 + $0x72c] ss:$16 sps:$4 sm:$0xff]   ;;  %v7074_v55 = vld [vmem:[#allocation5 + $0x508] ss:$16 sps:$4 sm:$0xff]  }
 0x18e   :  { %4061 = vmatpush1.bf16.msra.mxu0 %v7002_v58  ;;  %v7076_v53 = vld [vmem:[#allocation5 + $0x50c] ss:$16 sps:$4 sm:$0xff]  }
 0x18f   :  { %4062 = vmatprep.subr.bf16.mxu0 %v7010_v61  ;;  %v7079_v58 = vld [vmem:[#allocation5 + $0x70c] ss:$16 sps:$4 sm:$0xff]   ;;  %v7077_v61 = vld [vmem:[#allocation5 + $0x708] ss:$16 sps:$4 sm:$0xff]  }
 0x190   :  { %4102 = vmatpush1.bf16.msra.mxu1 %v7005_v59  ;;  %v7082_v9 = vld [vmem:[#allocation5 + $0x8ec] ss:$16 sps:$4 sm:$0xff]   ;;  %v7080_v59 = vld [vmem:[#allocation5 + $0x8e8] ss:$16 sps:$4 sm:$0xff]  }
 0x191   :  { %4103 = vmatprep.subr.bf16.mxu1 %v7013_v63  ;;  %v7088_v63 = vld [vmem:[#allocation5 + $0x8cc] ss:$16 sps:$4 sm:$0xff]  }
 0x192   :  { %4063 = vmatpush1.bf16.msra.mxu0 %v7008_v60  ;;  %v7085_v60 = vld [vmem:[#allocation5 + $0xaec] ss:$16 sps:$4 sm:$0xff]  }
 0x193   :  { %4064 = vmatprep.subr.bf16.mxu0 %v7016_v0  ;;  %v7083_v0 = vld [vmem:[#allocation5 + $0xae8] ss:$16 sps:$4 sm:$0xff]  }
 0x194   :  { %4104 = vmatpush1.bf16.msra.mxu1 %v7011_v1  ;;  %v7086_v1 = vld [vmem:[#allocation5 + $0x8c8] ss:$16 sps:$4 sm:$0xff]  }
 0x195   :  { %4105 = vmatprep.subr.bf16.mxu1 %v7019_v4  ;;  %v7091_v4 = vld [vmem:[#allocation5 + $0xacc] ss:$16 sps:$4 sm:$0xff]  }
 0x196   :  { %4065 = vmatpush1.bf16.msra.mxu0 %v7014_v2 }
 0x197   :  { %4066 = vmatprep.subr.bf16.mxu0 %v7022_v5 }
 0x198   :  { %4106 = vmatpush1.bf16.msra.mxu1 %v7017_v6  ;;  %v7089_v6 = vld [vmem:[#allocation5 + $0xac8] ss:$16 sps:$4 sm:$0xff]  }
 0x199   :  { %4107 = vmatprep.subr.bf16.mxu1 %v7025_v8 }
 0x19a   :  { %4067 = vmatpush1.bf16.msra.mxu0 %v7020_v7  ;;  %v7094_v7 = vld [vmem:[#allocation5 + $0x8ac] ss:$16 sps:$4 sm:$0xff]  }
 0x19b   :  { %4068 = vmatprep.subr.bf16.mxu0 %v7028_v30 }
 0x19c   :  { %4108 = vmatpush1.bf16.msra.mxu1 %v7023_v10 }
 0x19d   :  { %4109 = vmatprep.subr.bf16.mxu1 %v7031_v12 }
 0x19e   :  { %4069 = vmatpush1.bf16.msra.mxu0 %v7026_v11 }
 0x19f   :  { %4070 = vmatprep.subr.bf16.mxu0 %v7034_v13  ;;  %v7097_v13 = vld [vmem:[#allocation5 + $0xaac] ss:$16 sps:$4 sm:$0xff]  }
 0x1a0   :  { %4110 = vmatpush1.bf16.msra.mxu1 %v7029_v14 }
 0x1a1   :  { %4111 = vmatprep.subr.bf16.mxu1 %v7037_v16 }
 0x1a2   :  { %4071 = vmatpush2.bf16.msra.mxu0 %v7032_v15  ;;  %v7100_v15 = vld [vmem:[#allocation5 + $0x88c] ss:$16 sps:$4 sm:$0xff]  }
 0x1a3   :  { %4072 = vmatprep.subr.bf16.mxu0 %v7040_v35 }
 0x1a4   :  { %4112 = vmatpush2.bf16.msra.mxu1 %v7035_v18  ;;  %v7098_v18 = vld [vmem:[#allocation5 + $0x888] ss:$16 sps:$4 sm:$0xff]  }
 0x1a5   :  { %4113 = vmatprep.subr.bf16.mxu1 %v7043_v20  ;;  %v7109_v20 = vld [vmem:[#allocation5 + $0xa6c] ss:$16 sps:$4 sm:$0xff]  }
 0x1a6   :  { %4073 = vmatpush2.bf16.msra.mxu0 %v7038_v19  ;;  %v7101_v19 = vld [vmem:[#allocation5 + $0xa88] ss:$16 sps:$4 sm:$0xff]  }
 0x1a7   :  { %4074 = vmatprep.subr.bf16.mxu0 %v7046_v21  ;;  %v7104_v21 = vld [vmem:[#allocation5 + $0x868] ss:$16 sps:$4 sm:$0xff]  }
 0x1a8   :  { %4114 = vmatpush2.bf16.msra.mxu1 %v7041_v22  ;;  %v7107_v22 = vld [vmem:[#allocation5 + $0xa68] ss:$16 sps:$4 sm:$0xff]  }
 0x1a9   :  { %4115 = vmatprep.subr.bf16.mxu1 %v7049_v28  ;;  %v7115_v28 = vld [vmem:[#allocation5 + $0xa4c] ss:$16 sps:$4 sm:$0xff]  }
 0x1aa   :  { %4075 = vmatpush2.bf16.msra.mxu0 %v7044_v27  ;;  %v7112_v27 = vld [vmem:[#allocation5 + $0x84c] ss:$16 sps:$4 sm:$0xff]  }
 0x1ab   :  { %4076 = vmatprep.subr.bf16.mxu0 %v7052_v29  ;;  %v7110_v29 = vld [vmem:[#allocation5 + $0x848] ss:$16 sps:$4 sm:$0xff]  }
 0x1ac   :  { %4116 = vmatpush2.bf16.msra.mxu1 %v7047_v31  ;;  %v7113_v31 = vld [vmem:[#allocation5 + $0xa48] ss:$16 sps:$4 sm:$0xff]  }
 0x1ad   :  { %4117 = vmatprep.subr.bf16.mxu1 %v7055_v33  ;;  %v7121_v33 = vld [vmem:[#allocation5 + $0xa2c] ss:$16 sps:$4 sm:$0xff]  }
 0x1ae   :  { %4077 = vmatpush2.bf16.msra.mxu0 %v7050_v32  ;;  %v7118_v32 = vld [vmem:[#allocation5 + $0x82c] ss:$16 sps:$4 sm:$0xff]  }
 0x1af   :  { %4078 = vmatprep.subr.bf16.mxu0 %v7058_v34  ;;  %v7116_v34 = vld [vmem:[#allocation5 + $0x828] ss:$16 sps:$4 sm:$0xff]  }
 0x1b0   :  { %4118 = vmatpush2.bf16.msra.mxu1 %v7053_v36  ;;  %v7119_v36 = vld [vmem:[#allocation5 + $0xa28] ss:$16 sps:$4 sm:$0xff]  }
 0x1b1   :  { %4119 = vmatprep.subr.bf16.mxu1 %v7061_v41  ;;  %v7127_v41 = vld [vmem:[#allocation5 + $0xa0c] ss:$16 sps:$4 sm:$0xff]  }
 0x1b2   :  { %4079 = vmatpush2.bf16.msra.mxu0 %v7056_v39  ;;  %v7124_v39 = vld [vmem:[#allocation5 + $0x80c] ss:$16 sps:$4 sm:$0xff]  }
 0x1b3   :  { %4080 = vmatprep.subr.bf16.mxu0 %v7064_v42  ;;  %v7122_v42 = vld [vmem:[#allocation5 + $0x808] ss:$16 sps:$4 sm:$0xff]  }
 0x1b4   :  { %4120 = vmatpush2.bf16.msra.mxu1 %v7059_v40  ;;  %v7125_v40 = vld [vmem:[#allocation5 + $0xa08] ss:$16 sps:$4 sm:$0xff]  }
 0x1b5   :  { %4121 = vmatprep.subr.bf16.mxu1 %v7067_v3  ;;  %v7133_v3 = vld [vmem:[#allocation5 + $0xbec] ss:$16 sps:$4 sm:$0xff]  }
 0x1b6   :  { %4081 = vmatpush2.bf16.msra.mxu0 %v7062_v45  ;;  %v7130_v45 = vld [vmem:[#allocation5 + $0x9ec] ss:$16 sps:$4 sm:$0xff]  }
 0x1b7   :  { %4082 = vmatprep.subr.bf16.mxu0 %v7070_v49  ;;  %v7128_v49 = vld [vmem:[#allocation5 + $0x9e8] ss:$16 sps:$4 sm:$0xff]  }
 0x1b8   :  { %4122 = vmatpush2.bf16.msra.mxu1 %v7065_v50  ;;  %v7131_v50 = vld [vmem:[#allocation5 + $0xbe8] ss:$16 sps:$4 sm:$0xff]  }
 0x1b9   :  { %4123 = vmatprep.subr.bf16.mxu1 %v7073_v51  ;;  %v7139_v51 = vld [vmem:[#allocation5 + $0xbcc] ss:$16 sps:$4 sm:$0xff]  }
 0x1ba   :  { %4083 = vmatpush2.bf16.msra.mxu0 %v7068_v44  ;;  %v7136_v44 = vld [vmem:[#allocation5 + $0x9cc] ss:$16 sps:$4 sm:$0xff]  }
 0x1bb   :  { %4084 = vmatprep.subr.bf16.mxu0 %v7076_v53  ;;  %v7134_v53 = vld [vmem:[#allocation5 + $0x9c8] ss:$16 sps:$4 sm:$0xff]  }
 0x1bc   :  { %4124 = vmatpush2.bf16.msra.mxu1 %v7071_v54  ;;  %v7137_v54 = vld [vmem:[#allocation5 + $0xbc8] ss:$16 sps:$4 sm:$0xff]  }
 0x1bd   :  { %4125 = vmatprep.subr.bf16.mxu1 %v7079_v58  ;;  %v7145_v58 = vld [vmem:[#allocation5 + $0xbac] ss:$16 sps:$4 sm:$0xff]  }
 0x1be   :  { %4085 = vmatpush2.bf16.msra.mxu0 %v7074_v55  ;;  %v7142_v55 = vld [vmem:[#allocation5 + $0x9ac] ss:$16 sps:$4 sm:$0xff]  }
 0x1bf   :  { %4136 = vmatprep.subr.bf16.mxu0 %v7082_v9  ;;  %v7140_v9 = vld [vmem:[#allocation5 + $0x9a8] ss:$16 sps:$4 sm:$0xff]  }
 0x1c0   :  { %4126 = vmatpush2.bf16.msra.mxu1 %v7077_v61  ;;  %v7143_v61 = vld [vmem:[#allocation5 + $0xba8] ss:$16 sps:$4 sm:$0xff]  }
 0x1c1   :  { %v3842_v2 = vpop.f32.mrf.mxu0  ;;  %4087 = vmatmul.mubr.bf16.vlgmr.msra.gmra.mxu0 %v7773_v23  ;;  %4177 = vmatprep.subr.bf16.mxu1 %v7085_v60  ;;  %v7092_v23 = vld [vmem:[#allocation5 + $0x8a8] ss:$16 sps:$4 sm:$0xff]   ;;  %v7151_v60 = vld [vmem:[#allocation5 + $0xb8c] ss:$16 sps:$4 sm:$0xff]  }
 0x1c2   :  { %v3843_v5 = vadd.f32 %v3842_v2, %v7829_v43  ;;  %4137 = vmatpush1.bf16.msra.mxu0 %v7080_v59  ;;  %4168 = vmatprep.mubr.bf16.mxu0 %v7780_v17  ;;  %v3883_v8 = vpop.f32.mrf.mxu1  ;;  %v7095_v17 = vld [vmem:[#allocation5 + $0xaa8] ss:$16 sps:$4 sm:$0xff]   ;;  %v7148_v59 = vld [vmem:[#allocation5 + $0x98c] ss:$16 sps:$4 sm:$0xff]  }
 0x1c3   :  { %4128 = vmatmul.mubr.bf16.vlgmr.msra.gmra.mxu1 %v7775_v26  ;;  %v3844_v30 = vpop.f32.mrf.mxu0  ;;  %4138 = vmatprep.subr.bf16.mxu0 %v7088_v63  ;;  %v7146_v63 = vld [vmem:[#allocation5 + $0x988] ss:$16 sps:$4 sm:$0xff]   ;;  %v7157_v2 = vld [vmem:[#allocation5 + $0xb6c] ss:$16 sps:$4 sm:$0xff]  }
 0x1c4   :  { %v7839_v10 = vadd.f32 %v3883_v8, %v3843_v5  ;;  %4178 = vmatpush1.bf16.msra.mxu1 %v7083_v0  ;;  %v3845_v11 = vadd.f32 %v3844_v30, %v7833_v56  ;;  %4209 = vmatprep.mubr.bf16.mxu1 %v7784_v24  ;;  %v3885_v12 = vpop.f32.mrf.mxu1  ;;  %v7103_v56 = vld [vmem:[#allocation5 + $0xa8c] ss:$16 sps:$4 sm:$0xff]   ;;  %v7149_v0 = vld [vmem:[#allocation5 + $0xb88] ss:$16 sps:$4 sm:$0xff]  }
 0x1c5   :  { %v3846_v43 = vpop.f32.mrf.mxu0  ;;  %4179 = vmatprep.subr.bf16.mxu1 %v7091_v4  ;;  %v7106_v24 = vld [vmem:[#allocation5 + $0x86c] ss:$16 sps:$4 sm:$0xff]   ;;  %v7152_v4 = vld [vmem:[#allocation5 + $0x968] ss:$16 sps:$4 sm:$0xff]  }
 0x1c6   :  { %v7843_v14 = vadd.f32 %v3885_v12, %v3845_v11  ;;  %4139 = vmatpush1.bf16.msra.mxu0 %v7086_v1  ;;  %v3887_v26 = vpop.f32.mrf.mxu1  ;;  %v7154_v1 = vld [vmem:[#allocation5 + $0x96c] ss:$16 sps:$4 sm:$0xff]   ;;  %v7155_v5 = vld [vmem:[#allocation5 + $0xb68] ss:$16 sps:$4 sm:$0xff]  }
 0x1c7   :  { %v3847_v16 = vpop.f32.mrf.mxu0  ;;  %4140 = vmatprep.subr.bf16.mxu0 %v7094_v7  ;;  %v7163_v7 = vld [vmem:[#allocation5 + $0xb4c] ss:$16 sps:$4 sm:$0xff]   ;;  %v7158_v8 = vld [vmem:[#allocation5 + $0x948] ss:$16 sps:$4 sm:$0xff]  }
 0x1c8   :  { %4180 = vmatpush1.bf16.msra.mxu1 %v7089_v6  ;;  %v3888_v35 = vpop.f32.mrf.mxu1  ;;  %v7160_v6 = vld [vmem:[#allocation5 + $0x94c] ss:$16 sps:$4 sm:$0xff]   ;;  %v7161_v30 = vld [vmem:[#allocation5 + $0xb48] ss:$16 sps:$4 sm:$0xff]  }
 0x1c9   :  { %4181 = vmatprep.subr.bf16.mxu1 %v7097_v13  ;;  %v7166_v11 = vld [vmem:[#allocation5 + $0x92c] ss:$16 sps:$4 sm:$0xff]   ;;  %v7164_v12 = vld [vmem:[#allocation5 + $0x928] ss:$16 sps:$4 sm:$0xff]  }
 0x1ca   :  { %4141 = vmatpush1.bf16.msra.mxu0 %v7092_v23  ;;  %v7169_v23 = vld [vmem:[#allocation5 + $0xb2c] ss:$16 sps:$4 sm:$0xff]   ;;  %v7167_v13 = vld [vmem:[#allocation5 + $0xb28] ss:$16 sps:$4 sm:$0xff]  }
 0x1cb   :  { %4142 = vmatprep.subr.bf16.mxu0 %v7100_v15  ;;  %v7172_v43 = vld [vmem:[#allocation5 + $0x90c] ss:$16 sps:$4 sm:$0xff]   ;;  %v7170_v15 = vld [vmem:[#allocation5 + $0x908] ss:$16 sps:$4 sm:$0xff]  }
 0x1cc   :  { %4182 = vmatpush1.bf16.msra.mxu1 %v7095_v17  ;;  %v7175_v17 = vld [vmem:[#allocation5 + $0xb0c] ss:$16 sps:$4 sm:$0xff]   ;;  %v7173_v16 = vld [vmem:[#allocation5 + $0xb08] ss:$16 sps:$4 sm:$0xff]  }
 0x1cd   :  { %4183 = vmatprep.subr.bf16.mxu1 %v7103_v56  ;;  %v7178_v26 = vld [vmem:[#allocation5 + $0xcec] ss:$16 sps:$4 sm:$0xff]  }
 0x1ce   :  { %4143 = vmatpush1.bf16.msra.mxu0 %v7098_v18  ;;  %v7181_v35 = vld [vmem:[#allocation5 + $0xeec] ss:$16 sps:$4 sm:$0xff]   ;;  %v7176_v18 = vld [vmem:[#allocation5 + $0xce8] ss:$16 sps:$4 sm:$0xff]  }
 0x1cf   :  { %4144 = vmatprep.subr.bf16.mxu0 %v7106_v24  ;;  %v7184_v56 = vld [vmem:[#allocation5 + $0xccc] ss:$16 sps:$4 sm:$0xff]  }
 0x1d0   :  { %4184 = vmatpush1.bf16.msra.mxu1 %v7101_v19  ;;  %v7179_v19 = vld [vmem:[#allocation5 + $0xee8] ss:$16 sps:$4 sm:$0xff]  }
 0x1d1   :  { %4185 = vmatprep.subr.bf16.mxu1 %v7109_v20  ;;  %v7187_v20 = vld [vmem:[#allocation5 + $0xecc] ss:$16 sps:$4 sm:$0xff]  }
 0x1d2   :  { %4145 = vmatpush1.bf16.msra.mxu0 %v7104_v21 }
 0x1d3   :  { %4146 = vmatprep.subr.bf16.mxu0 %v7112_v27 }
 0x1d4   :  { %4186 = vmatpush1.bf16.msra.mxu1 %v7107_v22  ;;  %v7182_v22 = vld [vmem:[#allocation5 + $0xcc8] ss:$16 sps:$4 sm:$0xff]  }
 0x1d5   :  { %4187 = vmatprep.subr.bf16.mxu1 %v7115_v28 }
 0x1d6   :  { %4147 = vmatpush1.bf16.msra.mxu0 %v7110_v29  ;;  %v7190_v29 = vld [vmem:[#allocation5 + $0xcac] ss:$16 sps:$4 sm:$0xff]  }
 0x1d7   :  { %4148 = vmatprep.subr.bf16.mxu0 %v7118_v32  ;;  %v7185_v32 = vld [vmem:[#allocation5 + $0xec8] ss:$16 sps:$4 sm:$0xff]  }
 0x1d8   :  { %4188 = vmatpush1.bf16.msra.mxu1 %v7113_v31 }
 0x1d9   :  { %4189 = vmatprep.subr.bf16.mxu1 %v7121_v33  ;;  %v7193_v33 = vld [vmem:[#allocation5 + $0xeac] ss:$16 sps:$4 sm:$0xff]  }
 0x1da   :  { %4149 = vmatpush1.bf16.msra.mxu0 %v7116_v34 }
 0x1db   :  { %4150 = vmatprep.subr.bf16.mxu0 %v7124_v39  ;;  %v7191_v39 = vld [vmem:[#allocation5 + $0xea8] ss:$16 sps:$4 sm:$0xff]  }
 0x1dc   :  { %4190 = vmatpush1.bf16.msra.mxu1 %v7119_v36 }
 0x1dd   :  { %4191 = vmatprep.subr.bf16.mxu1 %v7127_v41 }
 0x1de   :  { %4151 = vmatpush1.bf16.msra.mxu0 %v7122_v42  ;;  %v7199_v42 = vld [vmem:[#allocation5 + $0xe8c] ss:$16 sps:$4 sm:$0xff]  }
 0x1df   :  { %4152 = vmatprep.subr.bf16.mxu0 %v7130_v45  ;;  %v7197_v45 = vld [vmem:[#allocation5 + $0xe88] ss:$16 sps:$4 sm:$0xff]  }
 0x1e0   :  { %4192 = vmatpush1.bf16.msra.mxu1 %v7125_v40  ;;  %v7194_v40 = vld [vmem:[#allocation5 + $0xc88] ss:$16 sps:$4 sm:$0xff]  }
 0x1e1   :  { %4193 = vmatprep.subr.bf16.mxu1 %v7133_v3  ;;  %v7205_v3 = vld [vmem:[#allocation5 + $0xe6c] ss:$16 sps:$4 sm:$0xff]  }
 0x1e2   :  { %4153 = vmatpush2.bf16.msra.mxu0 %v7128_v49  ;;  %v7200_v49 = vld [vmem:[#allocation5 + $0xc68] ss:$16 sps:$4 sm:$0xff]  }
 0x1e3   :  { %4154 = vmatprep.subr.bf16.mxu0 %v7136_v44  ;;  %v7203_v44 = vld [vmem:[#allocation5 + $0xe68] ss:$16 sps:$4 sm:$0xff]  }
 0x1e4   :  { %4194 = vmatpush2.bf16.msra.mxu1 %v7131_v50  ;;  %v7208_v50 = vld [vmem:[#allocation5 + $0xc4c] ss:$16 sps:$4 sm:$0xff]  }
 0x1e5   :  { %4195 = vmatprep.subr.bf16.mxu1 %v7139_v51  ;;  %v7211_v51 = vld [vmem:[#allocation5 + $0xe4c] ss:$16 sps:$4 sm:$0xff]  }
 0x1e6   :  { %4155 = vmatpush2.bf16.msra.mxu0 %v7134_v53  ;;  %v7206_v53 = vld [vmem:[#allocation5 + $0xc48] ss:$16 sps:$4 sm:$0xff]  }
 0x1e7   :  { %4156 = vmatprep.subr.bf16.mxu0 %v7142_v55  ;;  %v7209_v55 = vld [vmem:[#allocation5 + $0xe48] ss:$16 sps:$4 sm:$0xff]  }
 0x1e8   :  { %4196 = vmatpush2.bf16.msra.mxu1 %v7137_v54  ;;  %v7214_v54 = vld [vmem:[#allocation5 + $0xc2c] ss:$16 sps:$4 sm:$0xff]  }
 0x1e9   :  { %4197 = vmatprep.subr.bf16.mxu1 %v7145_v58  ;;  %v7217_v58 = vld [vmem:[#allocation5 + $0xe2c] ss:$16 sps:$4 sm:$0xff]  }
 0x1ea   :  { %4157 = vmatpush2.bf16.msra.mxu0 %v7140_v9  ;;  %v7212_v9 = vld [vmem:[#allocation5 + $0xc28] ss:$16 sps:$4 sm:$0xff]  }
 0x1eb   :  { %4158 = vmatprep.subr.bf16.mxu0 %v7148_v59  ;;  %v7215_v59 = vld [vmem:[#allocation5 + $0xe28] ss:$16 sps:$4 sm:$0xff]  }
 0x1ec   :  { %4198 = vmatpush2.bf16.msra.mxu1 %v7143_v61  ;;  %v7220_v61 = vld [vmem:[#allocation5 + $0xc0c] ss:$16 sps:$4 sm:$0xff]  }
 0x1ed   :  { %4199 = vmatprep.subr.bf16.mxu1 %v7151_v60  ;;  %v7223_v60 = vld [vmem:[#allocation5 + $0xe0c] ss:$16 sps:$4 sm:$0xff]  }
 0x1ee   :  { %4159 = vmatpush2.bf16.msra.mxu0 %v7146_v63  ;;  %v7218_v63 = vld [vmem:[#allocation5 + $0xc08] ss:$16 sps:$4 sm:$0xff]  }
 0x1ef   :  { %4160 = vmatprep.subr.bf16.mxu0 %v7154_v1  ;;  %v7221_v1 = vld [vmem:[#allocation5 + $0xe08] ss:$16 sps:$4 sm:$0xff]  }
 0x1f0   :  { %4200 = vmatpush2.bf16.msra.mxu1 %v7149_v0  ;;  %v7226_v0 = vld [vmem:[#allocation5 + $0xdec] ss:$16 sps:$4 sm:$0xff]  }
 0x1f1   :  { %4201 = vmatprep.subr.bf16.mxu1 %v7157_v2  ;;  %v7229_v2 = vld [vmem:[#allocation5 + $0xfec] ss:$16 sps:$4 sm:$0xff]  }
 0x1f2   :  { %4161 = vmatpush2.bf16.msra.mxu0 %v7152_v4  ;;  %v7224_v4 = vld [vmem:[#allocation5 + $0xde8] ss:$16 sps:$4 sm:$0xff]  }
 0x1f3   :  { %4162 = vmatprep.subr.bf16.mxu0 %v7160_v6  ;;  %v7227_v6 = vld [vmem:[#allocation5 + $0xfe8] ss:$16 sps:$4 sm:$0xff]  }
 0x1f4   :  { %4202 = vmatpush2.bf16.msra.mxu1 %v7155_v5  ;;  %v7232_v5 = vld [vmem:[#allocation5 + $0xdcc] ss:$16 sps:$4 sm:$0xff]  }
 0x1f5   :  { %4203 = vmatprep.subr.bf16.mxu1 %v7163_v7  ;;  %v7235_v7 = vld [vmem:[#allocation5 + $0xfcc] ss:$16 sps:$4 sm:$0xff]  }
 0x1f6   :  { %4163 = vmatpush2.bf16.msra.mxu0 %v7158_v8  ;;  %v7230_v8 = vld [vmem:[#allocation5 + $0xdc8] ss:$16 sps:$4 sm:$0xff]  }
 0x1f7   :  { %4164 = vmatprep.subr.bf16.mxu0 %v7166_v11  ;;  %v7233_v11 = vld [vmem:[#allocation5 + $0xfc8] ss:$16 sps:$4 sm:$0xff]  }
 0x1f8   :  { %4204 = vmatpush2.bf16.msra.mxu1 %v7161_v30  ;;  %v7238_v30 = vld [vmem:[#allocation5 + $0xdac] ss:$16 sps:$4 sm:$0xff]  }
 0x1f9   :  { %4205 = vmatprep.subr.bf16.mxu1 %v7169_v23  ;;  %v7241_v23 = vld [vmem:[#allocation5 + $0xfac] ss:$16 sps:$4 sm:$0xff]  }
 0x1fa   :  { %4165 = vmatpush2.bf16.msra.mxu0 %v7164_v12  ;;  %v7236_v12 = vld [vmem:[#allocation5 + $0xda8] ss:$16 sps:$4 sm:$0xff]  }
 0x1fb   :  { %4166 = vmatprep.subr.bf16.mxu0 %v7172_v43  ;;  %v7244_v43 = vld [vmem:[#allocation5 + $0xd8c] ss:$16 sps:$4 sm:$0xff]  }
 0x1fc   :  { %4206 = vmatpush2.bf16.msra.mxu1 %v7167_v13  ;;  %v7239_v13 = vld [vmem:[#allocation5 + $0xfa8] ss:$16 sps:$4 sm:$0xff]  }
 0x1fd   :  { %4207 = vmatprep.subr.bf16.mxu1 %v7175_v17  ;;  %v7247_v17 = vld [vmem:[#allocation5 + $0xf8c] ss:$16 sps:$4 sm:$0xff]  }
 0x1fe   :  { %4167 = vmatpush2.bf16.msra.mxu0 %v7170_v15  ;;  %v7242_v15 = vld [vmem:[#allocation5 + $0xd88] ss:$16 sps:$4 sm:$0xff]  }
 0x1ff   :  { %4218 = vmatprep.subr.bf16.mxu0 %v7178_v26  ;;  %v7250_v26 = vld [vmem:[#allocation5 + $0xd6c] ss:$16 sps:$4 sm:$0xff]  }
 0x200   :  { %4208 = vmatpush2.bf16.msra.mxu1 %v7173_v16  ;;  %v7245_v16 = vld [vmem:[#allocation5 + $0xf88] ss:$16 sps:$4 sm:$0xff]  }
 0x201   :  { %v3924_v24 = vpop.f32.mrf.mxu0  ;;  %4169 = vmatmul.mubr.bf16.vlgmr.msra.gmra.mxu0 %v7789_v38  ;;  %4259 = vmatprep.subr.bf16.mxu1 %v7181_v35  ;;  %v7253_v35 = vld [vmem:[#allocation5 + $0xf6c] ss:$16 sps:$4 sm:$0xff]  }
 0x202   :  { %v3925_v21 = vadd.f32 %v3924_v24, %v7839_v10  ;;  %4219 = vmatpush1.bf16.msra.mxu0 %v7176_v18  ;;  %4250 = vmatprep.mubr.bf16.mxu0 %v7796_v57  ;;  %v7188_v57 = vld [vmem:[#allocation5 + $0xca8] ss:$16 sps:$4 sm:$0xff]   ;;  %v7259_v24 = vld [vmem:[#allocation5 + $0xf4c] ss:$16 sps:$4 sm:$0xff]  }
 0x203   :  { %v3965_v27 = vpop.f32.mrf.mxu1  ;;  %4210 = vmatmul.mubr.bf16.vlgmr.msra.gmra.mxu1 %v7791_v47  ;;  %v7849_v28 = vpop.f32.mrf.mxu0  ;;  %4220 = vmatprep.subr.bf16.mxu0 %v7184_v56  ;;  %v7196_v47 = vld [vmem:[#allocation5 + $0xc8c] ss:$16 sps:$4 sm:$0xff]   ;;  %v7248_v18 = vld [vmem:[#allocation5 + $0xd68] ss:$16 sps:$4 sm:$0xff]  }
 0x204   :  { %v7851_v31 = vadd.f32 %v3965_v27, %v3925_v21  ;;  %4260 = vmatpush1.bf16.msra.mxu1 %v7179_v19  ;;  %4291 = vmatprep.mubr.bf16.mxu1 %v7799_v62  ;;  %v7202_v62 = vld [vmem:[#allocation5 + $0xc6c] ss:$16 sps:$4 sm:$0xff]   ;;  %v7251_v19 = vld [vmem:[#allocation5 + $0xf68] ss:$16 sps:$4 sm:$0xff]  }
 0x205   :  { %v7854_v38 = vpop.f32.mrf.mxu1  ;;  %v3928_v10 = vpop.f32.mrf.mxu0  ;;  %4261 = vmatprep.subr.bf16.mxu1 %v7187_v20  ;;  %v7256_v56 = vld [vmem:[#allocation5 + $0xd4c] ss:$16 sps:$4 sm:$0xff]   ;;  %v7254_v20 = vld [vmem:[#allocation5 + $0xd48] ss:$16 sps:$4 sm:$0xff]  }
 0x206   :  { %4221 = vmatpush1.bf16.msra.mxu0 %v7182_v22  ;;  %v7262_v21 = vld [vmem:[#allocation5 + $0xd2c] ss:$16 sps:$4 sm:$0xff]   ;;  %v7257_v22 = vld [vmem:[#allocation5 + $0xf48] ss:$16 sps:$4 sm:$0xff]   ;;  %v3927_v10 = vadd.f32 %v7849_v28, %v7843_v14 }
 0x207   :  { %v3969_v34 = vpop.f32.mrf.mxu1  ;;  %v3929_v36 = vpop.f32.mrf.mxu0  ;;  %4222 = vmatprep.subr.bf16.mxu0 %v7190_v29  ;;  %v7265_v27 = vld [vmem:[#allocation5 + $0xf2c] ss:$16 sps:$4 sm:$0xff]   ;;  %v7260_v29 = vld [vmem:[#allocation5 + $0xd28] ss:$16 sps:$4 sm:$0xff]  }
 0x208   :  { %4262 = vmatpush1.bf16.msra.mxu1 %v7185_v32  ;;  %v7268_v32 = vld [vmem:[#allocation5 + $0xd0c] ss:$16 sps:$4 sm:$0xff]   ;;  %v7266_v34 = vld [vmem:[#allocation5 + $0xd08] ss:$16 sps:$4 sm:$0xff]   ;;  %v961_v36 = vsub.s32 2, %v7803_v25 }
 0x209   :  { %v3970_v41 = vpop.f32.mrf.mxu1  ;;  %4263 = vmatprep.subr.bf16.mxu1 %v7193_v33  ;;  %v7263_v33 = vld [vmem:[#allocation5 + $0xf28] ss:$16 sps:$4 sm:$0xff]   ;;  %v7272_v28 = vld [vmem:[#allocation8 + $0x150] ss:$24 sps:$4 sm:$0xff]  }
 0x20a   :  { %4223 = vmatpush1.bf16.msra.mxu0 %v7188_v57  ;;  %v7271_v57 = vld [vmem:[#allocation5 + $0xf0c] ss:$16 sps:$4 sm:$0xff]   ;;  %v7269_v41 = vld [vmem:[#allocation5 + $0xf08] ss:$16 sps:$4 sm:$0xff]  }
 0x20b   :  { %4224 = vmatprep.subr.bf16.mxu0 %v7196_v47  ;;  %v7274_v47 = vld [vmem:[#allocation8 + $0x154] ss:$24 sps:$4 sm:$0xff]  }
 0x20c   :  { %4264 = vmatpush1.bf16.msra.mxu1 %v7191_v39  ;;  %v3968_v39 = vadd.f32 %v7854_v38, %v3927_v10  ;;  %v7419_v10 = vld [vmem:[#allocation8 + $0x300] ss:$24 sps:$4 sm:$0xff]  }
 0x20d   :  { %4265 = vmatprep.subr.bf16.mxu1 %v7199_v42  ;;  %v965_v42 = vsub.s32 3, %v7803_v25 }
 0x20e   :  { %4225 = vmatpush1.bf16.msra.mxu0 %v7194_v40  ;;  %v7560_v40 = vld [vmem:[#allocation7] sm:$0xf] }
 0x20f   :  { %4226 = vmatprep.subr.bf16.mxu0 %v7202_v62  ;;  %v962_v14 = vrot.slane %v7560_v40, %v961_v36  ;;  %v7277_v62 = vld [vmem:[#allocation8 + $0x124] ss:$24 sps:$4 sm:$0xff]  }
 0x210   :  { %4266 = vmatpush1.bf16.msra.mxu1 %v7197_v45  ;;  %v7863_v45 = vpack.c.bf16 %v3968_v39, %v3968_v39  ;;  %v7305_v39 = vld [vmem:[#allocation8 + $0x240] ss:$24 sps:$4 sm:$0xff]  }
 0x211   :  { %4267 = vmatprep.subr.bf16.mxu1 %v7205_v3  ;;  %v966_v3 = vrot.slane %v7560_v40, %v965_v42  ;;  %v7433_v40 = vld [vmem:[#allocation8 + $0x5a4] ss:$24 sps:$4 sm:$0xff]  }
 0x212   :  { %4227 = vmatpush1.bf16.msra.mxu0 %v7200_v49 }
 0x213   :  { %4228 = vmatprep.subr.bf16.mxu0 %v7208_v50  ;;  %v7275_v50 = vld [vmem:[#allocation8 + $0x120] ss:$24 sps:$4 sm:$0xff]  }
 0x214   :  { %4268 = vmatpush1.bf16.msra.mxu1 %v7203_v44 }
 0x215   :  { %4269 = vmatprep.subr.bf16.mxu1 %v7211_v51 }
 0x216   :  { %4229 = vmatpush1.bf16.msra.mxu0 %v7206_v53  ;;  %v7280_v53 = vld [vmem:[#allocation8 + $0xf4] ss:$24 sps:$4 sm:$0xff]  }
 0x217   :  { %4230 = vmatprep.subr.bf16.mxu0 %v7214_v54 }
 0x218   :  { %4270 = vmatpush1.bf16.msra.mxu1 %v7209_v55 }
 0x219   :  { %4271 = vmatprep.subr.bf16.mxu1 %v7217_v58 }
 0x21a   :  { %4231 = vmatpush1.bf16.msra.mxu0 %v7212_v9 }
 0x21b   :  { %4232 = vmatprep.subr.bf16.mxu0 %v7220_v61 }
 0x21c   :  { %4272 = vmatpush1.bf16.msra.mxu1 %v7215_v59 }
 0x21d   :  { %4273 = vmatprep.subr.bf16.mxu1 %v7223_v60 }
 0x21e   :  { %4233 = vmatpush1.bf16.msra.mxu0 %v7218_v63  ;;  %v7283_v63 = vld [vmem:[#allocation8 + $0xc4] ss:$24 sps:$4 sm:$0xff]  }
 0x21f   :  { %4234 = vmatprep.subr.bf16.mxu0 %v7226_v0 }
 0x220   :  { %4274 = vmatpush1.bf16.msra.mxu1 %v7221_v1  ;;  %v7377_v1 = vld [vmem:[#allocation8 + $0x450] ss:$24 sps:$4 sm:$0xff]  }
 0x221   :  { %4275 = vmatprep.subr.bf16.mxu1 %v7229_v2  ;;  %v7379_v2 = vld [vmem:[#allocation8 + $0x454] ss:$24 sps:$4 sm:$0xff]  }
 0x222   :  { %4235 = vmatpush2.bf16.msra.mxu0 %v7224_v4  ;;  %v7286_v4 = vld [vmem:[#allocation8 + $0x94] ss:$24 sps:$4 sm:$0xff]  }
 0x223   :  { %4236 = vmatprep.subr.bf16.mxu0 %v7232_v5  ;;  %v7385_v5 = vld [vmem:[#allocation8 + $0x424] ss:$24 sps:$4 sm:$0xff]  }
 0x224   :  { %4276 = vmatpush2.bf16.msra.mxu1 %v7227_v6  ;;  %v7383_v6 = vld [vmem:[#allocation8 + $0x420] ss:$24 sps:$4 sm:$0xff]  }
 0x225   :  { %4277 = vmatprep.subr.bf16.mxu1 %v7235_v7  ;;  %v7284_v7 = vld [vmem:[#allocation8 + $0x90] ss:$24 sps:$4 sm:$0xff]  }
 0x226   :  { %4237 = vmatpush2.bf16.msra.mxu0 %v7230_v8  ;;  %v7289_v8 = vld [vmem:[#allocation8 + $0x64] ss:$24 sps:$4 sm:$0xff]  }
 0x227   :  { %4238 = vmatprep.subr.bf16.mxu0 %v7238_v30  ;;  %v7391_v30 = vld [vmem:[#allocation8 + $0x3f4] ss:$24 sps:$4 sm:$0xff]  }
 0x228   :  { %4278 = vmatpush2.bf16.msra.mxu1 %v7233_v11  ;;  %v7389_v11 = vld [vmem:[#allocation8 + $0x3f0] ss:$24 sps:$4 sm:$0xff]  }
 0x229   :  { %4279 = vmatprep.subr.bf16.mxu1 %v7241_v23  ;;  %v7287_v23 = vld [vmem:[#allocation8 + $0x60] ss:$24 sps:$4 sm:$0xff]  }
 0x22a   :  { %4239 = vmatpush2.bf16.msra.mxu0 %v7236_v12  ;;  %v7292_v12 = vld [vmem:[#allocation8 + $0x34] ss:$24 sps:$4 sm:$0xff]  }
 0x22b   :  { %4240 = vmatprep.subr.bf16.mxu0 %v7244_v43  ;;  %v7397_v43 = vld [vmem:[#allocation8 + $0x3c4] ss:$24 sps:$4 sm:$0xff]  }
 0x22c   :  { %4280 = vmatpush2.bf16.msra.mxu1 %v7239_v13  ;;  %v7395_v13 = vld [vmem:[#allocation8 + $0x3c0] ss:$24 sps:$4 sm:$0xff]  }
 0x22d   :  { %4281 = vmatprep.subr.bf16.mxu1 %v7247_v17  ;;  %v7290_v17 = vld [vmem:[#allocation8 + $0x30] ss:$24 sps:$4 sm:$0xff]  }
 0x22e   :  { %4241 = vmatpush2.bf16.msra.mxu0 %v7242_v15  ;;  %v7295_v15 = vld [vmem:[#allocation8 + $0x4] ss:$24 sps:$4 sm:$0xff]  }
 0x22f   :  { %4242 = vmatprep.subr.bf16.mxu0 %v7250_v26  ;;  %v7403_v26 = vld [vmem:[#allocation8 + $0x394] ss:$24 sps:$4 sm:$0xff]  }
 0x230   :  { %4282 = vmatpush2.bf16.msra.mxu1 %v7245_v16  ;;  %v7401_v16 = vld [vmem:[#allocation8 + $0x390] ss:$24 sps:$4 sm:$0xff]  }
 0x231   :  { %4283 = vmatprep.subr.bf16.mxu1 %v7253_v35  ;;  %v7293_v35 = vld [vmem:[#allocation8] ss:$24 sps:$4 sm:$0xff]  }
 0x232   :  { %4243 = vmatpush2.bf16.msra.mxu0 %v7248_v18  ;;  %v7298_v18 = vld [vmem:[#allocation8 + $0x2d4] ss:$24 sps:$4 sm:$0xff]  }
 0x233   :  { %4244 = vmatprep.subr.bf16.mxu0 %v7256_v56  ;;  %v7409_v56 = vld [vmem:[#allocation8 + $0x364] ss:$24 sps:$4 sm:$0xff]  }
 0x234   :  { %4284 = vmatpush2.bf16.msra.mxu1 %v7251_v19  ;;  %v7407_v19 = vld [vmem:[#allocation8 + $0x360] ss:$24 sps:$4 sm:$0xff]  }
 0x235   :  { %4285 = vmatprep.subr.bf16.mxu1 %v7259_v24  ;;  %v7296_v24 = vld [vmem:[#allocation8 + $0x2d0] ss:$24 sps:$4 sm:$0xff]  }
 0x236   :  { %4245 = vmatpush2.bf16.msra.mxu0 %v7254_v20  ;;  %v7301_v20 = vld [vmem:[#allocation8 + $0x2a4] ss:$24 sps:$4 sm:$0xff]  }
 0x237   :  { %4246 = vmatprep.subr.bf16.mxu0 %v7262_v21  ;;  %v7415_v21 = vld [vmem:[#allocation8 + $0x334] ss:$24 sps:$4 sm:$0xff]  }
 0x238   :  { %4286 = vmatpush2.bf16.msra.mxu1 %v7257_v22  ;;  %v7413_v22 = vld [vmem:[#allocation8 + $0x330] ss:$24 sps:$4 sm:$0xff]  }
 0x239   :  { %4287 = vmatprep.subr.bf16.mxu1 %v7265_v27  ;;  %v7299_v27 = vld [vmem:[#allocation8 + $0x2a0] ss:$24 sps:$4 sm:$0xff]  }
 0x23a   :  { %4247 = vmatpush2.bf16.msra.mxu0 %v7260_v29  ;;  %v7304_v29 = vld [vmem:[#allocation8 + $0x274] ss:$24 sps:$4 sm:$0xff]  }
 0x23b   :  { %4248 = vmatprep.subr.bf16.mxu0 %v7268_v32  ;;  %v7421_v32 = vld [vmem:[#allocation8 + $0x304] ss:$24 sps:$4 sm:$0xff]  }
 0x23c   :  { %4288 = vmatpush2.bf16.msra.mxu1 %v7263_v33  ;;  %v7302_v33 = vld [vmem:[#allocation8 + $0x270] ss:$24 sps:$4 sm:$0xff]  }
 0x23d   :  { %4289 = vmatprep.subr.bf16.mxu1 %v7271_v57  ;;  %v7307_v57 = vld [vmem:[#allocation8 + $0x244] ss:$24 sps:$4 sm:$0xff]  }
 0x23e   :  { %4249 = vmatpush2.bf16.msra.mxu0 %v7266_v34  ;;  %v7427_v34 = vld [vmem:[#allocation8 + $0x5d4] ss:$24 sps:$4 sm:$0xff]  }
 0x23f   :  { %5488 = vmatprep.subr.bf16.mxu0 %v7274_v47  ;;  %v7425_v47 = vld [vmem:[#allocation8 + $0x5d0] ss:$24 sps:$4 sm:$0xff]  }
 0x240   :  { %4290 = vmatpush2.bf16.msra.mxu1 %v7269_v41  ;;  %v7310_v41 = vld [vmem:[#allocation8 + $0x214] ss:$24 sps:$4 sm:$0xff]  }
 0x241   :  { %v4006_v38 = vpop.f32.mrf.mxu0  ;;  %4251 = vmatmul.mubr.bf16.vlgmr.msra.gmra.mxu0 %v7809_v48  ;;  %v7278_v48 = vld [vmem:[#allocation8 + $0xf0] ss:$24 sps:$4 sm:$0xff]   ;;  %5529 = vmatprep.subr.bf16.mxu1 %v7379_v2 }
 0x242   :  { %v4007_v49 = vadd.f32 %v4006_v38, %v962_v14  ;;  %5489 = vmatpush1.bf16.msra.mxu0 %v7272_v28  ;;  %5520 = vmatprep.mubr.bf16.mxu0 %v7863_v45  ;;  %v7431_v14 = vld [vmem:[#allocation8 + $0x5a0] ss:$24 sps:$4 sm:$0xff]   ;;  %v7308_v28 = vld [vmem:[#allocation8 + $0x210] ss:$24 sps:$4 sm:$0xff]  }
 0x243   :  { %v4047_v44 = vpop.f32.mrf.mxu1  ;;  %4292 = vmatmul.mubr.bf16.vlgmr.msra.gmra.mxu1 %v7813_v52  ;;  %v4008_v51 = vpop.f32.mrf.mxu0  ;;  %5490 = vmatprep.subr.bf16.mxu0 %v7277_v62  ;;  %v7281_v52 = vld [vmem:[#allocation8 + $0xc0] ss:$24 sps:$4 sm:$0xff]   ;;  %v7313_v62 = vld [vmem:[#allocation8 + $0x1e4] ss:$24 sps:$4 sm:$0xff]   ;;  %v7437_v38 = vld [vmem:[#allocation8 + $0x570] ss:$24 sps:$4 sm:$0xff]  }
 0x244   :  { %v7870_v54 = vadd.f32 %v4047_v44, %v4007_v49  ;;  %v4009_v55 = vadd.f32 %v4008_v51, %v966_v3  ;;  %5530 = vmatpush1.bf16.msra.mxu1 %v7377_v1  ;;  %v7439_v3 = vld [vmem:[#allocation8 + $0x574] ss:$24 sps:$4 sm:$0xff]   ;;  %v7311_v49 = vld [vmem:[#allocation8 + $0x1e0] ss:$24 sps:$4 sm:$0xff]   ;;  %v7445_v44 = vld [vmem:[#allocation8 + $0x544] ss:$24 sps:$4 sm:$0xff]   ;;  %v7876_v1 = vpack.c.bf16 %v7851_v31, %v7851_v31 }
 0x245   :  { %v4049_v58 = vpop.f32.mrf.mxu1  ;;  %v4010_v9 = vpop.f32.mrf.mxu0  ;;  %5531 = vmatprep.subr.bf16.mxu1 %v7385_v5  ;;  %v7443_v51 = vld [vmem:[#allocation8 + $0x540] ss:$24 sps:$4 sm:$0xff]  }
 0x246   :  { %v7872_v61 = vadd.f32 %v4049_v58, %v4009_v55  ;;  %5491 = vmatpush1.bf16.msra.mxu0 %v7275_v50  ;;  %v7316_v50 = vld [vmem:[#allocation8 + $0x1b4] ss:$24 sps:$4 sm:$0xff]   ;;  %v7319_v55 = vld [vmem:[#allocation8 + $0x184] ss:$24 sps:$4 sm:$0xff]   ;;  %v7449_v9 = vld [vmem:[#allocation8 + $0x510] ss:$24 sps:$4 sm:$0xff]  }
 0x247   :  { %v4051_v59 = vpop.f32.mrf.mxu1  ;;  %v4011_v60 = vpop.f32.mrf.mxu0  ;;  %5492 = vmatprep.subr.bf16.mxu0 %v7280_v53  ;;  %v7314_v53 = vld [vmem:[#allocation8 + $0x1b0] ss:$24 sps:$4 sm:$0xff]   ;;  %v7451_v58 = vld [vmem:[#allocation8 + $0x514] ss:$24 sps:$4 sm:$0xff]  }
 0x248   :  { %5532 = vmatpush1.bf16.msra.mxu1 %v7383_v6  ;;  %v7322_v59 = vld [vmem:[#allocation8 + $0x15c] ss:$24 sps:$4 sm:$0xff]   ;;  %v7323_v5 = vld [vmem:[#allocation8 + $0x128] ss:$24 sps:$4 sm:$0xff]  }
 0x249   :  { %v4052_v0 = vpop.f32.mrf.mxu1  ;;  %5533 = vmatprep.subr.bf16.mxu1 %v7391_v30  ;;  %v7457_v60 = vld [vmem:[#allocation8 + $0x4e4] ss:$24 sps:$4 sm:$0xff]   ;;  %v7460_v6 = vld [vmem:[#allocation8 + $0x4b4] ss:$24 sps:$4 sm:$0xff]  }
 0x24a   :  { %5493 = vmatpush1.bf16.msra.mxu0 %v7278_v48  ;;  %v7317_v48 = vld [vmem:[#allocation8 + $0x180] ss:$24 sps:$4 sm:$0xff]   ;;  %v7328_v30 = vld [vmem:[#allocation8 + $0xfc] ss:$24 sps:$4 sm:$0xff]  }
 0x24b   :  { %5494 = vmatprep.subr.bf16.mxu0 %v7283_v63  ;;  %v7455_v63 = vld [vmem:[#allocation8 + $0x4e0] ss:$24 sps:$4 sm:$0xff]  }
 0x24c   :  { %5534 = vmatpush1.bf16.msra.mxu1 %v7389_v11  ;;  %v7320_v0 = vld [vmem:[#allocation8 + $0x158] ss:$24 sps:$4 sm:$0xff]  }
 0x24d   :  { %5535 = vmatprep.subr.bf16.mxu1 %v7397_v43  ;;  %v7458_v11 = vld [vmem:[#allocation8 + $0x4b0] ss:$24 sps:$4 sm:$0xff]  }
 0x24e   :  { %5495 = vmatpush1.bf16.msra.mxu0 %v7281_v52  ;;  %v7325_v52 = vld [vmem:[#allocation8 + $0x12c] ss:$24 sps:$4 sm:$0xff]  }
 0x24f   :  { %5496 = vmatprep.subr.bf16.mxu0 %v7286_v4 }
 0x250   :  { %5536 = vmatpush1.bf16.msra.mxu1 %v7395_v13 }
 0x251   :  { %5537 = vmatprep.subr.bf16.mxu1 %v7403_v26 }
 0x252   :  { %5497 = vmatpush1.bf16.msra.mxu0 %v7284_v7 }
 0x253   :  { %5498 = vmatprep.subr.bf16.mxu0 %v7289_v8 }
 0x254   :  { %5538 = vmatpush1.bf16.msra.mxu1 %v7401_v16  ;;  %v7331_v16 = vld [vmem:[#allocation8 + $0xcc] ss:$24 sps:$4 sm:$0xff]  }
 0x255   :  { %5539 = vmatprep.subr.bf16.mxu1 %v7409_v56  ;;  %v7329_v56 = vld [vmem:[#allocation8 + $0xc8] ss:$24 sps:$4 sm:$0xff]  }
 0x256   :  { %5499 = vmatpush1.bf16.msra.mxu0 %v7287_v23 }
 0x257   :  { %5500 = vmatprep.subr.bf16.mxu0 %v7292_v12 }
 0x258   :  { %5540 = vmatpush1.bf16.msra.mxu1 %v7407_v19  ;;  %v7334_v19 = vld [vmem:[#allocation8 + $0x9c] ss:$24 sps:$4 sm:$0xff]  }
 0x259   :  { %5541 = vmatprep.subr.bf16.mxu1 %v7415_v21  ;;  %v7335_v21 = vld [vmem:[#allocation8 + $0x68] ss:$24 sps:$4 sm:$0xff]  }
 0x25a   :  { %5501 = vmatpush1.bf16.msra.mxu0 %v7290_v17  ;;  %v7463_v17 = vld [vmem:[#allocation8 + $0x484] ss:$24 sps:$4 sm:$0xff]  }
 0x25b   :  { %5502 = vmatprep.subr.bf16.mxu0 %v7295_v15 }
 0x25c   :  { %5542 = vmatpush1.bf16.msra.mxu1 %v7413_v22  ;;  %v7340_v22 = vld [vmem:[#allocation8 + $0x3c] ss:$24 sps:$4 sm:$0xff]  }
 0x25d   :  { %5543 = vmatprep.subr.bf16.mxu1 %v7421_v32  ;;  %v7341_v32 = vld [vmem:[#allocation8 + $0x8] ss:$24 sps:$4 sm:$0xff]  }
 0x25e   :  { %5503 = vmatpush1.bf16.msra.mxu0 %v7293_v35  ;;  %v7461_v35 = vld [vmem:[#allocation8 + $0x480] ss:$24 sps:$4 sm:$0xff]  }
 0x25f   :  { %5504 = vmatprep.subr.bf16.mxu0 %v7298_v18 }
 0x260   :  { %5544 = vmatpush1.bf16.msra.mxu1 %v7419_v10  ;;  %v7346_v10 = vld [vmem:[#allocation8 + $0x2dc] ss:$24 sps:$4 sm:$0xff]  }
 0x261   :  { %5545 = vmatprep.subr.bf16.mxu1 %v7427_v34  ;;  %v7347_v34 = vld [vmem:[#allocation8 + $0x2a8] ss:$24 sps:$4 sm:$0xff]  }
 0x262   :  { %5505 = vmatpush2.bf16.msra.mxu0 %v7296_v24  ;;  %v7332_v24 = vld [vmem:[#allocation8 + $0x98] ss:$24 sps:$4 sm:$0xff]  }
 0x263   :  { %5506 = vmatprep.subr.bf16.mxu0 %v7301_v20  ;;  %v7337_v20 = vld [vmem:[#allocation8 + $0x6c] ss:$24 sps:$4 sm:$0xff]  }
 0x264   :  { %5546 = vmatpush2.bf16.msra.mxu1 %v7425_v47  ;;  %v7352_v47 = vld [vmem:[#allocation8 + $0x27c] ss:$24 sps:$4 sm:$0xff]  }
 0x265   :  { %5547 = vmatprep.subr.bf16.mxu1 %v7433_v40  ;;  %v7353_v40 = vld [vmem:[#allocation8 + $0x248] ss:$24 sps:$4 sm:$0xff]  }
 0x266   :  { %5507 = vmatpush2.bf16.msra.mxu0 %v7299_v27  ;;  %v7338_v27 = vld [vmem:[#allocation8 + $0x38] ss:$24 sps:$4 sm:$0xff]  }
 0x267   :  { %5508 = vmatprep.subr.bf16.mxu0 %v7304_v29  ;;  %v7343_v29 = vld [vmem:[#allocation8 + $0xc] ss:$24 sps:$4 sm:$0xff]  }
 0x268   :  { %5548 = vmatpush2.bf16.msra.mxu1 %v7431_v14  ;;  %v7358_v14 = vld [vmem:[#allocation8 + $0x21c] ss:$24 sps:$4 sm:$0xff]  }
 0x269   :  { %5549 = vmatprep.subr.bf16.mxu1 %v7439_v3  ;;  %v7359_v3 = vld [vmem:[#allocation8 + $0x1e8] ss:$24 sps:$4 sm:$0xff]  }
 0x26a   :  { %5509 = vmatpush2.bf16.msra.mxu0 %v7302_v33  ;;  %v7344_v33 = vld [vmem:[#allocation8 + $0x2d8] ss:$24 sps:$4 sm:$0xff]  }
 0x26b   :  { %5510 = vmatprep.subr.bf16.mxu0 %v7307_v57  ;;  %v7349_v57 = vld [vmem:[#allocation8 + $0x2ac] ss:$24 sps:$4 sm:$0xff]  }
 0x26c   :  { %5550 = vmatpush2.bf16.msra.mxu1 %v7437_v38  ;;  %v7364_v38 = vld [vmem:[#allocation8 + $0x1bc] ss:$24 sps:$4 sm:$0xff]  }
 0x26d   :  { %5551 = vmatprep.subr.bf16.mxu1 %v7445_v44  ;;  %v7365_v44 = vld [vmem:[#allocation8 + $0x188] ss:$24 sps:$4 sm:$0xff]  }
 0x26e   :  { %5511 = vmatpush2.bf16.msra.mxu0 %v7305_v39  ;;  %v7350_v39 = vld [vmem:[#allocation8 + $0x278] ss:$24 sps:$4 sm:$0xff]  }
 0x26f   :  { %5512 = vmatprep.subr.bf16.mxu0 %v7310_v41  ;;  %v7355_v41 = vld [vmem:[#allocation8 + $0x24c] ss:$24 sps:$4 sm:$0xff]  }
 0x270   :  { %5552 = vmatpush2.bf16.msra.mxu1 %v7443_v51  ;;  %v7370_v51 = vld [vmem:[#allocation8 + $0x164] ss:$24 sps:$4 sm:$0xff]  }
 0x271   :  { %5553 = vmatprep.subr.bf16.mxu1 %v7451_v58 }
 0x272   :  { %5513 = vmatpush2.bf16.msra.mxu0 %v7308_v28  ;;  %v7356_v28 = vld [vmem:[#allocation8 + $0x218] ss:$24 sps:$4 sm:$0xff]  }
 0x273   :  { %5514 = vmatprep.subr.bf16.mxu0 %v7313_v62  ;;  %v7361_v62 = vld [vmem:[#allocation8 + $0x1ec] ss:$24 sps:$4 sm:$0xff]  }
 0x274   :  { %5554 = vmatpush2.bf16.msra.mxu1 %v7449_v9  ;;  %v7371_v9 = vld [vmem:[#allocation8 + $0x130] ss:$24 sps:$4 sm:$0xff]  }
 0x275   :  { %5555 = vmatprep.subr.bf16.mxu1 %v7457_v60  ;;  %v7376_v60 = vld [vmem:[#allocation8 + $0x104] ss:$24 sps:$4 sm:$0xff]  }
 0x276   :  { %5515 = vmatpush2.bf16.msra.mxu0 %v7311_v49  ;;  %v7362_v49 = vld [vmem:[#allocation8 + $0x1b8] ss:$24 sps:$4 sm:$0xff]  }
 0x277   :  { %5516 = vmatprep.subr.bf16.mxu0 %v7316_v50  ;;  %v7367_v50 = vld [vmem:[#allocation8 + $0x18c] ss:$24 sps:$4 sm:$0xff]  }
 0x278   :  { %5556 = vmatpush2.bf16.msra.mxu1 %v7455_v63 }
 0x279   :  { %5557 = vmatprep.subr.bf16.mxu1 %v7460_v6 }
 0x27a   :  { %5517 = vmatpush2.bf16.msra.mxu0 %v7314_v53  ;;  %v7368_v53 = vld [vmem:[#allocation8 + $0x160] ss:$24 sps:$4 sm:$0xff]  }
 0x27b   :  { %5518 = vmatprep.subr.bf16.mxu0 %v7319_v55  ;;  %v7373_v55 = vld [vmem:[#allocation8 + $0x134] ss:$24 sps:$4 sm:$0xff]  }
 0x27c   :  { %5558 = vmatpush2.bf16.msra.mxu1 %v7458_v11  ;;  %v7392_v11 = vld [vmem:[#allocation8 + $0x70] ss:$24 sps:$4 sm:$0xff]  }
 0x27d   :  { %5559 = vmatprep.subr.bf16.mxu1 %v7463_v17  ;;  %v7412_v17 = vld [vmem:[#allocation8 + $0x2e4] ss:$24 sps:$4 sm:$0xff]  }
 0x27e   :  { %5519 = vmatpush2.bf16.msra.mxu0 %v7317_v48 }
 0x27f   :  { %5570 = vmatprep.subr.bf16.mxu0 %v7322_v59 }
 0x280   :  { %5560 = vmatpush2.bf16.msra.mxu1 %v7461_v35  ;;  %v7424_v35 = vld [vmem:[#allocation8 + $0x284] ss:$24 sps:$4 sm:$0xff]  }
 0x281   :  { %v4088_v2 = vpop.f32.mrf.mxu0  ;;  %5521 = vmatmul.mubr.bf16.vlgmr.msra.gmra.mxu0 %v7876_v1 }
 0x282   :  { %v4089_v4 = vadd.f32 %v4088_v2, %v7870_v54  ;;  %5571 = vmatpush1.bf16.msra.mxu0 %v7320_v0  ;;  %5602 = vmatprep.mubr.bf16.mxu0 %v7863_v45  ;;  %v7326_v54 = vld [vmem:[#allocation8 + $0xf8] ss:$24 sps:$4 sm:$0xff]  }
 0x283   :  { %v4129_v7 = vpop.f32.mrf.mxu1  ;;  %v4090_v8 = vpop.f32.mrf.mxu0  ;;  %5572 = vmatprep.subr.bf16.mxu0 %v7325_v52  ;;  %v7374_v52 = vld [vmem:[#allocation8 + $0x100] ss:$24 sps:$4 sm:$0xff]  }
 0x284   :  { %v7881_v31 = vadd.f32 %v4129_v7, %v4089_v4  ;;  %v4091_v23 = vadd.f32 %v4090_v8, %v7872_v61  ;;  %v7466_v61 = vld [vmem:[#allocation8 + $0x45c] ss:$24 sps:$4 sm:$0xff]   ;;  %v7380_v7 = vld [vmem:[#allocation8 + $0xd0] ss:$24 sps:$4 sm:$0xff]   ;;  %v7386_v8 = vld [vmem:[#allocation8 + $0xa0] ss:$24 sps:$4 sm:$0xff]  }
 0x285   :  { %v4131_v12 = vpop.f32.mrf.mxu1  ;;  %v4092_v43 = vpop.f32.mrf.mxu0  ;;  %5611 = vmatprep.subr.bf16.mxu1 %v7466_v61  ;;  %v7428_v61 = vld [vmem:[#allocation8 + $0x250] ss:$24 sps:$4 sm:$0xff]  }
 0x286   :  { %v7884_v13 = vadd.f32 %v4131_v12, %v4091_v23  ;;  %5573 = vmatpush1.bf16.msra.mxu0 %v7323_v5  ;;  %v7382_v5 = vld [vmem:[#allocation8 + $0xd4] ss:$24 sps:$4 sm:$0xff]   ;;  %v7400_v23 = vld [vmem:[#allocation8 + $0x44] ss:$24 sps:$4 sm:$0xff]   ;;  %v7398_v12 = vld [vmem:[#allocation8 + $0x40] ss:$24 sps:$4 sm:$0xff]  }
 0x287   :  { %v4133_v15 = vpop.f32.mrf.mxu1  ;;  %v4093_v26 = vpop.f32.mrf.mxu0  ;;  %5574 = vmatprep.subr.bf16.mxu0 %v7328_v30  ;;  %v7394_v30 = vld [vmem:[#allocation8 + $0x74] ss:$24 sps:$4 sm:$0xff]  }
 0x288   :  { %v7406_v43 = vld [vmem:[#allocation8 + $0x14] ss:$24 sps:$4 sm:$0xff]   ;;  %v7410_v15 = vld [vmem:[#allocation8 + $0x2e0] ss:$24 sps:$4 sm:$0xff]  }
 0x289   :  { %v4134_v18 = vpop.f32.mrf.mxu1  ;;  %v7418_v26 = vld [vmem:[#allocation8 + $0x2b4] ss:$24 sps:$4 sm:$0xff]  }
 0x28a   :  { %5575 = vmatpush1.bf16.msra.mxu0 %v7326_v54  ;;  %v7404_v54 = vld [vmem:[#allocation8 + $0x10] ss:$24 sps:$4 sm:$0xff]   ;;  %v7422_v18 = vld [vmem:[#allocation8 + $0x280] ss:$24 sps:$4 sm:$0xff]  }
 0x28b   :  { %5576 = vmatprep.subr.bf16.mxu0 %v7331_v16  ;;  %v7416_v16 = vld [vmem:[#allocation8 + $0x2b0] ss:$24 sps:$4 sm:$0xff]  }
 0x28e   :  { %5577 = vmatpush1.bf16.msra.mxu0 %v7329_v56  ;;  %v7430_v56 = vld [vmem:[#allocation8 + $0x254] ss:$24 sps:$4 sm:$0xff]  }
 0x28f   :  { %5578 = vmatprep.subr.bf16.mxu0 %v7334_v19  ;;  %v7436_v19 = vld [vmem:[#allocation8 + $0x224] ss:$24 sps:$4 sm:$0xff]  }
 0x292   :  { %5579 = vmatpush1.bf16.msra.mxu0 %v7332_v24  ;;  %v7434_v24 = vld [vmem:[#allocation8 + $0x220] ss:$24 sps:$4 sm:$0xff]  }
 0x293   :  { %5580 = vmatprep.subr.bf16.mxu0 %v7337_v20  ;;  %v7442_v20 = vld [vmem:[#allocation8 + $0x1f4] ss:$24 sps:$4 sm:$0xff]  }
 0x296   :  { %5581 = vmatpush1.bf16.msra.mxu0 %v7335_v21  ;;  %v7440_v21 = vld [vmem:[#allocation8 + $0x1f0] ss:$24 sps:$4 sm:$0xff]  }
 0x297   :  { %5582 = vmatprep.subr.bf16.mxu0 %v7340_v22  ;;  %v7448_v22 = vld [vmem:[#allocation8 + $0x1c4] ss:$24 sps:$4 sm:$0xff]  }
 0x29a   :  { %5583 = vmatpush1.bf16.msra.mxu0 %v7338_v27  ;;  %v7446_v27 = vld [vmem:[#allocation8 + $0x1c0] ss:$24 sps:$4 sm:$0xff]  }
 0x29b   :  { %5584 = vmatprep.subr.bf16.mxu0 %v7343_v29  ;;  %v7454_v29 = vld [vmem:[#allocation8 + $0x194] ss:$24 sps:$4 sm:$0xff]  }
 0x29e   :  { %5585 = vmatpush1.bf16.msra.mxu0 %v7341_v32  ;;  %v7452_v32 = vld [vmem:[#allocation8 + $0x190] ss:$24 sps:$4 sm:$0xff]  }
 0x29f   :  { %5586 = vmatprep.subr.bf16.mxu0 %v7346_v10 }
 0x2a2   :  { %5587 = vmatpush2.bf16.msra.mxu0 %v7344_v33 }
 0x2a3   :  { %5588 = vmatprep.subr.bf16.mxu0 %v7349_v57 }
 0x2a6   :  { %5589 = vmatpush2.bf16.msra.mxu0 %v7347_v34 }
 0x2a7   :  { %5590 = vmatprep.subr.bf16.mxu0 %v7352_v47 }
 0x2aa   :  { %5591 = vmatpush2.bf16.msra.mxu0 %v7350_v39 }
 0x2ab   :  { %5592 = vmatprep.subr.bf16.mxu0 %v7355_v41 }
 0x2ae   :  { %5593 = vmatpush2.bf16.msra.mxu0 %v7353_v40 }
 0x2af   :  { %5594 = vmatprep.subr.bf16.mxu0 %v7358_v14 }
 0x2b2   :  { %5595 = vmatpush2.bf16.msra.mxu0 %v7356_v28 }
 0x2b3   :  { %5596 = vmatprep.subr.bf16.mxu0 %v7361_v62 }
 0x2b6   :  { %5597 = vmatpush2.bf16.msra.mxu0 %v7359_v3 }
 0x2b7   :  { %5598 = vmatprep.subr.bf16.mxu0 %v7364_v38 }
 0x2ba   :  { %5599 = vmatpush2.bf16.msra.mxu0 %v7362_v49 }
 0x2bb   :  { %5600 = vmatprep.subr.bf16.mxu0 %v7367_v50 }
 0x2be   :  { %5601 = vmatpush2.bf16.msra.mxu0 %v7365_v44 }
 0x2bf   :  { %5652 = vmatprep.subr.bf16.mxu0 %v7370_v51 }
 0x2c1   :  { %v7886_v58 = vpop.f32.mrf.mxu0  ;;  %5603 = vmatmul.mubr.bf16.vlgmr.msra.gmra.mxu0 %v7876_v1 }
 0x2c2   :  { %5653 = vmatpush1.bf16.msra.mxu0 %v7368_v53  ;;  %5684 = vmatprep.mubr.bf16.mxu0 %v7863_v45  ;;  %v7388_v45 = vld [vmem:[#allocation8 + $0xa4] ss:$24 sps:$4 sm:$0xff]   ;;  %v4171_v10 = vadd.f32 %v7886_v58, %v7881_v31  ;;  %v7470_v58 = vld [vmem:[#allocation8 + $0x3f8] ss:$24 sps:$4 sm:$0xff]  }
 0x2c3   :  { %v7890_v48 = vpop.f32.mrf.mxu1  ;;  %v7892_v59 = vpop.f32.mrf.mxu0  ;;  %5654 = vmatprep.subr.bf16.mxu0 %v7373_v55  ;;  %v7469_v53 = vld [vmem:[#allocation8 + $0x42c] ss:$24 sps:$4 sm:$0xff]   ;;  %v7472_v55 = vld [vmem:[#allocation8 + $0x3fc] ss:$24 sps:$4 sm:$0xff]  }
 0x2c4   :  { %v4173_v33 = vadd.f32 %v7892_v59, %v7884_v13  ;;  %v4212_v57 = vadd.f32 %v7890_v48, %v4171_v10  ;;  %v7464_v13 = vld [vmem:[#allocation8 + $0x458] ss:$24 sps:$4 sm:$0xff]   ;;  %v7473_v48 = vld [vmem:[#allocation8 + $0x3c8] ss:$24 sps:$4 sm:$0xff]   ;;  %v7478_v59 = vld [vmem:[#allocation8 + $0x39c] ss:$24 sps:$4 sm:$0xff]  }
 0x2c5   :  { %v7894_v63 = vpop.f32.mrf.mxu1  ;;  %v4174_v0 = vpop.f32.mrf.mxu0  ;;  %v7523_v10 = vld [vmem:[#allocation8 + $0x3d4] ss:$24 sps:$4 sm:$0xff]  }
 0x2c6   :  { %5655 = vmatpush1.bf16.msra.mxu0 %v7371_v9  ;;  %v4214_v47 = vadd.f32 %v7894_v63, %v4173_v33  ;;  %v7475_v9 = vld [vmem:[#allocation8 + $0x3cc] ss:$24 sps:$4 sm:$0xff]   ;;  %v7479_v0 = vld [vmem:[#allocation8 + $0x368] ss:$24 sps:$4 sm:$0xff]  }
 0x2c7   :  { %v4215_v2 = vpop.f32.mrf.mxu1  ;;  %v4175_v4 = vpop.f32.mrf.mxu0  ;;  %5656 = vmatprep.subr.bf16.mxu0 %v7376_v60  ;;  %v7476_v60 = vld [vmem:[#allocation8 + $0x398] ss:$24 sps:$4 sm:$0xff]   ;;  %v7481_v63 = vld [vmem:[#allocation8 + $0x36c] ss:$24 sps:$4 sm:$0xff]  }
 0x2c8   :  { %v7482_v2 = vld [vmem:[#allocation8 + $0x338] ss:$24 sps:$4 sm:$0xff]   ;;  %v7487_v4 = vld [vmem:[#allocation8 + $0x30c] ss:$24 sps:$4 sm:$0xff]  }
 0x2c9   :  { %v4216_v6 = vpop.f32.mrf.mxu1  ;;  %v7521_v33 = vld [vmem:[#allocation8 + $0x3d0] ss:$24 sps:$4 sm:$0xff]  }
 0x2ca   :  { %5657 = vmatpush1.bf16.msra.mxu0 %v7374_v52  ;;  %v7484_v52 = vld [vmem:[#allocation8 + $0x33c] ss:$24 sps:$4 sm:$0xff]  }
 0x2cb   :  { %5658 = vmatprep.subr.bf16.mxu0 %v7382_v5  ;;  %v7485_v5 = vld [vmem:[#allocation8 + $0x308] ss:$24 sps:$4 sm:$0xff]   ;;  %v7490_v6 = vld [vmem:[#allocation8 + $0x5dc] ss:$24 sps:$4 sm:$0xff]  }
 0x2ce   :  { %5659 = vmatpush1.bf16.msra.mxu0 %v7380_v7  ;;  %v7488_v7 = vld [vmem:[#allocation8 + $0x5d8] ss:$24 sps:$4 sm:$0xff]  }
 0x2cf   :  { %5660 = vmatprep.subr.bf16.mxu0 %v7388_v45  ;;  %v7493_v45 = vld [vmem:[#allocation8 + $0x5ac] ss:$24 sps:$4 sm:$0xff]  }
 0x2d2   :  { %5661 = vmatpush1.bf16.msra.mxu0 %v7386_v8  ;;  %v7491_v8 = vld [vmem:[#allocation8 + $0x5a8] ss:$24 sps:$4 sm:$0xff]  }
 0x2d3   :  { %5662 = vmatprep.subr.bf16.mxu0 %v7394_v30  ;;  %v7496_v30 = vld [vmem:[#allocation8 + $0x57c] ss:$24 sps:$4 sm:$0xff]  }
 0x2d6   :  { %5663 = vmatpush1.bf16.msra.mxu0 %v7392_v11  ;;  %v7494_v11 = vld [vmem:[#allocation8 + $0x578] ss:$24 sps:$4 sm:$0xff]  }
 0x2d7   :  { %5664 = vmatprep.subr.bf16.mxu0 %v7400_v23  ;;  %v7499_v23 = vld [vmem:[#allocation8 + $0x54c] ss:$24 sps:$4 sm:$0xff]  }
 0x2da   :  { %5665 = vmatpush1.bf16.msra.mxu0 %v7398_v12  ;;  %v7497_v12 = vld [vmem:[#allocation8 + $0x548] ss:$24 sps:$4 sm:$0xff]  }
 0x2db   :  { %5666 = vmatprep.subr.bf16.mxu0 %v7406_v43  ;;  %v7502_v43 = vld [vmem:[#allocation8 + $0x51c] ss:$24 sps:$4 sm:$0xff]  }
 0x2de   :  { %5667 = vmatpush1.bf16.msra.mxu0 %v7404_v54  ;;  %v7500_v54 = vld [vmem:[#allocation8 + $0x518] ss:$24 sps:$4 sm:$0xff]  }
 0x2df   :  { %5668 = vmatprep.subr.bf16.mxu0 %v7412_v17  ;;  %v7505_v17 = vld [vmem:[#allocation8 + $0x4ec] ss:$24 sps:$4 sm:$0xff]  }
 0x2e2   :  { %5669 = vmatpush2.bf16.msra.mxu0 %v7410_v15  ;;  %v7503_v15 = vld [vmem:[#allocation8 + $0x4e8] ss:$24 sps:$4 sm:$0xff]  }
 0x2e3   :  { %5670 = vmatprep.subr.bf16.mxu0 %v7418_v26  ;;  %v7508_v26 = vld [vmem:[#allocation8 + $0x4bc] ss:$24 sps:$4 sm:$0xff]  }
 0x2e6   :  { %5671 = vmatpush2.bf16.msra.mxu0 %v7416_v16  ;;  %v7506_v16 = vld [vmem:[#allocation8 + $0x4b8] ss:$24 sps:$4 sm:$0xff]  }
 0x2e7   :  { %5672 = vmatprep.subr.bf16.mxu0 %v7424_v35 }
 0x2ea   :  { %5673 = vmatpush2.bf16.msra.mxu0 %v7422_v18  ;;  %v7511_v18 = vld [vmem:[#allocation8 + $0x48c] ss:$24 sps:$4 sm:$0xff]  }
 0x2eb   :  { %5674 = vmatprep.subr.bf16.mxu0 %v7430_v56 }
 0x2ee   :  { %5675 = vmatpush2.bf16.msra.mxu0 %v7428_v61  ;;  %v7509_v61 = vld [vmem:[#allocation8 + $0x488] ss:$24 sps:$4 sm:$0xff]  }
 0x2ef   :  { %5676 = vmatprep.subr.bf16.mxu0 %v7436_v19 }
 0x2f2   :  { %5677 = vmatpush2.bf16.msra.mxu0 %v7434_v24  ;;  %v7514_v24 = vld [vmem:[#allocation8 + $0x464] ss:$24 sps:$4 sm:$0xff]  }
 0x2f3   :  { %5678 = vmatprep.subr.bf16.mxu0 %v7442_v20 }
 0x2f6   :  { %5679 = vmatpush2.bf16.msra.mxu0 %v7440_v21  ;;  %v7512_v21 = vld [vmem:[#allocation8 + $0x460] ss:$24 sps:$4 sm:$0xff]  }
 0x2f7   :  { %5680 = vmatprep.subr.bf16.mxu0 %v7448_v22  ;;  %v7517_v22 = vld [vmem:[#allocation8 + $0x434] ss:$24 sps:$4 sm:$0xff]  }
 0x2fa   :  { %5681 = vmatpush2.bf16.msra.mxu0 %v7446_v27  ;;  %v7515_v27 = vld [vmem:[#allocation8 + $0x430] ss:$24 sps:$4 sm:$0xff]  }
 0x2fb   :  { %5682 = vmatprep.subr.bf16.mxu0 %v7454_v29  ;;  %v7520_v29 = vld [vmem:[#allocation8 + $0x404] ss:$24 sps:$4 sm:$0xff]  }
 0x2fe   :  { %5683 = vmatpush2.bf16.msra.mxu0 %v7452_v32  ;;  %v7518_v32 = vld [vmem:[#allocation8 + $0x400] ss:$24 sps:$4 sm:$0xff]  }
 0x301   :  { %v4252_v34 = vpop.f32.mrf.mxu0  ;;  %5685 = vmatmul.mubr.bf16.vlgmr.msra.gmra.mxu0 %v7876_v1  ;;  %v7467_v1 = vld [vmem:[#allocation8 + $0x428] ss:$24 sps:$4 sm:$0xff]  }
 0x302   :  { %v4253_v39 = vadd.f32 %v4252_v34, %v4212_v57  ;;  %v7526_v57 = vld [vmem:[#allocation8 + $0x3a4] ss:$24 sps:$4 sm:$0xff]   ;;  %v7524_v34 = vld [vmem:[#allocation8 + $0x3a0] ss:$24 sps:$4 sm:$0xff]  }
 0x303   :  { %v4293_v41 = vpop.f32.mrf.mxu1  ;;  %v4254_v40 = vpop.f32.mrf.mxu0 }
 0x304   :  { %v4255_v14 = vadd.f32 %v4254_v40, %v4214_v47  ;;  %v4294_v28 = vadd.f32 %v4293_v41, %v4253_v39  ;;  %v7529_v47 = vld [vmem:[#allocation8 + $0x374] ss:$24 sps:$4 sm:$0xff]   ;;  %v7527_v39 = vld [vmem:[#allocation8 + $0x370] ss:$24 sps:$4 sm:$0xff]   ;;  %v7532_v41 = vld [vmem:[#allocation8 + $0x344] ss:$24 sps:$4 sm:$0xff]  }
 0x305   :  { %v4295_v62 = vpop.f32.mrf.mxu1  ;;  %v4256_v3 = vpop.f32.mrf.mxu0  ;;  %v7530_v40 = vld [vmem:[#allocation8 + $0x340] ss:$24 sps:$4 sm:$0xff]  }
 0x306   :  { %v4296_v38 = vadd.f32 %v4295_v62, %v4255_v14  ;;  %v7905_v44 = vpack.c.bf16 %v4294_v28, %v4294_v28  ;;  %v7535_v14 = vld [vmem:[#allocation8 + $0x314] ss:$24 sps:$4 sm:$0xff]   ;;  %v7533_v28 = vld [vmem:[#allocation8 + $0x310] ss:$24 sps:$4 sm:$0xff]   ;;  %v7538_v62 = vld [vmem:[#allocation8 + $0x5e4] ss:$24 sps:$4 sm:$0xff]  }
 0x307   :  { %v4297_v31 = vpop.f32.mrf.mxu1  ;;  %v4257_v49 = vpop.f32.mrf.mxu0  ;;  %v7536_v3 = vld [vmem:[#allocation8 + $0x5e0] ss:$24 sps:$4 sm:$0xff]  }
 0x308   :  { %v7903_v50 = vpack.c.bf16 %v4296_v38, %v4296_v38  ;;  %v7541_v38 = vld [vmem:[#allocation8 + $0x5b4] ss:$24 sps:$4 sm:$0xff]   ;;  %v7539_v31 = vld [vmem:[#allocation8 + $0x5b0] ss:$24 sps:$4 sm:$0xff]   ;;  %v7544_v49 = vld [vmem:[#allocation8 + $0x584] ss:$24 sps:$4 sm:$0xff]  }
 0x309   :  { %v4298_v51 = vpop.f32.mrf.mxu1 }
 0x30a   :  { %5561 = vmatprep.mubr.bf16.mxu1 %v7903_v50  ;;  %v7545_v51 = vld [vmem:[#allocation8 + $0x550] ss:$24 sps:$4 sm:$0xff]  }
 0x30b   :  { %5562 = vmatmul.mubr.bf16.vlgmr.msra.gmra.mxu1 %v7905_v44 }
 0x30c   :  { %5612 = vmatpush1.bf16.msra.mxu1 %v7464_v13  ;;  %5643 = vmatprep.mubr.bf16.mxu1 %v7903_v50  ;;  %v7547_v13 = vld [vmem:[#allocation8 + $0x554] ss:$24 sps:$4 sm:$0xff]  }
 0x30d   :  { %5613 = vmatprep.subr.bf16.mxu1 %v7469_v53  ;;  %v7550_v53 = vld [vmem:[#allocation8 + $0x524] ss:$24 sps:$4 sm:$0xff]  }
 0x310   :  { %5614 = vmatpush1.bf16.msra.mxu1 %v7467_v1  ;;  %v7548_v1 = vld [vmem:[#allocation8 + $0x520] ss:$24 sps:$4 sm:$0xff]  }
 0x311   :  { %5615 = vmatprep.subr.bf16.mxu1 %v7472_v55  ;;  %v7553_v55 = vld [vmem:[#allocation8 + $0x4f4] ss:$24 sps:$4 sm:$0xff]  }
 0x314   :  { %5616 = vmatpush1.bf16.msra.mxu1 %v7470_v58  ;;  %v7551_v58 = vld [vmem:[#allocation8 + $0x4f0] ss:$24 sps:$4 sm:$0xff]  }
 0x315   :  { %5617 = vmatprep.subr.bf16.mxu1 %v7475_v9  ;;  %v7556_v9 = vld [vmem:[#allocation8 + $0x4c4] ss:$24 sps:$4 sm:$0xff]  }
 0x318   :  { %5618 = vmatpush1.bf16.msra.mxu1 %v7473_v48  ;;  %v7554_v48 = vld [vmem:[#allocation8 + $0x4c0] ss:$24 sps:$4 sm:$0xff]  }
 0x319   :  { %5619 = vmatprep.subr.bf16.mxu1 %v7478_v59 }
 0x31c   :  { %5620 = vmatpush1.bf16.msra.mxu1 %v7476_v60  ;;  %v7559_v60 = vld [vmem:[#allocation8 + $0x494] ss:$24 sps:$4 sm:$0xff]  }
 0x31d   :  { %5621 = vmatprep.subr.bf16.mxu1 %v7481_v63 }
 0x320   :  { %5622 = vmatpush1.bf16.msra.mxu1 %v7479_v0  ;;  %v7557_v0 = vld [vmem:[#allocation8 + $0x490] ss:$24 sps:$4 sm:$0xff]  }
 0x321   :  { %5623 = vmatprep.subr.bf16.mxu1 %v7484_v52 }
 0x324   :  { %5624 = vmatpush1.bf16.msra.mxu1 %v7482_v2 }
 0x325   :  { %5625 = vmatprep.subr.bf16.mxu1 %v7487_v4  ;;  %v4516_v4 = vsub.s32 4, %v7803_v25 }
 0x328   :  { %5626 = vmatpush1.bf16.msra.mxu1 %v7485_v5  ;;  %v4520_v5 = vsub.s32 5, %v7803_v25 }
 0x329   :  { %5627 = vmatprep.subr.bf16.mxu1 %v7490_v6  ;;  %v4496_v6 = vld [vmem:[#allocation10] sm:$0x3f] }
 0x32c   :  { %5628 = vmatpush2.bf16.msra.mxu1 %v7488_v7  ;;  %v4517_v7 = vrot.slane %v4496_v6, %v4516_v4 }
 0x32d   :  { %5629 = vmatprep.subr.bf16.mxu1 %v7493_v45  ;;  %v4521_v45 = vrot.slane %v4496_v6, %v4520_v5 }
 0x330   :  { %5630 = vmatpush2.bf16.msra.mxu1 %v7491_v8 }
 0x331   :  { %5631 = vmatprep.subr.bf16.mxu1 %v7496_v30 }
 0x334   :  { %5632 = vmatpush2.bf16.msra.mxu1 %v7494_v11 }
 0x335   :  { %5633 = vmatprep.subr.bf16.mxu1 %v7499_v23 }
 0x338   :  { %5634 = vmatpush2.bf16.msra.mxu1 %v7497_v12 }
 0x339   :  { %5635 = vmatprep.subr.bf16.mxu1 %v7502_v43  ;;  %v4501_v43 = vrot.slane %v4496_v6, %v953_v37  ;;  %v4509_v37 = vrot.slane %v4496_v6, %v961_v36 }
 0x33c   :  { %5636 = vmatpush2.bf16.msra.mxu1 %v7500_v54 }
 0x33d   :  { %5637 = vmatprep.subr.bf16.mxu1 %v7505_v17  ;;  %v4505_v17 = vrot.slane %v4496_v6, %v957_v46 }
 0x340   :  { %5638 = vmatpush2.bf16.msra.mxu1 %v7503_v15 }
 0x341   :  { %v7910_v35 = vpop.f32.mrf.mxu0  ;;  %5639 = vmatprep.subr.bf16.mxu1 %v7508_v26 }
 0x343   :  { %v7912_v56 = vpop.f32.mrf.mxu0 }
 0x344   :  { %5640 = vmatpush2.bf16.msra.mxu1 %v7506_v16  ;;  %v5525_v26 = vadd.f32 %v7912_v56, %v4505_v17 }
 0x345   :  { %v5526_v19 = vpop.f32.mrf.mxu0  ;;  %5641 = vmatprep.subr.bf16.mxu1 %v7511_v18 }
 0x347   :  { %v5527_v20 = vpop.f32.mrf.mxu0 }
 0x348   :  { %5642 = vmatpush2.bf16.msra.mxu1 %v7509_v61 }
 0x349   :  { %5693 = vmatprep.subr.bf16.mxu1 %v7514_v24 }
 0x34b   :  { %5644 = vmatmul.mubr.bf16.vlgmr.msra.gmra.mxu1 %v7905_v44 }
 0x34c   :  { %5694 = vmatpush1.bf16.msra.mxu1 %v7512_v21  ;;  %5725 = vmatprep.mubr.bf16.mxu1 %v7903_v50  ;;  %v7542_v50 = vld [vmem:[#allocation8 + $0x580] ss:$24 sps:$4 sm:$0xff]   ;;  %v7700_v21 = vmov 1983009808  }
 0x34d   :  { %5695 = vmatprep.subr.bf16.mxu1 %v7517_v22  ;;  %v5743_v22 = vunpack.c.l.s4 %v7700_v21 }
 0x34f   :  { %v5744_v46 = vunpack.c.0.s8 %v5743_v22 }
 0x350   :  { %5696 = vmatpush1.bf16.msra.mxu1 %v7515_v27  ;;  %v4513_v27 = vrot.slane %v4496_v6, %v965_v42 }
 0x351   :  { %5697 = vmatprep.subr.bf16.mxu1 %v7520_v29  ;;  %v5747_v56 = vsub.s32 %v5744_v46, %v7803_v25 }
 0x354   :  { %5698 = vmatpush1.bf16.msra.mxu1 %v7518_v32 }
 0x355   :  { %5699 = vmatprep.subr.bf16.mxu1 %v7523_v10 }
 0x358   :  { %5700 = vmatpush1.bf16.msra.mxu1 %v7521_v33 }
 0x359   :  { %5701 = vmatprep.subr.bf16.mxu1 %v7526_v57 }
 0x35c   :  { %5702 = vmatpush1.bf16.msra.mxu1 %v7524_v34 }
 0x35d   :  { %5703 = vmatprep.subr.bf16.mxu1 %v7529_v47 }
 0x360   :  { %5704 = vmatpush1.bf16.msra.mxu1 %v7527_v39 }
 0x361   :  { %5705 = vmatprep.subr.bf16.mxu1 %v7532_v41 }
 0x364   :  { %5706 = vmatpush1.bf16.msra.mxu1 %v7530_v40 }
 0x365   :  { %5707 = vmatprep.subr.bf16.mxu1 %v7535_v14 }
 0x368   :  { %5708 = vmatpush1.bf16.msra.mxu1 %v7533_v28 }
 0x369   :  { %5709 = vmatprep.subr.bf16.mxu1 %v7538_v62 }
 0x36c   :  { %5710 = vmatpush2.bf16.msra.mxu1 %v7536_v3 }
 0x36d   :  { %5711 = vmatprep.subr.bf16.mxu1 %v7541_v38 }
 0x370   :  { %5712 = vmatpush2.bf16.msra.mxu1 %v7539_v31 }
 0x371   :  { %5713 = vmatprep.subr.bf16.mxu1 %v7544_v49 }
 0x374   :  { %5714 = vmatpush2.bf16.msra.mxu1 %v7542_v50 }
 0x375   :  { %5715 = vmatprep.subr.bf16.mxu1 %v7547_v13 }
 0x378   :  { %5716 = vmatpush2.bf16.msra.mxu1 %v7545_v51 }
 0x379   :  { %5717 = vmatprep.subr.bf16.mxu1 %v7550_v53 }
 0x37c   :  { %5718 = vmatpush2.bf16.msra.mxu1 %v7548_v1 }
 0x37d   :  { %5719 = vmatprep.subr.bf16.mxu1 %v7553_v55 }
 0x380   :  { %5720 = vmatpush2.bf16.msra.mxu1 %v7551_v58 }
 0x381   :  { %v5604_v59 = vpop.f32.mrf.mxu0  ;;  %5721 = vmatprep.subr.bf16.mxu1 %v7556_v9 }
 0x383   :  { %v5606_v63 = vpop.f32.mrf.mxu0 }
 0x384   :  { %5722 = vmatpush2.bf16.msra.mxu1 %v7554_v48  ;;  %v5607_v32 = vadd.f32 %v5606_v63, %v4513_v27 }
 0x385   :  { %v5608_v52 = vpop.f32.mrf.mxu0  ;;  %5723 = vmatprep.subr.bf16.mxu1 %v7559_v60 }
 0x387   :  { %v5609_v2 = vpop.f32.mrf.mxu0 }
 0x388   :  { %5724 = vmatpush2.bf16.msra.mxu1 %v7557_v0 }
 0x38b   :  { %5726 = vmatmul.mubr.bf16.vlgmr.msra.gmra.mxu1 %v7905_v44  ;;  %v5523_v44 = vadd.f32 %v7910_v35, %v4501_v43  ;;  %v5605_v35 = vadd.f32 %v5604_v59, %v4509_v37 }
 0x3c1   :  { %v5686_v8 = vpop.f32.mrf.mxu0 }
 0x3c2   :  { %v5687_v30 = vadd.f32 %v5686_v8, %v4517_v7 }
 0x3c3   :  { %v5688_v11 = vpop.f32.mrf.mxu0 }
 0x3c4   :  { %v5689_v23 = vadd.f32 %v5688_v11, %v4521_v45 }
 0x3c5   :  { %v5690_v12 = vpop.f32.mrf.mxu0 }
 0x3c7   :  { %v5691_v54 = vpop.f32.mrf.mxu0 }
 0x3cb   :  { %v5563_v15 = vpop.f32.mrf.mxu1 }
 0x3cc   :  { %v5564_v16 = vadd.f32 %v5563_v15, %v5523_v44 }
 0x3cd   :  { %v5565_v18 = vpop.f32.mrf.mxu1 }
 0x3ce   :  { %v5566_v61 = vadd.f32 %v5565_v18, %v5525_v26 }
 0x3cf   :  { %v5567_v19 = vpop.f32.mrf.mxu1 }
 0x3d0   :  { %v5740_v24 = vcombine.low %v5564_v16, %v5566_v61 }
 0x3d1   :  { %v5568_v20 = vpop.f32.mrf.mxu1 }
 0x3d2   :  { %v5748_v41 = vrot.slane %v5740_v24, %v5747_v56 }
 0x40b   :  { %v5645_v29 = vpop.f32.mrf.mxu1 }
 0x40c   :  { %v5646_v33 = vadd.f32 %v5645_v29, %v5605_v35 }
 0x40d   :  { %v5647_v10 = vpop.f32.mrf.mxu1 }
 0x40e   :  { %v5648_v57 = vadd.f32 %v5647_v10, %v5607_v32 }
 0x40f   :  { %v5649_v34 = vpop.f32.mrf.mxu1 }
 0x410   :  { %v5741_v47 = vcombine.low %v5646_v33, %v5648_v57 }
 0x411   :  { %v5650_v39 = vpop.f32.mrf.mxu1 }
 0x412   :  { %v5755_v40 = vrot.slane %v5741_v47, %v5747_v56 }
 0x414   :  { %v5756_v14 = vcombine.low %v5748_v41, %v5755_v40 }
 0x416   :  { %5767 = vst [vmem:[#allocation11] sm:$0xff] %v5756_v14 }
 0x44b   :  { %v5727_v36 = vpop.f32.mrf.mxu1 }
 0x44c   :  { %v5728_v42 = vadd.f32 %v5727_v36, %v5687_v30 }
 0x44d   :  { %v5729_v28 = vpop.f32.mrf.mxu1 }
 0x44e   :  { %v5730_v62 = vadd.f32 %v5729_v28, %v5689_v23 }
 0x44f   :  { %v5731_v3 = vpop.f32.mrf.mxu1 }
 0x450   :  { %v5757_v38 = vcombine.low %v5728_v42, %v5730_v62 }
 0x451   :  { %v5732_v31 = vpop.f32.mrf.mxu1 }
 0x452   :  { %6490 = vst.sshfl [vmem:[#allocation11 + $0x8] sm:$0x33 pattern:$0x76325410] %v5757_v38 }
 0x453   :  { %7672 = shalt.err (!%p7669_p1)
}
 0x454   :  { %5778 = dma.vmem_to_hbm [thread:$0]  %s5776_s4, 192, %s7938_s5, [#allocation4]  }
 0x455   :  { %7687 = dma.done.wait [#allocation4], 192  }
 0x456   :  { %7688 = vsyncadd [#allocation4], 4294967104 }
 0x457   :  { %5782 = vsyncpa [#allocation3], 1 }
 0x458   :  { %5783 = vsyncpa [#allocation6], 1 }
 0x459   :  { %5784 = vsyncpa [#allocation9], 1 }
 0x45a   :  { %5785 = vsyncpa [#allocation4], 1 }

</bundles_post_ra>
